<compile_context>
chip_gen: v7x
topology: tpu7x:2x2x1
jax: 0.10.0
libtpu: 0.0.40
codegen_flags: <defaults>
</compile_context>

<pallas_src>
import math
import functools

import numpy as np
import jax
import jax.numpy as jnp
from jax.experimental import pallas as pl
from jax.experimental.pallas import tpu as pltpu

# --------------------------------------------------------------------------
# Model hyper-parameters implied by the PyTorch module
# --------------------------------------------------------------------------
HIDDEN = 1024          # config['hidden_size']  (hard-coded 1024 in forward)
N_HEAD = 16
D_K = 64
D_V = 64
N_LAYERS = 6
EDGE_VOCAB = 100
CLASS_NUM = 3          # config['class_num']
ACTION_DIM = 2         # fc_net.fc{i} output (binary action)
VOCAB = 50             # synthetic BERT vocab

# small example shapes
BATCH = 2
SEQ = 16               # input_ids length
NODES = 8              # max_node_num (graph_mask.size(1))


# --------------------------------------------------------------------------
# Pallas kernels
# --------------------------------------------------------------------------
def _layernorm_val(h, g, b):
    mu = jnp.mean(h, axis=-1, keepdims=True)
    var = jnp.mean((h - mu) ** 2, axis=-1, keepdims=True)
    return (h - mu) * jax.lax.rsqrt(var + 1e-5) * g + b


def _linear_kernel(x_ref, w_ref, b_ref, o_ref):
    # x: (M, K) f32, w: (K, TN) bf16, b: (1, TN) f32 -> o: (M, TN) f32
    o_ref[...] = (
        jnp.dot(x_ref[...].astype(jnp.bfloat16),
                w_ref[...].astype(jnp.bfloat16),
                preferred_element_type=jnp.float32)
        + b_ref[...]
    ).astype(o_ref.dtype)


def _linear_tanh_ln_kernel(x_ref, w_ref, b_ref, g_ref, beta_ref, o_ref):
    h = jnp.dot(x_ref[...].astype(jnp.bfloat16),
                w_ref[...].astype(jnp.bfloat16),
                preferred_element_type=jnp.float32) + b_ref[...]
    h = jnp.tanh(h)
    o_ref[...] = _layernorm_val(h, g_ref[...], beta_ref[...]).astype(o_ref.dtype)


def _linear_res_ln_kernel(x_ref, w_ref, b_ref, r_ref, g_ref, beta_ref, o_ref):
    h = (jnp.dot(x_ref[...].astype(jnp.bfloat16),
                 w_ref[...].astype(jnp.bfloat16),
                 preferred_element_type=jnp.float32)
         + b_ref[...] + r_ref[...])
    o_ref[...] = _layernorm_val(h, g_ref[...], beta_ref[...]).astype(o_ref.dtype)


def _graph_attn_kernel(q_ref, k_ref, v_ref, rels_ref, mask_ref, ctx_ref, attn_ref):
    # q/k/v : (1, H, N, Dk)   rels : (1, H, N, N) (precomputed q . rel_k)
    # mask  : (1, N, N) in {0,1}
    q = q_ref[0].astype(jnp.bfloat16)      # (H, N, Dk)
    k = k_ref[0].astype(jnp.bfloat16)
    v = v_ref[0].astype(jnp.bfloat16)
    scale = 1.0 / math.sqrt(float(q_ref.shape[-1]))

    # content scores on the MXU (batched over heads), f32 accumulation
    s = jnp.einsum("hqd,hkd->hqk", q, k, preferred_element_type=jnp.float32)
    s = (s + rels_ref[0]) * scale
    s = s + (1.0 - mask_ref[0])[None, :, :] * (-1e9)

    # stable softmax in f32; normalization through the (idle) EUP slot
    s = s - jnp.max(s, axis=-1, keepdims=True)
    e = jnp.exp(s)
    p = e * pl.reciprocal(jnp.sum(e, axis=-1, keepdims=True), approx=True)

    ctx = jnp.einsum("hqk,hkd->hqd", p.astype(jnp.bfloat16), v,
                     preferred_element_type=jnp.float32)
    ctx_ref[0] = ctx.astype(ctx_ref.dtype)
    attn_ref[0] = p.astype(attn_ref.dtype)


def _bilstm_kernel(mask_ref, xpf_ref, xpb_ref, whhf_ref, bhhf_ref,
                   whhb_ref, bhhb_ref, of_ref, ob_ref, hf, cf, hb, cb):
    # mask : (T, B, 1) validity     xpf/xpb : (T, B, 4H) pre-projected inputs
    # whh* : (H, 4H) bf16 (stay resident in VMEM for the whole recurrence)
    # of/ob: (T, B, H) per-direction outputs
    T = xpf_ref.shape[0]

    hf[...] = jnp.zeros_like(hf)
    cf[...] = jnp.zeros_like(cf)
    hb[...] = jnp.zeros_like(hb)
    cb[...] = jnp.zeros_like(cb)

    def sigm(z):
        return pl.reciprocal(1.0 + jnp.exp(-z), approx=True)

    def cell(xp_t, h, c, whh, bhh, valid):
        gates = (xp_t
                 + jnp.dot(h.astype(jnp.bfloat16), whh,
                           preferred_element_type=jnp.float32)
                 + bhh)
        i_g, f_g, g_g, o_g = jnp.split(gates, 4, axis=-1)
        i_g = sigm(i_g)
        f_g = sigm(f_g)
        g_g = jnp.tanh(g_g)
        o_g = sigm(o_g)
        c_new = f_g * c + i_g * g_g
        h_new = o_g * jnp.tanh(c_new)
        h_out = valid * h_new + (1.0 - valid) * h
        c_out = valid * c_new + (1.0 - valid) * c
        return h_out, c_out, valid * h_new

    @pl.loop(0, T)
    def _(s):
        tb = T - 1 - s
        # forward direction, timestep s
        vf = mask_ref[s]
        h_new, c_new, y = cell(xpf_ref[s], hf[...], cf[...],
                               whhf_ref[...], bhhf_ref[...], vf)
        hf[...] = h_new
        cf[...] = c_new
        of_ref[s] = y
        # backward direction, timestep T-1-s (packed-sequence semantics:
        # state stays zero past each sequence length)
        vb = mask_ref[tb]
        h_new, c_new, y = cell(xpb_ref[tb], hb[...], cb[...],
                               whhb_ref[...], bhhb_ref[...], vb)
        hb[...] = h_new
        cb[...] = c_new
        ob_ref[tb] = y


# --------------------------------------------------------------------------
# pallas_call wrappers
# --------------------------------------------------------------------------
def _pick_tile(n, cap=2048):
    if n <= cap:
        return n
    for t in range(cap, 127, -128):
        if n % t == 0:
            return t
    return n


@jax.jit
def pallas_linear(x, w, b):
    """y = x @ w + b.  w stored (in, out), typically bf16; f32 accumulate."""
    M, K = x.shape
    Kw, N = w.shape
    assert K == Kw
    tn = _pick_tile(N)
    grid = (N // tn,)
    return pl.pallas_call(
        _linear_kernel,
        out_shape=jax.ShapeDtypeStruct((M, N), jnp.float32),
        grid=grid,
        in_specs=[
            pl.BlockSpec((M, K), lambda j: (0, 0)),
            pl.BlockSpec((K, tn), lambda j: (0, j)),
            pl.BlockSpec((1, tn), lambda j: (0, j)),
        ],
        out_specs=pl.BlockSpec((M, tn), lambda j: (0, j)),
        compiler_params=pltpu.CompilerParams(
            dimension_semantics=("parallel",)),
    )(x.astype(jnp.float32), w, b.reshape(1, N).astype(jnp.float32))


@jax.jit
def pallas_linear_tanh_ln(x, w, b, g, beta):
    M, K = x.shape
    N = w.shape[1]
    full2 = lambda i: (0, 0)
    return pl.pallas_call(
        _linear_tanh_ln_kernel,
        out_shape=jax.ShapeDtypeStruct((M, N), jnp.float32),
        grid=(1,),
        in_specs=[
            pl.BlockSpec((M, K), full2),
            pl.BlockSpec((K, N), full2),
            pl.BlockSpec((1, N), full2),
            pl.BlockSpec((1, N), full2),
            pl.BlockSpec((1, N), full2),
        ],
        out_specs=pl.BlockSpec((M, N), full2),
    )(x.astype(jnp.float32), w, b.reshape(1, N), g.reshape(1, N),
      beta.reshape(1, N))


@jax.jit
def pallas_linear_res_ln(x, w, b, res, g, beta):
    M, K = x.shape
    N = w.shape[1]
    full2 = lambda i: (0, 0)
    return pl.pallas_call(
        _linear_res_ln_kernel,
        out_shape=jax.ShapeDtypeStruct((M, N), jnp.float32),
        grid=(1,),
        in_specs=[
            pl.BlockSpec((M, K), full2),
            pl.BlockSpec((K, N), full2),
            pl.BlockSpec((1, N), full2),
            pl.BlockSpec((M, N), full2),
            pl.BlockSpec((1, N), full2),
            pl.BlockSpec((1, N), full2),
        ],
        out_specs=pl.BlockSpec((M, N), full2),
    )(x.astype(jnp.float32), w, b.reshape(1, N), res.astype(jnp.float32),
      g.reshape(1, N), beta.reshape(1, N))


@jax.jit
def pallas_graph_attention(q, k, v, rels, mask):
    B, H, N, DK = q.shape
    DV = v.shape[-1]
    return pl.pallas_call(
        _graph_attn_kernel,
        out_shape=(jax.ShapeDtypeStruct((B, H, N, DV), jnp.float32),
                   jax.ShapeDtypeStruct((B, H, N, N), jnp.float32)),
        grid=(B,),
        in_specs=[
            pl.BlockSpec((1, H, N, DK), lambda b: (b, 0, 0, 0)),
            pl.BlockSpec((1, H, N, DK), lambda b: (b, 0, 0, 0)),
            pl.BlockSpec((1, H, N, DV), lambda b: (b, 0, 0, 0)),
            pl.BlockSpec((1, H, N, N), lambda b: (b, 0, 0, 0)),
            pl.BlockSpec((1, N, N), lambda b: (b, 0, 0)),
        ],
        out_specs=(
            pl.BlockSpec((1, H, N, DV), lambda b: (b, 0, 0, 0)),
            pl.BlockSpec((1, H, N, N), lambda b: (b, 0, 0, 0)),
        ),
        compiler_params=pltpu.CompilerParams(
            dimension_semantics=("parallel",)),   # v7x: split batch over 2 TCs
    )(q, k, v, rels, mask)


def _bilstm_pallas(maskT, xpf, xpb, whhf, bhhf, whhb, bhhb):
    T, B2, H4 = xpf.shape
    H = H4 // 4
    f3 = lambda i: (0, 0, 0)
    f2 = lambda i: (0, 0)
    return pl.pallas_call(
        _bilstm_kernel,
        out_shape=(jax.ShapeDtypeStruct((T, B2, H), jnp.float32),
                   jax.ShapeDtypeStruct((T, B2, H), jnp.float32)),
        grid=(1,),
        in_specs=[
            pl.BlockSpec((T, B2, 1), f3),
            pl.BlockSpec((T, B2, H4), f3),
            pl.BlockSpec((T, B2, H4), f3),
            pl.BlockSpec((H, H4), f2),
            pl.BlockSpec((1, H4), f2),
            pl.BlockSpec((H, H4), f2),
            pl.BlockSpec((1, H4), f2),
        ],
        out_specs=(
            pl.BlockSpec((T, B2, H), f3),
            pl.BlockSpec((T, B2, H), f3),
        ),
        scratch_shapes=[pltpu.VMEM((B2, H), jnp.float32) for _ in range(4)],
        compiler_params=pltpu.CompilerParams(
            dimension_semantics=("arbitrary",),
            # bf16 whh (2 x 8 MiB) + small activations; fits v7x's 64 MiB VMEM.
            vmem_limit_bytes=48 * 1024 * 1024,
        ),
    )(maskT, xpf, xpb, whhf, bhhf, whhb, bhhb)


# --------------------------------------------------------------------------
# Jitted sub-graphs composed from the Pallas kernels
# --------------------------------------------------------------------------
@jax.jit
def _bert_core(params, input_ids, token_type_ids, position_ids):
    # TODO(synk): BertModel.from_pretrained (pretrained transformer) has no
    # clean in-script equivalent; replaced by a deterministic synthetic
    # embedding + fused Pallas projection/tanh/layernorm producing [B,S,1024].
    B, S = input_ids.shape
    emb = (params["word_emb"][input_ids]
           + params["pos_emb"][position_ids]
           + params["type_emb"][token_type_ids])
    h = pallas_linear_tanh_ln(emb.reshape(B * S, HIDDEN), params["bert_w"],
                              params["bert_b"], params["bert_ln_g"],
                              params["bert_ln_b"])
    return h.reshape(B, S, HIDDEN)


@jax.jit
def _bilstm_core(lp, x, lens):
    """Bidirectional single-layer LSTM, packed-sequence semantics (outputs past
    each sequence length are zero).  Both input projections run as ONE Pallas
    matmul; the whole recurrence runs in ONE Pallas kernel with the recurrent
    weights resident in VMEM."""
    B, T, D = x.shape
    H = D
    xp = pallas_linear(x.reshape(B * T, D), lp["wih"], lp["bih"])  # (B*T, 8H)
    xpf = xp[:, :4 * H].reshape(B, T, 4 * H).transpose(1, 0, 2)    # (T, B, 4H)
    xpb = xp[:, 4 * H:].reshape(B, T, 4 * H).transpose(1, 0, 2)
    maskT = (jnp.arange(T)[:, None] < lens[None, :]).astype(jnp.float32)[:, :, None]
    of, ob = _bilstm_pallas(maskT, xpf, xpb,
                            lp["whh_fw"], lp["bhh_fw"].reshape(1, 4 * H),
                            lp["whh_bw"], lp["bhh_bw"].reshape(1, 4 * H))
    return jnp.concatenate([of, ob], axis=-1).transpose(1, 0, 2)   # (B, T, 2H)


@functools.partial(jax.jit, static_argnames=("flag",))
def _encoder_stack(params, graph, adj, graph_mask, flag="three"):
    B, N, D = graph.shape

    # F.embedding(adj, edge_weight, padding_idx=0) -- forward reads row 0 as-is.
    vec_adj_k = params["edge_k"][adj]    # (B, 2, N, N, 64)  (original adjacency)
    vec_adj_v = params["edge_v"][adj]

    action_probs, entropys, rp_loss = [], [], []
    for li in range(N_LAYERS):
        w_fc, b_fc = params["fc_net"][li]
        fc_out = graph @ w_fc + b_fc                    # tiny head: plain jnp
        probs = jax.nn.softmax(fc_out, axis=-1)
        logp = jnp.log(probs)
        if flag == "three":
            action = jnp.argmax(probs, axis=-1)
        else:
            # TODO(synk): Categorical.sample (stochastic path) not reproduced; argmax.
            action = jnp.argmax(probs, axis=-1)
        ratio = jnp.mean(jnp.sum(action, axis=-1).astype(jnp.float32) / adj.shape[-1])
        rp_loss.append(1.0 + jnp.maximum(ratio - 0.6, 0.0))
        entropys.append(jnp.sum(-(probs * logp).sum(-1)))
        action_probs.append(
            jnp.take_along_axis(logp, action[..., None], axis=-1)[..., 0])

        adj = adj.at[:, 0, 0, :].set(action.astype(adj.dtype))
        adj = adj.at[:, 1, 0, :].set(action.astype(adj.dtype))

        lp = params["encoders"][li]
        # fused QKV projection, computed once and shared by both adjacency types
        qkv = pallas_linear(graph.reshape(B * N, D), lp["wqkv"], lp["bqkv"])
        q2, k2, v2 = jnp.split(qkv, 3, axis=-1)

        def heads(t2):
            return t2.reshape(B, N, N_HEAD, D_K).transpose(0, 2, 1, 3)

        q4, k4, v4 = heads(q2), heads(k2), heads(v2)
        res = graph.reshape(B * N, D)

        types = []
        for t in range(2):
            mask = ((adj[:, t] != 0) & (graph_mask[:, None, :] != 0)).astype(jnp.float32)
            # relational score (q_i . rel_k[i,j]) as an MXU dot_general in XLA
            rels = jnp.einsum("bhnd,bnmd->bhnm", q4, vec_adj_k[:, t])
            ctx, attn = pallas_graph_attention(q4, k4, v4, rels, mask)
            # relational value contribution (attn-weighted rel_v), MXU in XLA
            ctx = ctx + jnp.einsum("bhnm,bnmd->bhnd", attn, vec_adj_v[:, t])
            concat = ctx.transpose(0, 2, 1, 3).reshape(B * N, N_HEAD * D_V)
            out = pallas_linear_res_ln(concat, lp["wo"], lp["bo"], res,
                                       lp["ln_g"], lp["ln_b"])
            types.append(out.reshape(B, N, D))
        graph = (types[0] + types[1]) / 2.0

    logits = graph[:, 0] @ params["fc_w"] + params["fc_b"]
    return logits, action_probs, entropys, rp_loss


# --------------------------------------------------------------------------
# FaBERT forward
# --------------------------------------------------------------------------
def fabert_forward(params, inputs, flag="three"):
    input_ids = inputs["input_ids"]
    attention_mask = inputs["attention_mask"]
    token_type_ids = inputs["token_type_ids"]
    position_ids = inputs["position_ids"]
    adj_matrix = inputs["adj_matrix"]        # (B, 2, N, N) int
    graph_mask = inputs["graph_mask"]        # (B, N)
    start_pos = inputs["start_pos"]          # (B, P)
    end_pos = inputs["end_pos"]              # (B, P)

    B, S = input_ids.shape
    N = graph_mask.shape[1]
    D = HIDDEN

    word_output = _bert_core(params, input_ids, token_type_ids, position_ids)

    # --- host glue: gather non-padded tokens (indices are concrete) ---------
    am_np = np.asarray(attention_mask)
    max_len = int(am_np.sum(1).max())
    idx = np.zeros((B, max_len), np.int32)
    valid = np.zeros((B, max_len, 1), np.float32)
    lens = []
    for i in range(B):
        nz = np.nonzero(np.arange(S) * am_np[i])[0]   # index 0 always dropped (torch)
        L = int(nz.shape[0])
        idx[i, :L] = nz
        valid[i, :L] = 1.0
        lens.append(L)
    out_features = (jnp.take_along_axis(word_output,
                                        jnp.asarray(idx)[:, :, None], axis=1)
                    * jnp.asarray(valid))             # (B, max_len, D)

    # sort-by-length / unsort around the packed LSTM is an exact identity for a
    # batch-independent masked LSTM, so it is dropped here.
    out_features = _bilstm_core(params["lstm"], out_features,
                                jnp.asarray(np.array(lens, np.int32)))  # (B,T,2D)

    # --- build graph node features (indices are concrete) -------------------
    sp_np = np.asarray(start_pos)
    ep_np = np.asarray(end_pos)
    feats, counts = [], []
    for i in range(B):
        nzs = np.concatenate(([0], np.nonzero(sp_np[i])[0]))
        nze = np.concatenate(([0], np.nonzero(ep_np[i])[0]))
        s_idx = jnp.asarray(sp_np[i][nzs].astype(np.int32))
        e_idx = jnp.asarray(ep_np[i][nze].astype(np.int32))
        start_info = out_features[i][s_idx][:, D:]
        end_info = out_features[i][e_idx][:, :D]
        feats.append(jnp.concatenate([start_info, end_info], axis=1))
        counts.append(int(nzs.shape[0]))

    feat_all = jnp.concatenate(feats, axis=0)                       # (sumK, 2D)
    rows_all = pallas_linear(feat_all, params["fc_lstm_w"], params["fc_lstm_b"])
    graph = jnp.zeros((B, N, D), jnp.float32)
    off = 0
    for i in range(B):
        graph = graph.at[i, :counts[i]].set(rows_all[off:off + counts[i]])
        off += counts[i]

    return _encoder_stack(params, graph, adj_matrix, graph_mask, flag=flag)


# --------------------------------------------------------------------------
# Deterministic parameter / input construction
# --------------------------------------------------------------------------
def init_params(key):
    def nrm(k, shape, scale=0.02, dtype=jnp.float32):
        return (scale * jax.random.normal(k, shape, dtype=jnp.float32)).astype(dtype)

    bf16 = jnp.bfloat16
    keys = iter(jax.random.split(key, 64))
    p = {}
    p["edge_k"] = nrm(next(keys), (EDGE_VOCAB, D_K), 0.1)
    p["edge_v"] = nrm(next(keys), (EDGE_VOCAB, D_V), 0.1)

    # synthetic BERT
    p["word_emb"] = nrm(next(keys), (VOCAB, HIDDEN))
    p["pos_emb"] = nrm(next(keys), (SEQ, HIDDEN))
    p["type_emb"] = nrm(next(keys), (2, HIDDEN))
    p["bert_w"] = nrm(next(keys), (HIDDEN, HIDDEN), dtype=bf16)
    p["bert_b"] = jnp.zeros((HIDDEN,), jnp.float32)
    p["bert_ln_g"] = jnp.ones((HIDDEN,), jnp.float32)
    p["bert_ln_b"] = jnp.zeros((HIDDEN,), jnp.float32)

    # classifier heads (tiny -> plain jnp, keep f32)
    p["fc_w"] = nrm(next(keys), (HIDDEN, CLASS_NUM))
    p["fc_b"] = jnp.zeros((CLASS_NUM,), jnp.float32)
    p["fc_lstm_w"] = nrm(next(keys), (2 * HIDDEN, HIDDEN), dtype=bf16)
    p["fc_lstm_b"] = jnp.zeros((HIDDEN,), jnp.float32)

    # bidirectional LSTM (input 1024, hidden 1024); wih holds [fw | bw]
    p["lstm"] = {
        "wih": nrm(next(keys), (HIDDEN, 8 * HIDDEN), dtype=bf16),
        "bih": jnp.zeros((8 * HIDDEN,), jnp.float32),
        "whh_fw": nrm(next(keys), (HIDDEN, 4 * HIDDEN), dtype=bf16),
        "bhh_fw": jnp.zeros((4 * HIDDEN,), jnp.float32),
        "whh_bw": nrm(next(keys), (HIDDEN, 4 * HIDDEN), dtype=bf16),
        "bhh_bw": jnp.zeros((4 * HIDDEN,), jnp.float32),
    }

    # 6 graph-attention encoder layers (Q/K/V fused into one weight)
    encoders = []
    for _ in range(N_LAYERS):
        encoders.append({
            "wqkv": nrm(next(keys), (HIDDEN, 3 * N_HEAD * D_K), dtype=bf16),
            "bqkv": jnp.zeros((3 * N_HEAD * D_K,), jnp.float32),
            "wo": nrm(next(keys), (N_HEAD * D_V, HIDDEN), dtype=bf16),
            "bo": jnp.zeros((HIDDEN,), jnp.float32),
            "ln_g": jnp.ones((HIDDEN,), jnp.float32),
            "ln_b": jnp.zeros((HIDDEN,), jnp.float32),
        })
    p["encoders"] = encoders

    # fc_net.fc0 .. fc5 : Linear(hidden, 2)
    p["fc_net"] = [
        (nrm(next(keys), (HIDDEN, ACTION_DIM)), jnp.zeros((ACTION_DIM,), jnp.float32))
        for _ in range(N_LAYERS)
    ]
    return p


def make_inputs(key):
    ks = jax.random.split(key, 4)
    input_ids = jax.random.randint(ks[0], (BATCH, SEQ), 1, VOCAB, dtype=jnp.int32)
    attention_mask = jnp.array(
        [[1] * 14 + [0] * (SEQ - 14), [1] * 10 + [0] * (SEQ - 10)], dtype=jnp.int32
    )
    token_type_ids = jnp.zeros((BATCH, SEQ), dtype=jnp.int32)
    position_ids = jnp.tile(jnp.arange(SEQ, dtype=jnp.int32)[None, :], (BATCH, 1))
    adj_matrix = jax.random.randint(ks[1], (BATCH, 2, NODES, NODES), 0, 5, dtype=jnp.int32)
    graph_mask = jnp.array(
        [[1] * 6 + [0] * (NODES - 6), [1] * 5 + [0] * (NODES - 5)], dtype=jnp.int32
    )
    start_pos = jnp.array(
        [[0, 2, 3, 0, 0, 0, 0, 0], [0, 1, 2, 0, 0, 0, 0, 0]], dtype=jnp.int32
    )
    end_pos = jnp.array(
        [[0, 3, 4, 0, 0, 0, 0, 0], [0, 2, 3, 0, 0, 0, 0, 0]], dtype=jnp.int32
    )
    return {
        "input_ids": input_ids,
        "attention_mask": attention_mask,
        "token_type_ids": token_type_ids,
        "position_ids": position_ids,
        "adj_matrix": adj_matrix,
        "graph_mask": graph_mask,
        "start_pos": start_pos,
        "end_pos": end_pos,
        # bert_words / bert_maps / word_masks are unused by forward (placeholders)
        "bert_words": jnp.zeros((BATCH, SEQ), jnp.int32),
        "bert_maps": jnp.zeros((BATCH, SEQ), jnp.int32),
        "word_masks": jnp.ones((BATCH, SEQ), jnp.int32),
    }


if __name__ == "__main__":
    root = jax.random.PRNGKey(0)
    pkey, ikey = jax.random.split(root)
    params = init_params(pkey)
    inputs = make_inputs(ikey)

    logits, action_probs, entropys, rp_loss = fabert_forward(params, inputs, flag="three")

    jax.block_until_ready(logits)
    jax.block_until_ready(action_probs)
    jax.block_until_ready(entropys)
    jax.block_until_ready(rp_loss)

    assert logits.shape == (BATCH, CLASS_NUM)
    assert len(action_probs) == N_LAYERS and action_probs[0].shape == (BATCH, NODES)
    assert len(entropys) == N_LAYERS and len(rp_loss) == N_LAYERS
    assert bool(jnp.all(jnp.isfinite(logits)))
    print("KERNEL_OK")
</pallas_src>

<mosaic_0001>
module attributes {stable_mosaic.version = 11 : i64} {
  func.func @_linear_tanh_ln_kernel(%arg0: i32, %arg1: memref<32x1024xf32, #tpu.memory_space<vmem>>, %arg2: memref<1024x1024xbf16, #tpu.memory_space<vmem>>, %arg3: memref<1x1024xf32, #tpu.memory_space<vmem>>, %arg4: memref<1x1024xf32, #tpu.memory_space<vmem>>, %arg5: memref<1x1024xf32, #tpu.memory_space<vmem>>, %arg6: memref<32x1024xf32, #tpu.memory_space<vmem>>) attributes {dimension_semantics = [#tpu.dimension_semantics<arbitrary>], iteration_bounds = array<i64: 1>, scalar_prefetch = 0 : i64, scratch_operands = 0 : i64, tpu.core_type = #tpu.core_type<tc>, window_params = [{pipeline_mode = #tpu.pipeline_mode<synchronous>, transform_indices = @transform_0, window_bounds = array<i64: 32, 1024>}, {pipeline_mode = #tpu.pipeline_mode<synchronous>, transform_indices = @transform_1, window_bounds = array<i64: 1024, 1024>}, {pipeline_mode = #tpu.pipeline_mode<synchronous>, transform_indices = @transform_2, window_bounds = array<i64: 1, 1024>}, {pipeline_mode = #tpu.pipeline_mode<synchronous>, transform_indices = @transform_3, window_bounds = array<i64: 1, 1024>}, {pipeline_mode = #tpu.pipeline_mode<synchronous>, transform_indices = @transform_4, window_bounds = array<i64: 1, 1024>}, {pipeline_mode = #tpu.pipeline_mode<synchronous>, transform_indices = @transform_5, window_bounds = array<i64: 32, 1024>}]} {
    %c0 = arith.constant 0 : index
    %c0_0 = arith.constant 0 : index
    %0 = vector.load %arg1[%c0, %c0_0] : memref<32x1024xf32, #tpu.memory_space<vmem>>, vector<32x1024xf32>
    %1 = arith.truncf %0 : vector<32x1024xf32> to vector<32x1024xbf16>
    %c0_1 = arith.constant 0 : index
    %c0_2 = arith.constant 0 : index
    %2 = vector.load %arg2[%c0_1, %c0_2] : memref<1024x1024xbf16, #tpu.memory_space<vmem>>, vector<1024x1024xbf16>
    %cst = arith.constant dense<0.000000e+00> : vector<32x1024xf32>
    %3 = tpu.matmul %1, %2, %cst {dimension_numbers = #tpu.dot_dimension_numbers<[1], [0], [0], [1], [0, 0, 1, 1], [], []>} : vector<32x1024xbf16>, vector<1024x1024xbf16>, vector<32x1024xf32> -> vector<32x1024xf32>
    %c0_3 = arith.constant 0 : index
    %c0_4 = arith.constant 0 : index
    %4 = vector.load %arg3[%c0_3, %c0_4] : memref<1x1024xf32, #tpu.memory_space<vmem>>, vector<1x1024xf32>
    %5 = vector.broadcast %4 : vector<1x1024xf32> to vector<32x1024xf32>
    %6 = arith.addf %3, %5 : vector<32x1024xf32>
    %7 = math.tanh %6 : vector<32x1024xf32>
    %c0_5 = arith.constant 0 : index
    %c0_6 = arith.constant 0 : index
    %8 = vector.load %arg4[%c0_5, %c0_6] : memref<1x1024xf32, #tpu.memory_space<vmem>>, vector<1x1024xf32>
    %c0_7 = arith.constant 0 : index
    %c0_8 = arith.constant 0 : index
    %9 = vector.load %arg5[%c0_7, %c0_8] : memref<1x1024xf32, #tpu.memory_space<vmem>>, vector<1x1024xf32>
    %cst_9 = arith.constant dense<0.000000e+00> : vector<32xf32>
    %10 = vector.multi_reduction <add>, %7, %cst_9 [1] : vector<32x1024xf32> to vector<32xf32>
    %11 = vector.shape_cast %10 : vector<32xf32> to vector<32x1xf32>
    %cst_10 = arith.constant 1.024000e+03 : f32
    %12 = vector.broadcast %cst_10 : f32 to vector<32x1xf32>
    %13 = arith.divf %11, %12 : vector<32x1xf32>
    %14 = vector.broadcast %13 : vector<32x1xf32> to vector<32x1024xf32>
    %15 = arith.subf %7, %14 : vector<32x1024xf32>
    %16 = arith.mulf %15, %15 : vector<32x1024xf32>
    %cst_11 = arith.constant dense<0.000000e+00> : vector<32xf32>
    %17 = vector.multi_reduction <add>, %16, %cst_11 [1] : vector<32x1024xf32> to vector<32xf32>
    %18 = vector.shape_cast %17 : vector<32xf32> to vector<32x1xf32>
    %cst_12 = arith.constant 1.024000e+03 : f32
    %19 = vector.broadcast %cst_12 : f32 to vector<32x1xf32>
    %20 = arith.divf %18, %19 : vector<32x1xf32>
    %21 = vector.broadcast %13 : vector<32x1xf32> to vector<32x1024xf32>
    %22 = arith.subf %7, %21 : vector<32x1024xf32>
    %cst_13 = arith.constant 9.99999974E-6 : f32
    %23 = vector.broadcast %cst_13 : f32 to vector<32x1xf32>
    %24 = arith.addf %20, %23 : vector<32x1xf32>
    %25 = math.rsqrt %24 : vector<32x1xf32>
    %26 = vector.broadcast %25 : vector<32x1xf32> to vector<32x1024xf32>
    %27 = arith.mulf %22, %26 : vector<32x1024xf32>
    %28 = vector.broadcast %8 : vector<1x1024xf32> to vector<32x1024xf32>
    %29 = arith.mulf %27, %28 : vector<32x1024xf32>
    %30 = vector.broadcast %9 : vector<1x1024xf32> to vector<32x1024xf32>
    %31 = arith.addf %29, %30 : vector<32x1024xf32>
    %c0_14 = arith.constant 0 : index
    %c0_15 = arith.constant 0 : index
    %32 = vector.load %arg6[%c0_14, %c0_15] : memref<32x1024xf32, #tpu.memory_space<vmem>>, vector<32x1024xf32>
    tpu.vector_store %arg6[%c0_14, %c0_15], %31 {strides = array<i32>} : memref<32x1024xf32, #tpu.memory_space<vmem>>, vector<32x1024xf32>,
    return
  }
  func.func @transform_0(%arg0: i32) -> (i32, i32) {
    %c0_i32 = arith.constant 0 : i32
    %c0_i32_0 = arith.constant 0 : i32
    %c0_i32_1 = arith.constant 0 : i32
    return %c0_i32, %c0_i32_0 : i32, i32
  }
  func.func @transform_1(%arg0: i32) -> (i32, i32) {
    %c0_i32 = arith.constant 0 : i32
    %c0_i32_0 = arith.constant 0 : i32
    %c0_i32_1 = arith.constant 0 : i32
    return %c0_i32, %c0_i32_0 : i32, i32
  }
  func.func @transform_2(%arg0: i32) -> (i32, i32) {
    %c0_i32 = arith.constant 0 : i32
    %c0_i32_0 = arith.constant 0 : i32
    %c0_i32_1 = arith.constant 0 : i32
    return %c0_i32, %c0_i32_0 : i32, i32
  }
  func.func @transform_3(%arg0: i32) -> (i32, i32) {
    %c0_i32 = arith.constant 0 : i32
    %c0_i32_0 = arith.constant 0 : i32
    %c0_i32_1 = arith.constant 0 : i32
    return %c0_i32, %c0_i32_0 : i32, i32
  }
  func.func @transform_4(%arg0: i32) -> (i32, i32) {
    %c0_i32 = arith.constant 0 : i32
    %c0_i32_0 = arith.constant 0 : i32
    %c0_i32_1 = arith.constant 0 : i32
    return %c0_i32, %c0_i32_0 : i32, i32
  }
  func.func @transform_5(%arg0: i32) -> (i32, i32) {
    %c0_i32 = arith.constant 0 : i32
    %c0_i32_0 = arith.constant 0 : i32
    %c0_i32_1 = arith.constant 0 : i32
    return %c0_i32, %c0_i32_0 : i32, i32
  }
}

</mosaic_0001>

<bundles_post_ra>
// kernel: pallas_linear_tanh_ln.1
= control target key start
LH: loop header
LB: loop body
LE: loop exit
PB: predicated region body
PF: predicated region fallthrough
CT: control target
= control target key end

     0   :  { %10 = vsyncpa [#allocation3], 0  ;;  %s6063_s0 = inlined_call_operand.hbm [shape: f32[32,1024], index: 0, kind: input, shape index: {}]   ;;  %s6064_s1 = inlined_call_operand.hbm [shape: bf16[1024,1024], index: 1, kind: input, shape index: {}]   ;;  %s6065_s2 = inlined_call_operand.hbm [shape: f32[1,1024], index: 2, kind: input, shape index: {}]   ;;  %s6066_s3 = inlined_call_operand.hbm [shape: f32[1,1024], index: 3, kind: input, shape index: {}]   ;;  %s6067_s4 = inlined_call_operand.hbm [shape: f32[1,1024], index: 4, kind: input, shape index: {}]   ;;  %s6068_s5 = inlined_call_operand.hbm [shape: f32[32,1024], index: 5, kind: output, shape index: {}]  }
   0x1   :  { %11 = vsyncpa [#allocation6], 0 }
   0x2   :  { %12 = vsyncpa [#allocation9], 0 }
   0x3   :  { %13 = vsyncpa [#allocation4], 0  ;;  %s5371_s18 = smov [#allocation5]   ;;  %s5231_s22 = scalar_lea.hbm %s6064_s1, 65536 }
   0x4   :  { %s31_s19 = sshll.u32 %s5371_s18, 4  ;;  %p5232_p0 = scmp.ne.s32.totalorder %s6064_s1, %s5231_s22  ;;  %s32_s19 = int_to_ptr.vmem [resolvable:$true] %s31_s19 }
   0x5   :  { %p5235_p1 = scmp.lt.u32.totalorder %s5231_s22, %s6064_s1 }
   0x7   :  { %p5237_p2 = pnand %p5235_p1, %p5232_p0 }
   0x9   :  { %5240 = shalt.err (!%p5237_p2)
}
   0xa   :  { %s5241_s27 = scalar_lea.vmem %s32_s19, 65536  ;;  %p5246_p4 = scmp.lt.s32.totalorder %s32_s19, %s32_s19 }
   0xb   :  { %p5242_p3 = scmp.ne.s32.totalorder %s32_s19, %s5241_s27  ;;  %p5247_p5 = scmp.lt.s32.totalorder %s5241_s27, %s5241_s27 }
   0xd   :  { %p5248_p6 = por %p5247_p5, %p5246_p4 }
   0xf   :  { %p5249_p7 = pnand %p5248_p6, %p5242_p3 }
  0x11   :  { %5252 = shalt.err (!%p5249_p7)
}
  0x12   :  { %s5372_s28 = smov 512   ;;  %s5373_s29 = smov 32  }
  0x13   :  { %37 = dma.hbm_to_vmem [thread:$0]  %s6064_s1, 65536, %s32_s19, [#allocation6], %s5372_s28, %s5372_s28, %s5373_s29  }
  0x14   :  { %s5374_s7 = smov [#allocation8]   ;;  %s5375_s9 = smov [#allocation2]  }
  0x15   :  { %s54_s8 = sshll.u32 %s5374_s7, 4  ;;  %s19_s10 = sshll.u32 %s5375_s9, 4  ;;  %s55_s8 = int_to_ptr.vmem [resolvable:$true] %s54_s8  ;;  %s20_s10 = int_to_ptr.vmem [resolvable:$true] %s19_s10 }
  0x16   :  { %s5253_s13 = scalar_lea.hbm %s6066_s3, 128 }
  0x17   :  { %p5254_p8 = scmp.ne.s32.totalorder %s6066_s3, %s5253_s13  ;;  %p5257_p9 = scmp.lt.u32.totalorder %s5253_s13, %s6066_s3 }
  0x19   :  { %p5259_p10 = pnand %p5257_p9, %p5254_p8 }
  0x1b   :  { %5262 = shalt.err (!%p5259_p10)
}
  0x1c   :  { %s5263_s1 = scalar_lea.vmem %s55_s8, 128  ;;  %p5268_p12 = scmp.lt.s32.totalorder %s55_s8, %s55_s8 }
  0x1d   :  { %p5264_p11 = scmp.ne.s32.totalorder %s55_s8, %s5263_s1  ;;  %p5269_p13 = scmp.lt.s32.totalorder %s5263_s1, %s5263_s1 }
  0x1f   :  { %p5270_p0 = por %p5269_p13, %p5268_p12 }
  0x21   :  { %p5271_p1 = pnand %p5270_p0, %p5264_p11 }
  0x23   :  { %5274 = shalt.err (!%p5271_p1)
}
  0x24   :  { %57 = dma.hbm_to_vmem [thread:$0]  %s6066_s3, 128, %s55_s8, [#allocation9]  }
  0x25   :  { %s5275_s22 = scalar_lea.hbm %s6063_s0, 4096 }
  0x26   :  { %p5276_p2 = scmp.ne.s32.totalorder %s6063_s0, %s5275_s22  ;;  %p5279_p3 = scmp.lt.u32.totalorder %s5275_s22, %s6063_s0 }
  0x28   :  { %p5281_p4 = pnand %p5279_p3, %p5276_p2 }
  0x2a   :  { %5284 = shalt.err (!%p5281_p4)
}
  0x2b   :  { %s5285_s27 = scalar_lea.vmem %s20_s10, 4096  ;;  %p5290_p6 = scmp.lt.s32.totalorder %s20_s10, %s20_s10 }
  0x2c   :  { %p5286_p5 = scmp.ne.s32.totalorder %s20_s10, %s5285_s27  ;;  %p5291_p7 = scmp.lt.s32.totalorder %s5285_s27, %s5285_s27 }
  0x2e   :  { %p5292_p8 = por %p5291_p7, %p5290_p6 }
  0x30   :  { %p5293_p9 = pnand %p5292_p8, %p5286_p5 }
  0x32   :  { %5296 = shalt.err (!%p5293_p9)
}
  0x33   :  { %s5376_s3 = smov 1024   ;;  %s5377_s28 = smov 64  }
  0x34   :  { %25 = dma.hbm_to_vmem [thread:$0]  %s6063_s0, 4096, %s20_s10, [#allocation3], %s5376_s3, %s5376_s3, %s5377_s28  }
  0x35   :  { %s5378_s6 = smov [#allocation7]   ;;  %s5379_s8 = smov [#allocation10]  }
  0x36   :  { %s44_s7 = sshll.u32 %s5378_s6, 4  ;;  %s64_s9 = sshll.u32 %s5379_s8, 4  ;;  %s45_s7 = int_to_ptr.vmem [resolvable:$true] %s44_s7  ;;  %s65_s9 = int_to_ptr.vmem [resolvable:$true] %s64_s9 }
  0x37   :  { %s5297_s13 = scalar_lea.hbm %s6065_s2, 128 }
  0x38   :  { %p5298_p10 = scmp.ne.s32.totalorder %s6065_s2, %s5297_s13  ;;  %p5301_p11 = scmp.lt.u32.totalorder %s5297_s13, %s6065_s2 }
  0x3a   :  { %p5303_p12 = pnand %p5301_p11, %p5298_p10 }
  0x3c   :  { %5306 = shalt.err (!%p5303_p12)
}
  0x3d   :  { %s5307_s0 = scalar_lea.vmem %s45_s7, 128  ;;  %p5312_p0 = scmp.lt.s32.totalorder %s45_s7, %s45_s7 }
  0x3e   :  { %p5308_p13 = scmp.ne.s32.totalorder %s45_s7, %s5307_s0  ;;  %p5313_p1 = scmp.lt.s32.totalorder %s5307_s0, %s5307_s0 }
  0x40   :  { %p5314_p2 = por %p5313_p1, %p5312_p0 }
  0x42   :  { %p5315_p3 = pnand %p5314_p2, %p5308_p13 }
  0x44   :  { %5318 = shalt.err (!%p5315_p3)
}
  0x45   :  { %47 = dma.hbm_to_vmem [thread:$0]  %s6065_s2, 128, %s45_s7, [#allocation6]  }
  0x46   :  { %s5319_s20 = scalar_lea.hbm %s6067_s4, 128 }
  0x47   :  { %p5320_p4 = scmp.ne.s32.totalorder %s6067_s4, %s5319_s20  ;;  %p5323_p5 = scmp.lt.u32.totalorder %s5319_s20, %s6067_s4 }
  0x49   :  { %p5325_p6 = pnand %p5323_p5, %p5320_p4 }
  0x4b   :  { %5328 = shalt.err (!%p5325_p6)
}
  0x4c   :  { %s5329_s25 = scalar_lea.vmem %s65_s9, 128  ;;  %p5334_p8 = scmp.lt.s32.totalorder %s65_s9, %s65_s9 }
  0x4d   :  { %p5330_p7 = scmp.ne.s32.totalorder %s65_s9, %s5329_s25  ;;  %p5335_p9 = scmp.lt.s32.totalorder %s5329_s25, %s5329_s25 }
  0x4f   :  { %p5336_p10 = por %p5335_p9, %p5334_p8 }
  0x51   :  { %p5337_p11 = pnand %p5336_p10, %p5330_p7 }
  0x53   :  { %5340 = shalt.err (!%p5337_p11)
}
  0x54   :  { %67 = dma.hbm_to_vmem [thread:$0]  %s6067_s4, 128, %s65_s9, [#allocation9]  }
  0x55   :  { %5363 = dma.done.wait [#allocation3], 4096  }
  0x56   :  { %5364 = vsyncadd [#allocation3], 4294963200 }
  0x57   :  { %5365 = dma.done.wait [#allocation6], 65664  }
  0x58   :  { %5366 = vsyncadd [#allocation6], 4294901632 }
  0x59   :  { %5367 = dma.done.wait [#allocation9], 256  }
  0x5a   :  { %5368 = vsyncadd [#allocation9], 4294967040  ;;  %v131_v0 = vld [vmem:[#allocation5] sm:$0xff]  ;;  %v132_v2 = vld [vmem:[#allocation5 + $0x8] sm:$0xff]  ;;  %s5380_s4 = smov [#allocation11]  }
  0x5b   :  { %v135_v1 = vld [vmem:[#allocation5 + $0x20] sm:$0xff]  ;;  %v136_v4 = vld [vmem:[#allocation5 + $0x28] sm:$0xff]  ;;  %s4495_s27 = sshll.u32 %s5380_s4, 4  ;;  %s4496_s27 = int_to_ptr.vmem [resolvable:$true] %s4495_s27 }
  0x5c   :  { %v4510_v3 = vcombine.high %v131_v0, %v135_v1  ;;  %v4509_v5 = vcombine.low %v131_v0, %v135_v1  ;;  %v139_v6 = vld [vmem:[#allocation5 + $0x40] sm:$0xff]  ;;  %v4512_v8 = vcombine.high %v132_v2, %v136_v4  ;;  %v4511_v9 = vcombine.low %v132_v2, %v136_v4  ;;  %v140_v11 = vld [vmem:[#allocation5 + $0x48] sm:$0xff]  ;;  %s5341_s29 = scalar_lea.vmem %s4496_s27, 4096  ;;  %p5346_p13 = scmp.lt.s32.totalorder %s4496_s27, %s4496_s27 }
  0x5d   :  { %v143_v7 = vld [vmem:[#allocation5 + $0x60] sm:$0xff]  ;;  %v144_v12 = vld [vmem:[#allocation5 + $0x68] sm:$0xff]  ;;  %p5342_p12 = scmp.ne.s32.totalorder %s4496_s27, %s5341_s29  ;;  %p5347_p0 = scmp.lt.s32.totalorder %s5341_s29, %s5341_s29 }
  0x5e   :  { %v4518_v10 = vcombine.high %v139_v6, %v143_v7  ;;  %v147_v13 = vld [vmem:[#allocation5 + $0x80] sm:$0xff]  ;;  %3245 = vmatprep.subr.bf16.mxu0 %v4510_v3  ;;  %v4520_v14 = vcombine.high %v140_v11, %v144_v12  ;;  %v148_v16 = vld [vmem:[#allocation5 + $0x88] sm:$0xff]  ;;  %3457 = vmatprep.subr.bf16.mxu1 %v4512_v8  ;;  %v4517_v18 = vcombine.low %v139_v6, %v143_v7 }
  0x5f   :  { %v151_v15 = vld [vmem:[#allocation5 + $0xa0] sm:$0xff]  ;;  %v152_v17 = vld [vmem:[#allocation5 + $0xa8] sm:$0xff]  ;;  %3246 = vmatpush1.bf16.msra.mxu0 %v4509_v5  ;;  %3458 = vmatpush1.bf16.msra.mxu1 %v4511_v9  ;;  %v4519_v19 = vcombine.low %v140_v11, %v144_v12  ;;  %p5348_p1 = por %p5347_p0, %p5346_p13 }
  0x60   :  { %3247 = vmatprep.subr.bf16.mxu0 %v4518_v10  ;;  %v4526_v20 = vcombine.high %v147_v13, %v151_v15  ;;  %3459 = vmatprep.subr.bf16.mxu1 %v4520_v14  ;;  %v4528_v21 = vcombine.high %v148_v16, %v152_v17  ;;  %v155_v22 = vld [vmem:[#allocation5 + $0xc0] sm:$0xff]  ;;  %v156_v24 = vld [vmem:[#allocation5 + $0xc8] sm:$0xff]  ;;  %v4525_v26 = vcombine.low %v147_v13, %v151_v15 }
  0x61   :  { %v159_v23 = vld [vmem:[#allocation5 + $0xe0] sm:$0xff]  ;;  %v160_v25 = vld [vmem:[#allocation5 + $0xe8] sm:$0xff]  ;;  %v4527_v27 = vcombine.low %v148_v16, %v152_v17  ;;  %p5349_p2 = pnand %p5348_p1, %p5342_p12 }
  0x62   :  { %v4534_v28 = vcombine.high %v155_v22, %v159_v23  ;;  %v4536_v29 = vcombine.high %v156_v24, %v160_v25  ;;  %v163_v30 = vld [vmem:[#allocation5 + $0x100] sm:$0xff]  ;;  %v164_v32 = vld [vmem:[#allocation5 + $0x108] sm:$0xff]  ;;  %v4533_v34 = vcombine.low %v155_v22, %v159_v23  ;;  %v4535_v35 = vcombine.low %v156_v24, %v160_v25 }
  0x63   :  { %3248 = vmatpush1.bf16.msra.mxu0 %v4517_v18  ;;  %3460 = vmatpush1.bf16.msra.mxu1 %v4519_v19  ;;  %v167_v31 = vld [vmem:[#allocation5 + $0x120] sm:$0xff]  ;;  %v168_v33 = vld [vmem:[#allocation5 + $0x128] sm:$0xff] }
  0x64   :  { %3249 = vmatprep.subr.bf16.mxu0 %v4526_v20  ;;  %3461 = vmatprep.subr.bf16.mxu1 %v4528_v21  ;;  %v4542_v36 = vcombine.high %v163_v30, %v167_v31  ;;  %v4544_v37 = vcombine.high %v164_v32, %v168_v33  ;;  %v171_v38 = vld [vmem:[#allocation5 + $0x140] sm:$0xff]  ;;  %v172_v40 = vld [vmem:[#allocation5 + $0x148] sm:$0xff]  ;;  %v4541_v42 = vcombine.low %v163_v30, %v167_v31 }
  0x65   :  { %v175_v39 = vld [vmem:[#allocation5 + $0x160] sm:$0xff]  ;;  %v176_v41 = vld [vmem:[#allocation5 + $0x168] sm:$0xff]  ;;  %v4543_v43 = vcombine.low %v164_v32, %v168_v33 }
  0x66   :  { %v4550_v44 = vcombine.high %v171_v38, %v175_v39  ;;  %v4552_v45 = vcombine.high %v172_v40, %v176_v41  ;;  %v179_v46 = vld [vmem:[#allocation5 + $0x180] sm:$0xff]  ;;  %v180_v48 = vld [vmem:[#allocation5 + $0x188] sm:$0xff]  ;;  %v4549_v50 = vcombine.low %v171_v38, %v175_v39  ;;  %v4551_v51 = vcombine.low %v172_v40, %v176_v41 }
  0x67   :  { %3250 = vmatpush1.bf16.msra.mxu0 %v4525_v26  ;;  %3462 = vmatpush1.bf16.msra.mxu1 %v4527_v27  ;;  %v183_v47 = vld [vmem:[#allocation5 + $0x1a0] sm:$0xff]  ;;  %v184_v49 = vld [vmem:[#allocation5 + $0x1a8] sm:$0xff] }
  0x68   :  { %3251 = vmatprep.subr.bf16.mxu0 %v4534_v28  ;;  %3463 = vmatprep.subr.bf16.mxu1 %v4536_v29  ;;  %v4558_v52 = vcombine.high %v179_v46, %v183_v47  ;;  %v84_v53 = vld [vmem:[#allocation2 + $0x8] sm:$0xff]  ;;  %v4560_v55 = vcombine.high %v180_v48, %v184_v49  ;;  %v187_v56 = vld [vmem:[#allocation5 + $0x1c0] sm:$0xff]  ;;  %v4557_v61 = vcombine.low %v179_v46, %v183_v47 }
  0x69   :  { %v92_v54 = vld [vmem:[#allocation2 + $0x48] sm:$0xff]  ;;  %v191_v57 = vld [vmem:[#allocation5 + $0x1e0] sm:$0xff]  ;;  %v4559_v62 = vcombine.low %v180_v48, %v184_v49 }
  0x6a   :  { %v5474_v58 = vpack.c.bf16 %v92_v54, %v84_v53  ;;  %v188_v59 = vld [vmem:[#allocation5 + $0x1c8] sm:$0xff]  ;;  %v4566_v63 = vcombine.high %v187_v56, %v191_v57  ;;  %v195_v1 = vld [vmem:[#allocation5 + $0x200] sm:$0xff]  ;;  %v4565_v5 = vcombine.low %v187_v56, %v191_v57 }
  0x6b   :  { %3252 = vmatpush1.bf16.msra.mxu0 %v4533_v34  ;;  %3464 = vmatpush1.bf16.msra.mxu1 %v4535_v35  ;;  %v192_v60 = vld [vmem:[#allocation5 + $0x1e8] sm:$0xff]  ;;  %v199_v2 = vld [vmem:[#allocation5 + $0x220] sm:$0xff] }
  0x6c   :  { %3253 = vmatprep.subr.bf16.mxu0 %v4542_v36  ;;  %3465 = vmatprep.subr.bf16.mxu1 %v4544_v37  ;;  %v4568_v0 = vcombine.high %v188_v59, %v192_v60  ;;  %v196_v3 = vld [vmem:[#allocation5 + $0x208] sm:$0xff]  ;;  %v4567_v6 = vcombine.low %v188_v59, %v192_v60  ;;  %v4574_v7 = vcombine.high %v195_v1, %v199_v2  ;;  %v203_v9 = vld [vmem:[#allocation5 + $0x240] sm:$0xff] }
  0x6d   :  { %3277 = vmatprep.mubr.bf16.mxu0 %v5474_v58  ;;  %3489 = vmatprep.mubr.bf16.mxu1 %v5474_v58  ;;  %v200_v4 = vld [vmem:[#allocation5 + $0x228] sm:$0xff]  ;;  %v207_v10 = vld [vmem:[#allocation5 + $0x260] sm:$0xff]  ;;  %v4573_v13 = vcombine.low %v195_v1, %v199_v2 }
  0x6e   :  { %v4576_v8 = vcombine.high %v196_v3, %v200_v4  ;;  %v204_v11 = vld [vmem:[#allocation5 + $0x248] sm:$0xff]  ;;  %v4575_v14 = vcombine.low %v196_v3, %v200_v4  ;;  %v4582_v15 = vcombine.high %v203_v9, %v207_v10  ;;  %v211_v17 = vld [vmem:[#allocation5 + $0x280] sm:$0xff]  ;;  %v4581_v21 = vcombine.low %v203_v9, %v207_v10 }
  0x6f   :  { %3254 = vmatpush1.bf16.msra.mxu0 %v4541_v42  ;;  %3466 = vmatpush1.bf16.msra.mxu1 %v4543_v43  ;;  %v208_v12 = vld [vmem:[#allocation5 + $0x268] sm:$0xff]  ;;  %v215_v18 = vld [vmem:[#allocation5 + $0x2a0] sm:$0xff] }
  0x70   :  { %3255 = vmatprep.subr.bf16.mxu0 %v4550_v44  ;;  %3467 = vmatprep.subr.bf16.mxu1 %v4552_v45  ;;  %v4584_v16 = vcombine.high %v204_v11, %v208_v12  ;;  %v212_v19 = vld [vmem:[#allocation5 + $0x288] sm:$0xff]  ;;  %v4583_v22 = vcombine.low %v204_v11, %v208_v12  ;;  %v4590_v23 = vcombine.high %v211_v17, %v215_v18  ;;  %v219_v25 = vld [vmem:[#allocation5 + $0x2c0] sm:$0xff] }
  0x71   :  { %v216_v20 = vld [vmem:[#allocation5 + $0x2a8] sm:$0xff]  ;;  %v223_v26 = vld [vmem:[#allocation5 + $0x2e0] sm:$0xff]  ;;  %v4589_v29 = vcombine.low %v211_v17, %v215_v18 }
  0x72   :  { %v4592_v24 = vcombine.high %v212_v19, %v216_v20  ;;  %v220_v27 = vld [vmem:[#allocation5 + $0x2c8] sm:$0xff]  ;;  %v4591_v30 = vcombine.low %v212_v19, %v216_v20  ;;  %v4598_v31 = vcombine.high %v219_v25, %v223_v26  ;;  %v227_v33 = vld [vmem:[#allocation5 + $0x300] sm:$0xff]  ;;  %v4597_v37 = vcombine.low %v219_v25, %v223_v26 }
  0x73   :  { %3256 = vmatpush1.bf16.msra.mxu0 %v4549_v50  ;;  %3468 = vmatpush1.bf16.msra.mxu1 %v4551_v51  ;;  %v224_v28 = vld [vmem:[#allocation5 + $0x2e8] sm:$0xff]  ;;  %v231_v34 = vld [vmem:[#allocation5 + $0x320] sm:$0xff] }
  0x74   :  { %3257 = vmatprep.subr.bf16.mxu0 %v4558_v52  ;;  %3469 = vmatprep.subr.bf16.mxu1 %v4560_v55  ;;  %v4600_v32 = vcombine.high %v220_v27, %v224_v28  ;;  %v228_v35 = vld [vmem:[#allocation5 + $0x308] sm:$0xff]  ;;  %v4599_v38 = vcombine.low %v220_v27, %v224_v28  ;;  %v4606_v39 = vcombine.high %v227_v33, %v231_v34  ;;  %v235_v41 = vld [vmem:[#allocation5 + $0x340] sm:$0xff] }
  0x75   :  { %v232_v36 = vld [vmem:[#allocation5 + $0x328] sm:$0xff]  ;;  %v239_v42 = vld [vmem:[#allocation5 + $0x360] sm:$0xff]  ;;  %v4605_v45 = vcombine.low %v227_v33, %v231_v34 }
  0x76   :  { %v4608_v40 = vcombine.high %v228_v35, %v232_v36  ;;  %v236_v43 = vld [vmem:[#allocation5 + $0x348] sm:$0xff]  ;;  %v4607_v46 = vcombine.low %v228_v35, %v232_v36  ;;  %v4614_v47 = vcombine.high %v235_v41, %v239_v42  ;;  %v243_v49 = vld [vmem:[#allocation5 + $0x380] sm:$0xff]  ;;  %v4613_v53 = vcombine.low %v235_v41, %v239_v42 }
  0x77   :  { %3258 = vmatpush1.bf16.msra.mxu0 %v4557_v61  ;;  %3470 = vmatpush1.bf16.msra.mxu1 %v4559_v62  ;;  %v240_v44 = vld [vmem:[#allocation5 + $0x368] sm:$0xff]  ;;  %v247_v50 = vld [vmem:[#allocation5 + $0x3a0] sm:$0xff] }
  0x78   :  { %3259 = vmatprep.subr.bf16.mxu0 %v4566_v63  ;;  %3471 = vmatprep.subr.bf16.mxu1 %v4568_v0  ;;  %v4616_v48 = vcombine.high %v236_v43, %v240_v44  ;;  %v244_v51 = vld [vmem:[#allocation5 + $0x388] sm:$0xff]  ;;  %v4615_v54 = vcombine.low %v236_v43, %v240_v44  ;;  %v4622_v55 = vcombine.high %v243_v49, %v247_v50  ;;  %v251_v57 = vld [vmem:[#allocation5 + $0x3c0] sm:$0xff] }
  0x79   :  { %v248_v52 = vld [vmem:[#allocation5 + $0x3a8] sm:$0xff]  ;;  %v255_v59 = vld [vmem:[#allocation5 + $0x3e0] sm:$0xff]  ;;  %v4621_v62 = vcombine.low %v243_v49, %v247_v50 }
  0x7a   :  { %v4624_v56 = vcombine.high %v244_v51, %v248_v52  ;;  %v252_v60 = vld [vmem:[#allocation5 + $0x3c8] sm:$0xff]  ;;  %v4623_v63 = vcombine.low %v244_v51, %v248_v52  ;;  %v4630_v0 = vcombine.high %v251_v57, %v255_v59  ;;  %v259_v2 = vld [vmem:[#allocation5 + $0x400] sm:$0xff] }
  0x7b   :  { %3260 = vmatpush1.bf16.msra.mxu0 %v4565_v5  ;;  %3472 = vmatpush1.bf16.msra.mxu1 %v4567_v6  ;;  %v256_v61 = vld [vmem:[#allocation5 + $0x3e8] sm:$0xff]  ;;  %v263_v3 = vld [vmem:[#allocation5 + $0x420] sm:$0xff]  ;;  %v4629_v6 = vcombine.low %v251_v57, %v255_v59 }
  0x7c   :  { %3261 = vmatprep.subr.bf16.mxu0 %v4574_v7  ;;  %3473 = vmatprep.subr.bf16.mxu1 %v4576_v8  ;;  %v4632_v1 = vcombine.high %v252_v60, %v256_v61  ;;  %v260_v4 = vld [vmem:[#allocation5 + $0x408] sm:$0xff]  ;;  %v83_v7 = vld [vmem:[#allocation2] sm:$0xff]  ;;  %v4631_v9 = vcombine.low %v252_v60, %v256_v61  ;;  %v4638_v10 = vcombine.high %v259_v2, %v263_v3 }
  0x7d   :  { %v264_v5 = vld [vmem:[#allocation5 + $0x428] sm:$0xff]  ;;  %v91_v8 = vld [vmem:[#allocation2 + $0x40] sm:$0xff]  ;;  %v4637_v19 = vcombine.low %v259_v2, %v263_v3 }
  0x7e   :  { %v4640_v11 = vcombine.high %v260_v4, %v264_v5  ;;  %v267_v12 = vld [vmem:[#allocation5 + $0x440] sm:$0xff]  ;;  %v100_v17 = vld [vmem:[#allocation2 + $0x88] sm:$0xff]  ;;  %v4639_v20 = vcombine.low %v260_v4, %v264_v5 }
  0x7f   :  { %3262 = vmatpush1.bf16.msra.mxu0 %v4573_v13  ;;  %3474 = vmatpush1.bf16.msra.mxu1 %v4575_v14  ;;  %v271_v13 = vld [vmem:[#allocation5 + $0x460] sm:$0xff]  ;;  %v268_v14 = vld [vmem:[#allocation5 + $0x448] sm:$0xff] }
  0x80   :  { %3263 = vmatprep.subr.bf16.mxu0 %v4582_v15  ;;  %3475 = vmatprep.subr.bf16.mxu1 %v4584_v16  ;;  %v5478_v15 = vpack.c.bf16 %v91_v8, %v83_v7  ;;  %v272_v16 = vld [vmem:[#allocation5 + $0x468] sm:$0xff]  ;;  %v4645_v28 = vcombine.low %v267_v12, %v271_v13  ;;  %v283_v34 = vld [vmem:[#allocation5 + $0x4c0] sm:$0xff] }
  0x81   :  { %v108_v18 = vld [vmem:[#allocation2 + $0xc8] sm:$0xff]  ;;  %v287_v35 = vld [vmem:[#allocation5 + $0x4e0] sm:$0xff] }
  0x82   :  { %v5480_v25 = vpack.c.bf16 %v108_v18, %v100_v17  ;;  %v276_v26 = vld [vmem:[#allocation5 + $0x488] sm:$0xff]  ;;  %v4662_v43 = vcombine.high %v283_v34, %v287_v35  ;;  %v4661_v50 = vcombine.low %v283_v34, %v287_v35  ;;  %v315_v7 = vld [vmem:[#allocation5 + $0x5c0] sm:$0xff] }
  0x83   :  { %3264 = vmatpush1.bf16.msra.mxu0 %v4581_v21  ;;  %3476 = vmatpush1.bf16.msra.mxu1 %v4583_v22  ;;  %v4646_v21 = vcombine.high %v267_v12, %v271_v13  ;;  %v4648_v22 = vcombine.high %v268_v14, %v272_v16  ;;  %v280_v27 = vld [vmem:[#allocation5 + $0x4a8] sm:$0xff]  ;;  %v319_v8 = vld [vmem:[#allocation5 + $0x5e0] sm:$0xff] }
  0x84   :  { %3265 = vmatprep.subr.bf16.mxu0 %v4590_v23  ;;  %3477 = vmatprep.subr.bf16.mxu1 %v4592_v24  ;;  %v275_v23 = vld [vmem:[#allocation5 + $0x480] sm:$0xff]  ;;  %v4656_v33 = vcombine.high %v276_v26, %v280_v27  ;;  %v284_v36 = vld [vmem:[#allocation5 + $0x4c8] sm:$0xff]  ;;  %v4655_v42 = vcombine.low %v276_v26, %v280_v27  ;;  %v4694_v13 = vcombine.high %v315_v7, %v319_v8 }
  0x85   :  { %v279_v24 = vld [vmem:[#allocation5 + $0x4a0] sm:$0xff]  ;;  %v296_v49 = vld [vmem:[#allocation5 + $0x528] sm:$0xff] }
  0x86   :  { %v4653_v41 = vcombine.low %v275_v23, %v279_v24  ;;  %v304_v57 = vld [vmem:[#allocation5 + $0x568] sm:$0xff]  ;;  %v327_v17 = vld [vmem:[#allocation5 + $0x620] sm:$0xff] }
  0x87   :  { %3266 = vmatpush1.bf16.msra.mxu0 %v4589_v29  ;;  %3478 = vmatpush1.bf16.msra.mxu1 %v4591_v30  ;;  %v99_v29 = vld [vmem:[#allocation2 + $0x80] sm:$0xff]  ;;  %v312_v2 = vld [vmem:[#allocation5 + $0x5a8] sm:$0xff] }
  0x88   :  { %3267 = vmatprep.subr.bf16.mxu0 %v4598_v31  ;;  %3479 = vmatprep.subr.bf16.mxu1 %v4600_v32  ;;  %v107_v30 = vld [vmem:[#allocation2 + $0xc0] sm:$0xff]  ;;  %v4647_v31 = vcombine.low %v268_v14, %v272_v16  ;;  %v4654_v32 = vcombine.high %v275_v23, %v279_v24  ;;  %v324_v18 = vld [vmem:[#allocation5 + $0x608] sm:$0xff] }
  0x89   :  { %v323_v16 = vld [vmem:[#allocation5 + $0x600] sm:$0xff]  ;;  %v332_v27 = vld [vmem:[#allocation5 + $0x648] sm:$0xff] }
  0x8a   :  { %v331_v24 = vld [vmem:[#allocation5 + $0x640] sm:$0xff]  ;;  %v340_v35 = vld [vmem:[#allocation5 + $0x688] sm:$0xff] }
  0x8b   :  { %3268 = vmatpush1.bf16.msra.mxu0 %v4597_v37  ;;  %3480 = vmatpush1.bf16.msra.mxu1 %v4599_v38  ;;  %v288_v37 = vld [vmem:[#allocation5 + $0x4e8] sm:$0xff]  ;;  %v5486_v38 = vpack.c.bf16 %v107_v30, %v99_v29  ;;  %v335_v26 = vld [vmem:[#allocation5 + $0x660] sm:$0xff]  ;;  %v4701_v29 = vcombine.low %v323_v16, %v327_v17 }
  0x8c   :  { %3269 = vmatprep.subr.bf16.mxu0 %v4606_v39  ;;  %3481 = vmatprep.subr.bf16.mxu1 %v4608_v40  ;;  %v86_v39 = vld [vmem:[#allocation2 + $0x18] sm:$0xff]  ;;  %v4664_v44 = vcombine.high %v284_v36, %v288_v37  ;;  %v4663_v51 = vcombine.low %v284_v36, %v288_v37  ;;  %v343_v34 = vld [vmem:[#allocation5 + $0x6a0] sm:$0xff]  ;;  %v344_v36 = vld [vmem:[#allocation5 + $0x6a8] sm:$0xff]  ;;  %v4709_v37 = vcombine.low %v331_v24, %v335_v26 }
  0x8d   :  { %v94_v40 = vld [vmem:[#allocation2 + $0x58] sm:$0xff] }
  0x8f   :  { %3270 = vmatpush1.bf16.msra.mxu0 %v4605_v45  ;;  %3482 = vmatpush1.bf16.msra.mxu1 %v4607_v46  ;;  %v291_v45 = vld [vmem:[#allocation5 + $0x500] sm:$0xff] }
  0x90   :  { %3271 = vmatprep.subr.bf16.mxu0 %v4614_v47  ;;  %3483 = vmatprep.subr.bf16.mxu1 %v4616_v48  ;;  %v295_v46 = vld [vmem:[#allocation5 + $0x520] sm:$0xff]  ;;  %v5488_v47 = vpack.c.bf16 %v94_v40, %v86_v39  ;;  %v292_v48 = vld [vmem:[#allocation5 + $0x508] sm:$0xff] }
  0x91   :  { %v4670_v52 = vcombine.high %v291_v45, %v295_v46  ;;  %v4669_v59 = vcombine.low %v291_v45, %v295_v46  ;;  %v4671_v60 = vcombine.low %v292_v48, %v296_v49  ;;  %v352_v45 = vld [vmem:[#allocation5 + $0x6e8] sm:$0xff] }
  0x93   :  { %3272 = vmatpush1.bf16.msra.mxu0 %v4613_v53  ;;  %3484 = vmatpush1.bf16.msra.mxu1 %v4615_v54  ;;  %v4672_v53 = vcombine.high %v292_v48, %v296_v49  ;;  %v299_v54 = vld [vmem:[#allocation5 + $0x540] sm:$0xff]  ;;  %v4719_v48 = vcombine.low %v340_v35, %v344_v36 }
  0x94   :  { %3273 = vmatprep.subr.bf16.mxu0 %v4622_v55  ;;  %3485 = vmatprep.subr.bf16.mxu1 %v4624_v56  ;;  %v303_v55 = vld [vmem:[#allocation5 + $0x560] sm:$0xff]  ;;  %v300_v56 = vld [vmem:[#allocation5 + $0x548] sm:$0xff] }
  0x95   :  { %v4678_v61 = vcombine.high %v299_v54, %v303_v55  ;;  %v4677_v3 = vcombine.low %v299_v54, %v303_v55  ;;  %v4679_v4 = vcombine.low %v300_v56, %v304_v57  ;;  %v360_v54 = vld [vmem:[#allocation5 + $0x728] sm:$0xff] }
  0x97   :  { %3274 = vmatpush1.bf16.msra.mxu0 %v4621_v62  ;;  %3486 = vmatpush1.bf16.msra.mxu1 %v4623_v63  ;;  %v4680_v62 = vcombine.high %v300_v56, %v304_v57  ;;  %v307_v63 = vld [vmem:[#allocation5 + $0x580] sm:$0xff] }
  0x98   :  { %3275 = vmatprep.subr.bf16.mxu0 %v4630_v0  ;;  %3487 = vmatprep.subr.bf16.mxu1 %v4632_v1  ;;  %v311_v0 = vld [vmem:[#allocation5 + $0x5a0] sm:$0xff]  ;;  %v308_v1 = vld [vmem:[#allocation5 + $0x588] sm:$0xff] }
  0x99   :  { %v4686_v5 = vcombine.high %v307_v63, %v311_v0  ;;  %v4687_v12 = vcombine.low %v308_v1, %v312_v2 }
  0x9b   :  { %3276 = vmatpush1.bf16.msra.mxu0 %v4629_v6  ;;  %3488 = vmatpush1.bf16.msra.mxu1 %v4631_v9  ;;  %v4688_v6 = vcombine.high %v308_v1, %v312_v2  ;;  %v316_v9 = vld [vmem:[#allocation5 + $0x5c8] sm:$0xff] }
  0x9c   :  { %3298 = vmatprep.subr.bf16.mxu0 %v4638_v10  ;;  %3510 = vmatprep.subr.bf16.mxu1 %v4640_v11  ;;  %v320_v10 = vld [vmem:[#allocation5 + $0x5e8] sm:$0xff]  ;;  %v4685_v11 = vcombine.low %v307_v63, %v311_v0 }
  0x9d   :  { %v4696_v14 = vcombine.high %v316_v9, %v320_v10  ;;  %v368_v63 = vld [vmem:[#allocation5 + $0x768] sm:$0xff] }
  0x9e   :  { %3278 = vmatmul.mubr.bf16.vlgmr.msra.gmra.mrb[0].mxu0 %v5478_v15  ;;  %3490 = vmatmul.mubr.bf16.vlgmr.msra.gmra.mrb[0].mxu1 %v5478_v15 }
  0x9f   :  { %3299 = vmatpush1.bf16.msra.mxu0 %v4637_v19  ;;  %3511 = vmatpush1.bf16.msra.mxu1 %v4639_v20  ;;  %v328_v19 = vld [vmem:[#allocation5 + $0x628] sm:$0xff]  ;;  %v4693_v20 = vcombine.low %v315_v7, %v319_v8 }
  0xa0   :  { %3300 = vmatprep.subr.bf16.mxu0 %v4646_v21  ;;  %3512 = vmatprep.subr.bf16.mxu1 %v4648_v22  ;;  %v4695_v21 = vcombine.low %v316_v9, %v320_v10  ;;  %v4702_v22 = vcombine.high %v323_v16, %v327_v17  ;;  %v4704_v23 = vcombine.high %v324_v18, %v328_v19  ;;  %v376_v7 = vld [vmem:[#allocation5 + $0x7a8] sm:$0xff] }
  0xa1   :  { %3287 = vmatprep.mubr.bf16.mxu0 %v5480_v25  ;;  %3499 = vmatprep.mubr.bf16.mxu1 %v5480_v25  ;;  %v4703_v30 = vcombine.low %v324_v18, %v328_v19  ;;  %v384_v16 = vld [vmem:[#allocation5 + $0x7e8] sm:$0xff] }
  0xa3   :  { %3301 = vmatpush1.bf16.msra.mxu0 %v4645_v28  ;;  %3513 = vmatpush1.bf16.msra.mxu1 %v4647_v31  ;;  %v336_v28 = vld [vmem:[#allocation5 + $0x668] sm:$0xff]  ;;  %v4710_v31 = vcombine.high %v331_v24, %v335_v26 }
  0xa4   :  { %3302 = vmatprep.subr.bf16.mxu0 %v4654_v32  ;;  %3514 = vmatprep.subr.bf16.mxu1 %v4656_v33  ;;  %v4712_v32 = vcombine.high %v332_v27, %v336_v28  ;;  %v339_v33 = vld [vmem:[#allocation5 + $0x680] sm:$0xff]  ;;  %v4711_v39 = vcombine.low %v332_v27, %v336_v28  ;;  %v392_v24 = vld [vmem:[#allocation5 + $0x828] sm:$0xff]  ;;  %v85_v27 = vld [vmem:[#allocation2 + $0x10] sm:$0xff] }
  0xa5   :  { %v4718_v40 = vcombine.high %v339_v33, %v343_v34  ;;  %v4717_v46 = vcombine.low %v339_v33, %v343_v34  ;;  %v93_v28 = vld [vmem:[#allocation2 + $0x50] sm:$0xff]  ;;  %v399_v33 = vld [vmem:[#allocation5 + $0x860] sm:$0xff]  ;;  %v396_v34 = vld [vmem:[#allocation5 + $0x848] sm:$0xff] }
  0xa6   :  { %3288 = vmatmul.mubr.bf16.gmra.mrb[4].mxu0 %v5486_v38  ;;  %3500 = vmatmul.mubr.bf16.gmra.mrb[4].mxu1 %v5486_v38 }
  0xa7   :  { %3303 = vmatpush1.bf16.msra.mxu0 %v4653_v41  ;;  %3515 = vmatpush1.bf16.msra.mxu1 %v4655_v42  ;;  %v4720_v41 = vcombine.high %v340_v35, %v344_v36  ;;  %v347_v42 = vld [vmem:[#allocation5 + $0x6c0] sm:$0xff]  ;;  %v5494_v35 = vpack.c.bf16 %v93_v28, %v85_v27  ;;  %v400_v36 = vld [vmem:[#allocation5 + $0x868] sm:$0xff] }
  0xa8   :  { %3304 = vmatprep.subr.bf16.mxu0 %v4662_v43  ;;  %3516 = vmatprep.subr.bf16.mxu1 %v4664_v44  ;;  %v351_v43 = vld [vmem:[#allocation5 + $0x6e0] sm:$0xff]  ;;  %v348_v44 = vld [vmem:[#allocation5 + $0x6c8] sm:$0xff] }
  0xa9   :  { %3330 = vmatprep.mubr.bf16.mxu0 %v5488_v47  ;;  %3542 = vmatprep.mubr.bf16.mxu1 %v5488_v47  ;;  %v4726_v49 = vcombine.high %v347_v42, %v351_v43  ;;  %v4725_v55 = vcombine.low %v347_v42, %v351_v43  ;;  %v4727_v56 = vcombine.low %v348_v44, %v352_v45 }
  0xaa   :  { %v4776_v43 = vcombine.high %v396_v34, %v400_v36 }
  0xab   :  { %3305 = vmatpush1.bf16.msra.mxu0 %v4661_v50  ;;  %3517 = vmatpush1.bf16.msra.mxu1 %v4663_v51  ;;  %v4728_v50 = vcombine.high %v348_v44, %v352_v45  ;;  %v355_v51 = vld [vmem:[#allocation5 + $0x700] sm:$0xff] }
  0xac   :  { %3306 = vmatprep.subr.bf16.mxu0 %v4670_v52  ;;  %3518 = vmatprep.subr.bf16.mxu1 %v4672_v53  ;;  %v359_v52 = vld [vmem:[#allocation5 + $0x720] sm:$0xff]  ;;  %v356_v53 = vld [vmem:[#allocation5 + $0x708] sm:$0xff] }
  0xad   :  { %v4734_v57 = vcombine.high %v355_v51, %v359_v52  ;;  %v4733_v0 = vcombine.low %v355_v51, %v359_v52  ;;  %v4735_v1 = vcombine.low %v356_v53, %v360_v54  ;;  %v403_v44 = vld [vmem:[#allocation5 + $0x880] sm:$0xff]  ;;  %v101_v51 = vld [vmem:[#allocation2 + $0x90] sm:$0xff] }
  0xae   :  { %v407_v45 = vld [vmem:[#allocation5 + $0x8a0] sm:$0xff]  ;;  %v109_v52 = vld [vmem:[#allocation2 + $0xd0] sm:$0xff] }
  0xaf   :  { %3307 = vmatpush1.bf16.msra.mxu0 %v4669_v59  ;;  %3519 = vmatpush1.bf16.msra.mxu1 %v4671_v60  ;;  %v4736_v59 = vcombine.high %v356_v53, %v360_v54  ;;  %v363_v60 = vld [vmem:[#allocation5 + $0x740] sm:$0xff]  ;;  %v4775_v53 = vcombine.low %v396_v34, %v400_v36  ;;  %v4782_v54 = vcombine.high %v403_v44, %v407_v45  ;;  %v448_v34 = vld [vmem:[#allocation5 + $0x9e8] sm:$0xff] }
  0xb0   :  { %3308 = vmatprep.subr.bf16.mxu0 %v4678_v61  ;;  %3520 = vmatprep.subr.bf16.mxu1 %v4680_v62  ;;  %v367_v61 = vld [vmem:[#allocation5 + $0x760] sm:$0xff]  ;;  %v364_v62 = vld [vmem:[#allocation5 + $0x748] sm:$0xff] }
  0xb1   :  { %v4742_v2 = vcombine.high %v363_v60, %v367_v61  ;;  %v4741_v8 = vcombine.low %v363_v60, %v367_v61  ;;  %v4743_v9 = vcombine.low %v364_v62, %v368_v63  ;;  %v416_v60 = vld [vmem:[#allocation5 + $0x8e8] sm:$0xff]  ;;  %v5502_v61 = vpack.c.bf16 %v109_v52, %v101_v51  ;;  %v459_v51 = vld [vmem:[#allocation5 + $0xa40] sm:$0xff] }
  0xb2   :  { %v463_v52 = vld [vmem:[#allocation5 + $0xa60] sm:$0xff] }
  0xb3   :  { %3309 = vmatpush1.bf16.msra.mxu0 %v4677_v3  ;;  %3521 = vmatpush1.bf16.msra.mxu1 %v4679_v4  ;;  %v4744_v3 = vcombine.high %v364_v62, %v368_v63  ;;  %v371_v4 = vld [vmem:[#allocation5 + $0x780] sm:$0xff]  ;;  %v88_v62 = vld [vmem:[#allocation2 + $0x28] sm:$0xff] }
  0xb4   :  { %3310 = vmatprep.subr.bf16.mxu0 %v4686_v5  ;;  %3522 = vmatprep.subr.bf16.mxu1 %v4688_v6  ;;  %v375_v5 = vld [vmem:[#allocation5 + $0x7a0] sm:$0xff]  ;;  %v372_v6 = vld [vmem:[#allocation5 + $0x788] sm:$0xff] }
  0xb5   :  { %v4750_v10 = vcombine.high %v371_v4, %v375_v5  ;;  %v4749_v17 = vcombine.low %v371_v4, %v375_v5  ;;  %v4751_v18 = vcombine.low %v372_v6, %v376_v7  ;;  %v96_v63 = vld [vmem:[#allocation2 + $0x68] sm:$0xff]  ;;  %v419_v4 = vld [vmem:[#allocation5 + $0x900] sm:$0xff] }
  0xb6   :  { %v423_v5 = vld [vmem:[#allocation5 + $0x920] sm:$0xff] }
  0xb7   :  { %3311 = vmatpush1.bf16.msra.mxu0 %v4685_v11  ;;  %3523 = vmatpush1.bf16.msra.mxu1 %v4687_v12  ;;  %v4752_v11 = vcombine.high %v372_v6, %v376_v7  ;;  %v379_v12 = vld [vmem:[#allocation5 + $0x7c0] sm:$0xff]  ;;  %v5504_v6 = vpack.c.bf16 %v96_v63, %v88_v62  ;;  %v420_v7 = vld [vmem:[#allocation5 + $0x908] sm:$0xff] }
  0xb8   :  { %3312 = vmatprep.subr.bf16.mxu0 %v4694_v13  ;;  %3524 = vmatprep.subr.bf16.mxu1 %v4696_v14  ;;  %v383_v13 = vld [vmem:[#allocation5 + $0x7e0] sm:$0xff]  ;;  %v380_v14 = vld [vmem:[#allocation5 + $0x7c8] sm:$0xff] }
  0xb9   :  { %v4758_v19 = vcombine.high %v379_v12, %v383_v13  ;;  %v4757_v26 = vcombine.low %v379_v12, %v383_v13  ;;  %v427_v13 = vld [vmem:[#allocation5 + $0x940] sm:$0xff]  ;;  %v468_v63 = vld [vmem:[#allocation5 + $0xa88] sm:$0xff] }
  0xba   :  { %v471_v62 = vld [vmem:[#allocation5 + $0xaa0] sm:$0xff] }
  0xbb   :  { %3313 = vmatpush1.bf16.msra.mxu0 %v4693_v20  ;;  %3525 = vmatpush1.bf16.msra.mxu1 %v4695_v21  ;;  %v4760_v20 = vcombine.high %v380_v14, %v384_v16  ;;  %v387_v21 = vld [vmem:[#allocation5 + $0x800] sm:$0xff] }
  0xbc   :  { %3314 = vmatprep.subr.bf16.mxu0 %v4702_v22  ;;  %3526 = vmatprep.subr.bf16.mxu1 %v4704_v23  ;;  %v391_v22 = vld [vmem:[#allocation5 + $0x820] sm:$0xff]  ;;  %v388_v23 = vld [vmem:[#allocation5 + $0x808] sm:$0xff] }
  0xbf   :  { %3315 = vmatpush1.bf16.msra.mxu0 %v4701_v29  ;;  %3527 = vmatpush1.bf16.msra.mxu1 %v4703_v30  ;;  %v4759_v29 = vcombine.low %v380_v14, %v384_v16  ;;  %v4766_v30 = vcombine.high %v387_v21, %v391_v22  ;;  %v431_v14 = vld [vmem:[#allocation5 + $0x960] sm:$0xff]  ;;  %v428_v16 = vld [vmem:[#allocation5 + $0x948] sm:$0xff] }
  0xc0   :  { %3316 = vmatprep.subr.bf16.mxu0 %v4710_v31  ;;  %3528 = vmatprep.subr.bf16.mxu1 %v4712_v32  ;;  %v4768_v31 = vcombine.high %v388_v23, %v392_v24  ;;  %v395_v32 = vld [vmem:[#allocation5 + $0x840] sm:$0xff]  ;;  %v4805_v27 = vcombine.low %v427_v13, %v431_v14 }
  0xc1   :  { %v4774_v42 = vcombine.high %v395_v32, %v399_v33 }
  0xc3   :  { %3317 = vmatpush1.bf16.msra.mxu0 %v4709_v37  ;;  %3529 = vmatpush1.bf16.msra.mxu1 %v4711_v39  ;;  %v102_v37 = vld [vmem:[#allocation2 + $0x98] sm:$0xff] }
  0xc4   :  { %3318 = vmatprep.subr.bf16.mxu0 %v4718_v40  ;;  %3530 = vmatprep.subr.bf16.mxu1 %v4720_v41  ;;  %v110_v39 = vld [vmem:[#allocation2 + $0xd8] sm:$0xff]  ;;  %v4765_v40 = vcombine.low %v387_v21, %v391_v22  ;;  %v4767_v41 = vcombine.low %v388_v23, %v392_v24  ;;  %v435_v22 = vld [vmem:[#allocation5 + $0x980] sm:$0xff]  ;;  %v436_v24 = vld [vmem:[#allocation5 + $0x988] sm:$0xff] }
  0xc5   :  { %v439_v23 = vld [vmem:[#allocation5 + $0x9a0] sm:$0xff] }
  0xc6   :  { %v4813_v36 = vcombine.low %v435_v22, %v439_v23 }
  0xc7   :  { %3319 = vmatpush1.bf16.msra.mxu0 %v4717_v46  ;;  %3531 = vmatpush1.bf16.msra.mxu1 %v4719_v48  ;;  %v5496_v46 = vpack.c.bf16 %v110_v39, %v102_v37  ;;  %v404_v48 = vld [vmem:[#allocation5 + $0x888] sm:$0xff] }
  0xc8   :  { %3320 = vmatprep.subr.bf16.mxu0 %v4726_v49  ;;  %3532 = vmatprep.subr.bf16.mxu1 %v4728_v50  ;;  %v408_v49 = vld [vmem:[#allocation5 + $0x8a8] sm:$0xff]  ;;  %v4773_v50 = vcombine.low %v395_v32, %v399_v33  ;;  %v447_v32 = vld [vmem:[#allocation5 + $0x9e0] sm:$0xff] }
  0xc9   :  { %v444_v33 = vld [vmem:[#allocation5 + $0x9c8] sm:$0xff] }
  0xcb   :  { %3321 = vmatpush1.bf16.msra.mxu0 %v4725_v55  ;;  %3533 = vmatpush1.bf16.msra.mxu1 %v4727_v56  ;;  %v4784_v55 = vcombine.high %v404_v48, %v408_v49  ;;  %v411_v56 = vld [vmem:[#allocation5 + $0x8c0] sm:$0xff] }
  0xcc   :  { %3322 = vmatprep.subr.bf16.mxu0 %v4734_v57  ;;  %3534 = vmatprep.subr.bf16.mxu1 %v4736_v59  ;;  %v415_v57 = vld [vmem:[#allocation5 + $0x8e0] sm:$0xff]  ;;  %v412_v59 = vld [vmem:[#allocation5 + $0x8c8] sm:$0xff] }
  0xcf   :  { %3323 = vmatpush1.bf16.msra.mxu0 %v4733_v0  ;;  %3535 = vmatpush1.bf16.msra.mxu1 %v4735_v1  ;;  %v4781_v0 = vcombine.low %v403_v44, %v407_v45  ;;  %v4783_v1 = vcombine.low %v404_v48, %v408_v49  ;;  %v456_v44 = vld [vmem:[#allocation5 + $0xa28] sm:$0xff]  ;;  %v4823_v48 = vcombine.low %v444_v33, %v448_v34 }
  0xd0   :  { %3324 = vmatprep.subr.bf16.mxu0 %v4742_v2  ;;  %3536 = vmatprep.subr.bf16.mxu1 %v4744_v3  ;;  %v4790_v2 = vcombine.high %v411_v56, %v415_v57  ;;  %v4792_v3 = vcombine.high %v412_v59, %v416_v60 }
  0xd3   :  { %3325 = vmatpush1.bf16.msra.mxu0 %v4741_v8  ;;  %3537 = vmatpush1.bf16.msra.mxu1 %v4743_v9  ;;  %v424_v8 = vld [vmem:[#allocation5 + $0x928] sm:$0xff]  ;;  %v4789_v9 = vcombine.low %v411_v56, %v415_v57  ;;  %v4838_v57 = vcombine.high %v459_v51, %v463_v52 }
  0xd4   :  { %3326 = vmatprep.subr.bf16.mxu0 %v4750_v10  ;;  %3538 = vmatprep.subr.bf16.mxu1 %v4752_v11  ;;  %v4791_v10 = vcombine.low %v412_v59, %v416_v60  ;;  %v4798_v11 = vcombine.high %v419_v4, %v423_v5  ;;  %v4800_v12 = vcombine.high %v420_v7, %v424_v8  ;;  %v467_v60 = vld [vmem:[#allocation5 + $0xa80] sm:$0xff] }
  0xd7   :  { %3327 = vmatpush1.bf16.msra.mxu0 %v4749_v17  ;;  %3539 = vmatpush1.bf16.msra.mxu1 %v4751_v18  ;;  %v432_v17 = vld [vmem:[#allocation5 + $0x968] sm:$0xff]  ;;  %v4797_v18 = vcombine.low %v419_v4, %v423_v5  ;;  %v475_v5 = vld [vmem:[#allocation5 + $0xac0] sm:$0xff] }
  0xd8   :  { %3328 = vmatprep.subr.bf16.mxu0 %v4758_v19  ;;  %3540 = vmatprep.subr.bf16.mxu1 %v4760_v20  ;;  %v4799_v19 = vcombine.low %v420_v7, %v424_v8  ;;  %v4806_v20 = vcombine.high %v427_v13, %v431_v14  ;;  %v4808_v21 = vcombine.high %v428_v16, %v432_v17  ;;  %v479_v7 = vld [vmem:[#allocation5 + $0xae0] sm:$0xff]  ;;  %v476_v8 = vld [vmem:[#allocation5 + $0xac8] sm:$0xff] }
  0xd9   :  { %v4807_v28 = vcombine.low %v428_v16, %v432_v17  ;;  %v483_v14 = vld [vmem:[#allocation5 + $0xb00] sm:$0xff]  ;;  %v484_v17 = vld [vmem:[#allocation5 + $0xb08] sm:$0xff] }
  0xda   :  { %v487_v16 = vld [vmem:[#allocation5 + $0xb20] sm:$0xff] }
  0xdb   :  { %3329 = vmatpush1.bf16.msra.mxu0 %v4757_v26  ;;  %3541 = vmatpush1.bf16.msra.mxu1 %v4759_v29  ;;  %v440_v26 = vld [vmem:[#allocation5 + $0x9a8] sm:$0xff]  ;;  %v4814_v29 = vcombine.high %v435_v22, %v439_v23  ;;  %v491_v23 = vld [vmem:[#allocation5 + $0xb40] sm:$0xff] }
  0xdc   :  { %3351 = vmatprep.subr.bf16.mxu0 %v4766_v30  ;;  %3563 = vmatprep.subr.bf16.mxu1 %v4768_v31  ;;  %v4816_v30 = vcombine.high %v436_v24, %v440_v26  ;;  %v443_v31 = vld [vmem:[#allocation5 + $0x9c0] sm:$0xff]  ;;  %v4815_v37 = vcombine.low %v436_v24, %v440_v26  ;;  %v492_v26 = vld [vmem:[#allocation5 + $0xb48] sm:$0xff] }
  0xdd   :  { %v4822_v39 = vcombine.high %v443_v31, %v447_v32  ;;  %v4821_v45 = vcombine.low %v443_v31, %v447_v32  ;;  %v495_v24 = vld [vmem:[#allocation5 + $0xb60] sm:$0xff] }
  0xde   :  { %3331 = vmatmul.mubr.bf16.vlgmr.msra.gmra.mrb[0].mxu0 %v5494_v35  ;;  %3543 = vmatmul.mubr.bf16.vlgmr.msra.gmra.mrb[0].mxu1 %v5494_v35  ;;  %v499_v32 = vld [vmem:[#allocation5 + $0xb80] sm:$0xff] }
  0xdf   :  { %3352 = vmatpush1.bf16.msra.mxu0 %v4765_v40  ;;  %3564 = vmatpush1.bf16.msra.mxu1 %v4767_v41  ;;  %v4824_v40 = vcombine.high %v444_v33, %v448_v34  ;;  %v451_v41 = vld [vmem:[#allocation5 + $0xa00] sm:$0xff]  ;;  %v500_v34 = vld [vmem:[#allocation5 + $0xb88] sm:$0xff] }
  0xe0   :  { %3353 = vmatprep.subr.bf16.mxu0 %v4774_v42  ;;  %3565 = vmatprep.subr.bf16.mxu1 %v4776_v43  ;;  %v455_v42 = vld [vmem:[#allocation5 + $0xa20] sm:$0xff]  ;;  %v452_v43 = vld [vmem:[#allocation5 + $0xa08] sm:$0xff] }
  0xe1   :  { %3340 = vmatprep.mubr.bf16.mxu0 %v5496_v46  ;;  %3552 = vmatprep.mubr.bf16.mxu1 %v5496_v46  ;;  %v4830_v49 = vcombine.high %v451_v41, %v455_v42  ;;  %v4831_v56 = vcombine.low %v452_v43, %v456_v44  ;;  %v503_v33 = vld [vmem:[#allocation5 + $0xba0] sm:$0xff] }
  0xe3   :  { %3354 = vmatpush1.bf16.msra.mxu0 %v4773_v50  ;;  %3566 = vmatpush1.bf16.msra.mxu1 %v4775_v53  ;;  %v4832_v50 = vcombine.high %v452_v43, %v456_v44  ;;  %v460_v53 = vld [vmem:[#allocation5 + $0xa48] sm:$0xff]  ;;  %v511_v43 = vld [vmem:[#allocation5 + $0xbe0] sm:$0xff] }
  0xe4   :  { %3355 = vmatprep.subr.bf16.mxu0 %v4782_v54  ;;  %3567 = vmatprep.subr.bf16.mxu1 %v4784_v55  ;;  %v464_v54 = vld [vmem:[#allocation5 + $0xa68] sm:$0xff]  ;;  %v4829_v55 = vcombine.low %v451_v41, %v455_v42  ;;  %v507_v42 = vld [vmem:[#allocation5 + $0xbc0] sm:$0xff] }
  0xe5   :  { %v4840_v59 = vcombine.high %v460_v53, %v464_v54  ;;  %v508_v44 = vld [vmem:[#allocation5 + $0xbc8] sm:$0xff] }
  0xe6   :  { %3341 = vmatmul.mubr.bf16.gmra.mrb[4].mxu0 %v5502_v61  ;;  %3553 = vmatmul.mubr.bf16.gmra.mrb[4].mxu1 %v5502_v61 }
  0xe7   :  { %3356 = vmatpush1.bf16.msra.mxu0 %v4781_v0  ;;  %3568 = vmatpush1.bf16.msra.mxu1 %v4783_v1  ;;  %v472_v0 = vld [vmem:[#allocation5 + $0xaa8] sm:$0xff]  ;;  %v4837_v1 = vcombine.low %v459_v51, %v463_v52  ;;  %v515_v52 = vld [vmem:[#allocation5 + $0xc00] sm:$0xff] }
  0xe8   :  { %3357 = vmatprep.subr.bf16.mxu0 %v4790_v2  ;;  %3569 = vmatprep.subr.bf16.mxu1 %v4792_v3  ;;  %v4839_v2 = vcombine.low %v460_v53, %v464_v54  ;;  %v4846_v3 = vcombine.high %v467_v60, %v471_v62  ;;  %v4848_v4 = vcombine.high %v468_v63, %v472_v0  ;;  %v519_v53 = vld [vmem:[#allocation5 + $0xc20] sm:$0xff]  ;;  %v516_v54 = vld [vmem:[#allocation5 + $0xc08] sm:$0xff] }
  0xe9   :  { %3383 = vmatprep.mubr.bf16.mxu0 %v5504_v6  ;;  %3595 = vmatprep.mubr.bf16.mxu1 %v5504_v6 }
  0xeb   :  { %3358 = vmatpush1.bf16.msra.mxu0 %v4789_v9  ;;  %3570 = vmatpush1.bf16.msra.mxu1 %v4791_v10  ;;  %v480_v9 = vld [vmem:[#allocation5 + $0xae8] sm:$0xff]  ;;  %v4845_v10 = vcombine.low %v467_v60, %v471_v62  ;;  %v4894_v62 = vcombine.high %v515_v52, %v519_v53 }
  0xec   :  { %3359 = vmatprep.subr.bf16.mxu0 %v4798_v11  ;;  %3571 = vmatprep.subr.bf16.mxu1 %v4800_v12  ;;  %v4847_v11 = vcombine.low %v468_v63, %v472_v0  ;;  %v4854_v12 = vcombine.high %v475_v5, %v479_v7  ;;  %v4856_v13 = vcombine.high %v476_v8, %v480_v9  ;;  %v523_v0 = vld [vmem:[#allocation5 + $0xc40] sm:$0xff] }
  0xef   :  { %3360 = vmatpush1.bf16.msra.mxu0 %v4797_v18  ;;  %3572 = vmatpush1.bf16.msra.mxu1 %v4799_v19  ;;  %v488_v18 = vld [vmem:[#allocation5 + $0xb28] sm:$0xff]  ;;  %v4853_v19 = vcombine.low %v475_v5, %v479_v7 }
  0xf0   :  { %3361 = vmatprep.subr.bf16.mxu0 %v4806_v20  ;;  %3573 = vmatprep.subr.bf16.mxu1 %v4808_v21  ;;  %v4855_v20 = vcombine.low %v476_v8, %v480_v9  ;;  %v4862_v21 = vcombine.high %v483_v14, %v487_v16  ;;  %v4864_v22 = vcombine.high %v484_v17, %v488_v18  ;;  %v104_v5 = vld [vmem:[#allocation2 + $0xa8] sm:$0xff] }
  0xf1   :  { %v112_v7 = vld [vmem:[#allocation2 + $0xe8] sm:$0xff]  ;;  %v4893_v8 = vcombine.low %v515_v52, %v519_v53 }
  0xf2   :  { %v560_v52 = vld [vmem:[#allocation5 + $0xd68] sm:$0xff] }
  0xf3   :  { %3362 = vmatpush1.bf16.msra.mxu0 %v4805_v27  ;;  %3574 = vmatpush1.bf16.msra.mxu1 %v4807_v28  ;;  %v496_v27 = vld [vmem:[#allocation5 + $0xb68] sm:$0xff]  ;;  %v4861_v28 = vcombine.low %v483_v14, %v487_v16  ;;  %v5512_v14 = vpack.c.bf16 %v112_v7, %v104_v5  ;;  %v575_v5 = vld [vmem:[#allocation5 + $0xde0] sm:$0xff] }
  0xf4   :  { %3363 = vmatprep.subr.bf16.mxu0 %v4814_v29  ;;  %3575 = vmatprep.subr.bf16.mxu1 %v4816_v30  ;;  %v4863_v29 = vcombine.low %v484_v17, %v488_v18  ;;  %v4870_v30 = vcombine.high %v491_v23, %v495_v24  ;;  %v4872_v31 = vcombine.high %v492_v26, %v496_v27  ;;  %v532_v16 = vld [vmem:[#allocation5 + $0xc88] sm:$0xff] }
  0xf5   :  { %v536_v17 = vld [vmem:[#allocation5 + $0xca8] sm:$0xff] }
  0xf6   :  { %v572_v7 = vld [vmem:[#allocation5 + $0xdc8] sm:$0xff] }
  0xf7   :  { %3364 = vmatpush1.bf16.msra.mxu0 %v4813_v36  ;;  %3576 = vmatpush1.bf16.msra.mxu1 %v4815_v37  ;;  %v504_v36 = vld [vmem:[#allocation5 + $0xba8] sm:$0xff]  ;;  %v4869_v37 = vcombine.low %v491_v23, %v495_v24  ;;  %v4912_v23 = vcombine.high %v532_v16, %v536_v17  ;;  %v539_v24 = vld [vmem:[#allocation5 + $0xcc0] sm:$0xff] }
  0xf8   :  { %3365 = vmatprep.subr.bf16.mxu0 %v4822_v39  ;;  %3577 = vmatprep.subr.bf16.mxu1 %v4824_v40  ;;  %v4871_v39 = vcombine.low %v492_v26, %v496_v27  ;;  %v4878_v40 = vcombine.high %v499_v32, %v503_v33  ;;  %v4880_v41 = vcombine.high %v500_v34, %v504_v36  ;;  %v543_v26 = vld [vmem:[#allocation5 + $0xce0] sm:$0xff]  ;;  %v540_v27 = vld [vmem:[#allocation5 + $0xcc8] sm:$0xff] }
  0xfb   :  { %3366 = vmatpush1.bf16.msra.mxu0 %v4821_v45  ;;  %3578 = vmatpush1.bf16.msra.mxu1 %v4823_v48  ;;  %v512_v45 = vld [vmem:[#allocation5 + $0xbe8] sm:$0xff]  ;;  %v4877_v48 = vcombine.low %v499_v32, %v503_v33  ;;  %v4911_v33 = vcombine.low %v532_v16, %v536_v17  ;;  %v583_v16 = vld [vmem:[#allocation5 + $0xe20] sm:$0xff] }
  0xfc   :  { %3367 = vmatprep.subr.bf16.mxu0 %v4830_v49  ;;  %3579 = vmatprep.subr.bf16.mxu1 %v4832_v50  ;;  %v4879_v49 = vcombine.low %v500_v34, %v504_v36  ;;  %v4886_v50 = vcombine.high %v507_v42, %v511_v43  ;;  %v4888_v51 = vcombine.high %v508_v44, %v512_v45  ;;  %v580_v17 = vld [vmem:[#allocation5 + $0xe08] sm:$0xff] }
  0xfd   :  { %v4887_v60 = vcombine.low %v508_v44, %v512_v45  ;;  %v4918_v34 = vcombine.high %v539_v24, %v543_v26 }
  0xff   :  { %3368 = vmatpush1.bf16.msra.mxu0 %v4829_v55  ;;  %3580 = vmatpush1.bf16.msra.mxu1 %v4831_v56  ;;  %v520_v55 = vld [vmem:[#allocation5 + $0xc28] sm:$0xff]  ;;  %v4885_v56 = vcombine.low %v507_v42, %v511_v43  ;;  %v4917_v43 = vcombine.low %v539_v24, %v543_v26  ;;  %v591_v24 = vld [vmem:[#allocation5 + $0xe60] sm:$0xff] }
 0x100   :  { %3369 = vmatprep.subr.bf16.mxu0 %v4838_v57  ;;  %3581 = vmatprep.subr.bf16.mxu1 %v4840_v59  ;;  %v87_v57 = vld [vmem:[#allocation2 + $0x20] sm:$0xff]  ;;  %v4896_v63 = vcombine.high %v516_v54, %v520_v55  ;;  %v4895_v9 = vcombine.low %v516_v54, %v520_v55  ;;  %v552_v42 = vld [vmem:[#allocation5 + $0xd28] sm:$0xff] }
 0x101   :  { %v95_v59 = vld [vmem:[#allocation2 + $0x60] sm:$0xff]  ;;  %v588_v26 = vld [vmem:[#allocation5 + $0xe48] sm:$0xff] }
 0x103   :  { %3370 = vmatpush1.bf16.msra.mxu0 %v4837_v1  ;;  %3582 = vmatpush1.bf16.msra.mxu1 %v4839_v2  ;;  %v527_v1 = vld [vmem:[#allocation5 + $0xc60] sm:$0xff]  ;;  %v524_v2 = vld [vmem:[#allocation5 + $0xc48] sm:$0xff] }
 0x104   :  { %3371 = vmatprep.subr.bf16.mxu0 %v4846_v3  ;;  %3583 = vmatprep.subr.bf16.mxu1 %v4848_v4  ;;  %v5510_v3 = vpack.c.bf16 %v95_v59, %v87_v57  ;;  %v528_v4 = vld [vmem:[#allocation5 + $0xc68] sm:$0xff]  ;;  %v4901_v18 = vcombine.low %v523_v0, %v527_v1  ;;  %v563_v57 = vld [vmem:[#allocation5 + $0xd80] sm:$0xff] }
 0x105   :  { %v567_v59 = vld [vmem:[#allocation5 + $0xda0] sm:$0xff] }
 0x107   :  { %3372 = vmatpush1.bf16.msra.mxu0 %v4845_v10  ;;  %3584 = vmatpush1.bf16.msra.mxu1 %v4847_v11  ;;  %v4902_v10 = vcombine.high %v523_v0, %v527_v1  ;;  %v4904_v11 = vcombine.high %v524_v2, %v528_v4  ;;  %v4942_v1 = vcombine.high %v563_v57, %v567_v59 }
 0x108   :  { %3373 = vmatprep.subr.bf16.mxu0 %v4854_v12  ;;  %3585 = vmatprep.subr.bf16.mxu1 %v4856_v13  ;;  %v531_v12 = vld [vmem:[#allocation5 + $0xc80] sm:$0xff] }
 0x109   :  { %v535_v13 = vld [vmem:[#allocation5 + $0xca0] sm:$0xff] }
 0x10a   :  { %v4909_v32 = vcombine.low %v531_v12, %v535_v13 }
 0x10b   :  { %3374 = vmatpush1.bf16.msra.mxu0 %v4853_v19  ;;  %3586 = vmatpush1.bf16.msra.mxu1 %v4855_v20  ;;  %v103_v19 = vld [vmem:[#allocation2 + $0xa0] sm:$0xff] }
 0x10c   :  { %3375 = vmatprep.subr.bf16.mxu0 %v4862_v21  ;;  %3587 = vmatprep.subr.bf16.mxu1 %v4864_v22  ;;  %v111_v20 = vld [vmem:[#allocation2 + $0xe0] sm:$0xff]  ;;  %v4903_v21 = vcombine.low %v524_v2, %v528_v4  ;;  %v4910_v22 = vcombine.high %v531_v12, %v535_v13 }
 0x10d   :  { %v571_v4 = vld [vmem:[#allocation5 + $0xdc0] sm:$0xff] }
 0x10e   :  { %v579_v13 = vld [vmem:[#allocation5 + $0xe00] sm:$0xff] }
 0x10f   :  { %3376 = vmatpush1.bf16.msra.mxu0 %v4861_v28  ;;  %3588 = vmatpush1.bf16.msra.mxu1 %v4863_v29  ;;  %v544_v28 = vld [vmem:[#allocation5 + $0xce8] sm:$0xff]  ;;  %v5518_v29 = vpack.c.bf16 %v111_v20, %v103_v19  ;;  %v4949_v19 = vcombine.low %v571_v4, %v575_v5 }
 0x110   :  { %3377 = vmatprep.subr.bf16.mxu0 %v4870_v30  ;;  %3589 = vmatprep.subr.bf16.mxu1 %v4872_v31  ;;  %v90_v30 = vld [vmem:[#allocation2 + $0x38] sm:$0xff]  ;;  %v4920_v36 = vcombine.high %v540_v27, %v544_v28  ;;  %v4919_v44 = vcombine.low %v540_v27, %v544_v28  ;;  %v592_v27 = vld [vmem:[#allocation5 + $0xe68] sm:$0xff]  ;;  %v4957_v28 = vcombine.low %v579_v13, %v583_v16 }
 0x111   :  { %v98_v31 = vld [vmem:[#allocation2 + $0x78] sm:$0xff] }
 0x113   :  { %3378 = vmatpush1.bf16.msra.mxu0 %v4869_v37  ;;  %3590 = vmatpush1.bf16.msra.mxu1 %v4871_v39  ;;  %v547_v37 = vld [vmem:[#allocation5 + $0xd00] sm:$0xff] }
 0x114   :  { %3379 = vmatprep.subr.bf16.mxu0 %v4878_v40  ;;  %3591 = vmatprep.subr.bf16.mxu1 %v4880_v41  ;;  %v551_v39 = vld [vmem:[#allocation5 + $0xd20] sm:$0xff]  ;;  %v5520_v40 = vpack.c.bf16 %v98_v31, %v90_v30  ;;  %v548_v41 = vld [vmem:[#allocation5 + $0xd08] sm:$0xff] }
 0x115   :  { %v4926_v45 = vcombine.high %v547_v37, %v551_v39  ;;  %v4925_v53 = vcombine.low %v547_v37, %v551_v39  ;;  %v4927_v54 = vcombine.low %v548_v41, %v552_v42  ;;  %v600_v37 = vld [vmem:[#allocation5 + $0xea8] sm:$0xff] }
 0x117   :  { %3380 = vmatpush1.bf16.msra.mxu0 %v4877_v48  ;;  %3592 = vmatpush1.bf16.msra.mxu1 %v4879_v49  ;;  %v4928_v48 = vcombine.high %v548_v41, %v552_v42  ;;  %v555_v49 = vld [vmem:[#allocation5 + $0xd40] sm:$0xff]  ;;  %v4967_v41 = vcombine.low %v588_v26, %v592_v27 }
 0x118   :  { %3381 = vmatprep.subr.bf16.mxu0 %v4886_v50  ;;  %3593 = vmatprep.subr.bf16.mxu1 %v4888_v51  ;;  %v559_v50 = vld [vmem:[#allocation5 + $0xd60] sm:$0xff]  ;;  %v556_v51 = vld [vmem:[#allocation5 + $0xd48] sm:$0xff] }
 0x119   :  { %v4934_v55 = vcombine.high %v555_v49, %v559_v50  ;;  %v4935_v0 = vcombine.low %v556_v51, %v560_v52 }
 0x11b   :  { %3382 = vmatpush1.bf16.msra.mxu0 %v4885_v56  ;;  %3594 = vmatpush1.bf16.msra.mxu1 %v4887_v60  ;;  %v4936_v56 = vcombine.high %v556_v51, %v560_v52  ;;  %v564_v60 = vld [vmem:[#allocation5 + $0xd88] sm:$0xff] }
 0x11c   :  { %3404 = vmatprep.subr.bf16.mxu0 %v4894_v62  ;;  %3616 = vmatprep.subr.bf16.mxu1 %v4896_v63  ;;  %v568_v62 = vld [vmem:[#allocation5 + $0xda8] sm:$0xff]  ;;  %v4933_v63 = vcombine.low %v555_v49, %v559_v50 }
 0x11d   :  { %v4944_v2 = vcombine.high %v564_v60, %v568_v62  ;;  %v608_v49 = vld [vmem:[#allocation5 + $0xee8] sm:$0xff] }
 0x11e   :  { %3384 = vmatmul.mubr.bf16.vlgmr.msra.gmra.mrb[0].mxu0 %v5510_v3  ;;  %3596 = vmatmul.mubr.bf16.vlgmr.msra.gmra.mrb[0].mxu1 %v5510_v3 }
 0x11f   :  { %3405 = vmatpush1.bf16.msra.mxu0 %v4893_v8  ;;  %3617 = vmatpush1.bf16.msra.mxu1 %v4895_v9  ;;  %v576_v8 = vld [vmem:[#allocation5 + $0xde8] sm:$0xff]  ;;  %v4941_v9 = vcombine.low %v563_v57, %v567_v59 }
 0x120   :  { %3406 = vmatprep.subr.bf16.mxu0 %v4902_v10  ;;  %3618 = vmatprep.subr.bf16.mxu1 %v4904_v11  ;;  %v4943_v10 = vcombine.low %v564_v60, %v568_v62  ;;  %v4950_v11 = vcombine.high %v571_v4, %v575_v5  ;;  %v4952_v12 = vcombine.high %v572_v7, %v576_v8  ;;  %v616_v57 = vld [vmem:[#allocation5 + $0xf28] sm:$0xff] }
 0x121   :  { %3393 = vmatprep.mubr.bf16.mxu0 %v5512_v14  ;;  %3605 = vmatprep.mubr.bf16.mxu1 %v5512_v14  ;;  %v4951_v20 = vcombine.low %v572_v7, %v576_v8  ;;  %v624_v4 = vld [vmem:[#allocation5 + $0xf68] sm:$0xff] }
 0x123   :  { %3407 = vmatpush1.bf16.msra.mxu0 %v4901_v18  ;;  %3619 = vmatpush1.bf16.msra.mxu1 %v4903_v21  ;;  %v584_v18 = vld [vmem:[#allocation5 + $0xe28] sm:$0xff]  ;;  %v4958_v21 = vcombine.high %v579_v13, %v583_v16 }
 0x124   :  { %3408 = vmatprep.subr.bf16.mxu0 %v4910_v22  ;;  %3620 = vmatprep.subr.bf16.mxu1 %v4912_v23  ;;  %v4960_v22 = vcombine.high %v580_v17, %v584_v18  ;;  %v587_v23 = vld [vmem:[#allocation5 + $0xe40] sm:$0xff]  ;;  %v4959_v30 = vcombine.low %v580_v17, %v584_v18  ;;  %v632_v13 = vld [vmem:[#allocation5 + $0xfa8] sm:$0xff] }
 0x125   :  { %v4966_v31 = vcombine.high %v587_v23, %v591_v24  ;;  %v4965_v39 = vcombine.low %v587_v23, %v591_v24  ;;  %v640_v23 = vld [vmem:[#allocation5 + $0xfe8] sm:$0xff] }
 0x126   :  { %3394 = vmatmul.mubr.bf16.gmra.mrb[4].mxu0 %v5518_v29  ;;  %3606 = vmatmul.mubr.bf16.gmra.mrb[4].mxu1 %v5518_v29 }
 0x127   :  { %3409 = vmatpush1.bf16.msra.mxu0 %v4909_v32  ;;  %3621 = vmatpush1.bf16.msra.mxu1 %v4911_v33  ;;  %v4968_v32 = vcombine.high %v588_v26, %v592_v27  ;;  %v595_v33 = vld [vmem:[#allocation5 + $0xe80] sm:$0xff] }
 0x128   :  { %3410 = vmatprep.subr.bf16.mxu0 %v4918_v34  ;;  %3622 = vmatprep.subr.bf16.mxu1 %v4920_v36  ;;  %v599_v34 = vld [vmem:[#allocation5 + $0xea0] sm:$0xff]  ;;  %v596_v36 = vld [vmem:[#allocation5 + $0xe88] sm:$0xff] }
 0x129   :  { %3436 = vmatprep.mubr.bf16.mxu0 %v5520_v40  ;;  %3648 = vmatprep.mubr.bf16.mxu1 %v5520_v40  ;;  %v4974_v42 = vcombine.high %v595_v33, %v599_v34  ;;  %v4973_v50 = vcombine.low %v595_v33, %v599_v34  ;;  %v4975_v51 = vcombine.low %v596_v36, %v600_v37  ;;  %v138_v33 = vld [vmem:[#allocation5 + $0x38] sm:$0xff] }
 0x12b   :  { %3411 = vmatpush1.bf16.msra.mxu0 %v4917_v43  ;;  %3623 = vmatpush1.bf16.msra.mxu1 %v4919_v44  ;;  %v4976_v43 = vcombine.high %v596_v36, %v600_v37  ;;  %v603_v44 = vld [vmem:[#allocation5 + $0xec0] sm:$0xff]  ;;  %v89_v36 = vld [vmem:[#allocation2 + $0x30] sm:$0xff] }
 0x12c   :  { %3412 = vmatprep.subr.bf16.mxu0 %v4926_v45  ;;  %3624 = vmatprep.subr.bf16.mxu1 %v4928_v48  ;;  %v607_v45 = vld [vmem:[#allocation5 + $0xee0] sm:$0xff]  ;;  %v604_v48 = vld [vmem:[#allocation5 + $0xec8] sm:$0xff]  ;;  %v97_v37 = vld [vmem:[#allocation2 + $0x70] sm:$0xff] }
 0x12d   :  { %v4982_v52 = vcombine.high %v603_v44, %v607_v45  ;;  %v4981_v59 = vcombine.low %v603_v44, %v607_v45  ;;  %v4983_v60 = vcombine.low %v604_v48, %v608_v49  ;;  %v145_v44 = vld [vmem:[#allocation5 + $0x70] sm:$0xff]  ;;  %v142_v45 = vld [vmem:[#allocation5 + $0x58] sm:$0xff] }
 0x12f   :  { %3413 = vmatpush1.bf16.msra.mxu0 %v4925_v53  ;;  %3625 = vmatpush1.bf16.msra.mxu1 %v4927_v54  ;;  %v4984_v53 = vcombine.high %v604_v48, %v608_v49  ;;  %v611_v54 = vld [vmem:[#allocation5 + $0xf00] sm:$0xff]  ;;  %v5526_v48 = vpack.c.bf16 %v97_v37, %v89_v36  ;;  %v146_v49 = vld [vmem:[#allocation5 + $0x78] sm:$0xff]  ;;  %v181_v37 = vld [vmem:[#allocation5 + $0x190] sm:$0xff] }
 0x130   :  { %3414 = vmatprep.subr.bf16.mxu0 %v4934_v55  ;;  %3626 = vmatprep.subr.bf16.mxu1 %v4936_v56  ;;  %v615_v55 = vld [vmem:[#allocation5 + $0xf20] sm:$0xff]  ;;  %v612_v56 = vld [vmem:[#allocation5 + $0xf08] sm:$0xff] }
 0x131   :  { %v4990_v62 = vcombine.high %v611_v54, %v615_v55  ;;  %v4989_v5 = vcombine.low %v611_v54, %v615_v55  ;;  %v4991_v7 = vcombine.low %v612_v56, %v616_v57  ;;  %v4524_v55 = vcombine.high %v142_v45, %v146_v49 }
 0x133   :  { %3415 = vmatpush1.bf16.msra.mxu0 %v4933_v63  ;;  %3627 = vmatpush1.bf16.msra.mxu1 %v4935_v0  ;;  %v4992_v63 = vcombine.high %v612_v56, %v616_v57  ;;  %v619_v0 = vld [vmem:[#allocation5 + $0xf40] sm:$0xff]  ;;  %v149_v57 = vld [vmem:[#allocation5 + $0x90] sm:$0xff] }
 0x134   :  { %3416 = vmatprep.subr.bf16.mxu0 %v4942_v1  ;;  %3628 = vmatprep.subr.bf16.mxu1 %v4944_v2  ;;  %v623_v1 = vld [vmem:[#allocation5 + $0xf60] sm:$0xff]  ;;  %v620_v2 = vld [vmem:[#allocation5 + $0xf48] sm:$0xff] }
 0x135   :  { %v4998_v8 = vcombine.high %v619_v0, %v623_v1  ;;  %v4997_v16 = vcombine.low %v619_v0, %v623_v1  ;;  %v4999_v17 = vcombine.low %v620_v2, %v624_v4  ;;  %v105_v0 = vld [vmem:[#allocation2 + $0xb0] sm:$0xff] }
 0x136   :  { %v113_v1 = vld [vmem:[#allocation2 + $0xf0] sm:$0xff] }
 0x137   :  { %3417 = vmatpush1.bf16.msra.mxu0 %v4941_v9  ;;  %3629 = vmatpush1.bf16.msra.mxu1 %v4943_v10  ;;  %v5000_v9 = vcombine.high %v620_v2, %v624_v4  ;;  %v627_v10 = vld [vmem:[#allocation5 + $0xf80] sm:$0xff]  ;;  %v4523_v2 = vcombine.low %v142_v45, %v146_v49  ;;  %v189_v49 = vld [vmem:[#allocation5 + $0x1d0] sm:$0xff] }
 0x138   :  { %3418 = vmatprep.subr.bf16.mxu0 %v4950_v11  ;;  %3630 = vmatprep.subr.bf16.mxu1 %v4952_v12  ;;  %v631_v11 = vld [vmem:[#allocation5 + $0xfa0] sm:$0xff]  ;;  %v628_v12 = vld [vmem:[#allocation5 + $0xf88] sm:$0xff] }
 0x139   :  { %v5006_v18 = vcombine.high %v627_v10, %v631_v11  ;;  %v5005_v24 = vcombine.low %v627_v10, %v631_v11  ;;  %v5007_v26 = vcombine.low %v628_v12, %v632_v13  ;;  %v158_v10 = vld [vmem:[#allocation5 + $0xd8] sm:$0xff] }
 0x13a   :  { %v162_v11 = vld [vmem:[#allocation5 + $0xf8] sm:$0xff] }
 0x13b   :  { %3419 = vmatpush1.bf16.msra.mxu0 %v4949_v19  ;;  %3631 = vmatpush1.bf16.msra.mxu1 %v4951_v20  ;;  %v5008_v19 = vcombine.high %v628_v12, %v632_v13  ;;  %v635_v20 = vld [vmem:[#allocation5 + $0xfc0] sm:$0xff] }
 0x13c   :  { %3420 = vmatprep.subr.bf16.mxu0 %v4958_v21  ;;  %3632 = vmatprep.subr.bf16.mxu1 %v4960_v22  ;;  %v639_v21 = vld [vmem:[#allocation5 + $0xfe0] sm:$0xff]  ;;  %v636_v22 = vld [vmem:[#allocation5 + $0xfc8] sm:$0xff] }
 0x13d   :  { %v5014_v27 = vcombine.high %v635_v20, %v639_v21  ;;  %v5013_v34 = vcombine.low %v635_v20, %v639_v21  ;;  %v166_v20 = vld [vmem:[#allocation5 + $0x118] sm:$0xff] }
 0x13e   :  { %v170_v21 = vld [vmem:[#allocation5 + $0x138] sm:$0xff] }
 0x13f   :  { %3421 = vmatpush1.bf16.msra.mxu0 %v4957_v28  ;;  %3633 = vmatpush1.bf16.msra.mxu1 %v4959_v30  ;;  %v5016_v28 = vcombine.high %v636_v22, %v640_v23  ;;  %v133_v30 = vld [vmem:[#allocation5 + $0x10] sm:$0xff] }
 0x140   :  { %3422 = vmatprep.subr.bf16.mxu0 %v4966_v31  ;;  %3634 = vmatprep.subr.bf16.mxu1 %v4968_v32  ;;  %v137_v31 = vld [vmem:[#allocation5 + $0x30] sm:$0xff]  ;;  %v134_v32 = vld [vmem:[#allocation5 + $0x18] sm:$0xff] }
 0x143   :  { %3423 = vmatpush1.bf16.msra.mxu0 %v4965_v39  ;;  %3635 = vmatpush1.bf16.msra.mxu1 %v4967_v41  ;;  %v5015_v39 = vcombine.low %v636_v22, %v640_v23  ;;  %v4514_v41 = vcombine.high %v133_v30, %v137_v31  ;;  %v4539_v23 = vcombine.low %v158_v10, %v162_v11 }
 0x144   :  { %3424 = vmatprep.subr.bf16.mxu0 %v4974_v42  ;;  %3636 = vmatprep.subr.bf16.mxu1 %v4976_v43  ;;  %v4516_v42 = vcombine.high %v134_v32, %v138_v33  ;;  %v141_v43 = vld [vmem:[#allocation5 + $0x50] sm:$0xff] }
 0x145   :  { %v4522_v54 = vcombine.high %v141_v43, %v145_v44 }
 0x147   :  { %3425 = vmatpush1.bf16.msra.mxu0 %v4973_v50  ;;  %3637 = vmatpush1.bf16.msra.mxu1 %v4975_v51  ;;  %v106_v50 = vld [vmem:[#allocation2 + $0xb8] sm:$0xff] }
 0x148   :  { %3426 = vmatprep.subr.bf16.mxu0 %v4982_v52  ;;  %3638 = vmatprep.subr.bf16.mxu1 %v4984_v53  ;;  %v114_v51 = vld [vmem:[#allocation2 + $0xf8] sm:$0xff]  ;;  %v4513_v52 = vcombine.low %v133_v30, %v137_v31  ;;  %v4515_v53 = vcombine.low %v134_v32, %v138_v33  ;;  %v4547_v33 = vcombine.low %v166_v20, %v170_v21 }
 0x149   :  { %v5528_v56 = vpack.c.bf16 %v114_v51, %v106_v50  ;;  %v174_v30 = vld [vmem:[#allocation5 + $0x158] sm:$0xff]  ;;  %v193_v50 = vld [vmem:[#allocation5 + $0x1f0] sm:$0xff] }
 0x14a   :  { %v178_v31 = vld [vmem:[#allocation5 + $0x178] sm:$0xff] }
 0x14b   :  { %3427 = vmatpush1.bf16.msra.mxu0 %v4981_v59  ;;  %3639 = vmatpush1.bf16.msra.mxu1 %v4983_v60  ;;  %v153_v59 = vld [vmem:[#allocation5 + $0xb0] sm:$0xff]  ;;  %v150_v60 = vld [vmem:[#allocation5 + $0x98] sm:$0xff]  ;;  %v4556_v36 = vcombine.high %v174_v30, %v178_v31 }
 0x14c   :  { %3428 = vmatprep.subr.bf16.mxu0 %v4990_v62  ;;  %3640 = vmatprep.subr.bf16.mxu1 %v4992_v63  ;;  %v154_v62 = vld [vmem:[#allocation5 + $0xb8] sm:$0xff]  ;;  %v4521_v63 = vcombine.low %v141_v43, %v145_v44  ;;  %v4530_v4 = vcombine.high %v149_v57, %v153_v59  ;;  %v4529_v12 = vcombine.low %v149_v57, %v153_v59  ;;  %v197_v59 = vld [vmem:[#allocation5 + $0x210] sm:$0xff] }
 0x14d   :  { %v4531_v13 = vcombine.low %v150_v60, %v154_v62  ;;  %v4555_v44 = vcombine.low %v174_v30, %v178_v31  ;;  %v190_v51 = vld [vmem:[#allocation5 + $0x1d8] sm:$0xff] }
 0x14e   :  { %v226_v30 = vld [vmem:[#allocation5 + $0x2f8] sm:$0xff] }
 0x14f   :  { %3429 = vmatpush1.bf16.msra.mxu0 %v4989_v5  ;;  %3641 = vmatpush1.bf16.msra.mxu1 %v4991_v7  ;;  %v4532_v5 = vcombine.high %v150_v60, %v154_v62  ;;  %v157_v7 = vld [vmem:[#allocation5 + $0xd0] sm:$0xff]  ;;  %v198_v62 = vld [vmem:[#allocation5 + $0x218] sm:$0xff] }
 0x150   :  { %3430 = vmatprep.subr.bf16.mxu0 %v4998_v8  ;;  %3642 = vmatprep.subr.bf16.mxu1 %v5000_v9  ;;  %v161_v8 = vld [vmem:[#allocation5 + $0xf0] sm:$0xff]  ;;  %v5534_v9 = vpack.c.bf16 %v113_v1, %v105_v0  ;;  %v4569_v0 = vcombine.low %v189_v49, %v193_v50 }
 0x151   :  { %v4537_v22 = vcombine.low %v157_v7, %v161_v8  ;;  %v201_v60 = vld [vmem:[#allocation5 + $0x230] sm:$0xff] }
 0x153   :  { %3431 = vmatpush1.bf16.msra.mxu0 %v4997_v16  ;;  %3643 = vmatpush1.bf16.msra.mxu1 %v4999_v17  ;;  %v4538_v16 = vcombine.high %v157_v7, %v161_v8  ;;  %v4540_v17 = vcombine.high %v158_v10, %v162_v11  ;;  %v209_v7 = vld [vmem:[#allocation5 + $0x270] sm:$0xff]  ;;  %v206_v8 = vld [vmem:[#allocation5 + $0x258] sm:$0xff]  ;;  %v4577_v11 = vcombine.low %v197_v59, %v201_v60 }
 0x154   :  { %3432 = vmatprep.subr.bf16.mxu0 %v5006_v18  ;;  %3644 = vmatprep.subr.bf16.mxu1 %v5008_v19  ;;  %v165_v18 = vld [vmem:[#allocation5 + $0x110] sm:$0xff]  ;;  %v210_v10 = vld [vmem:[#allocation5 + $0x278] sm:$0xff] }
 0x155   :  { %v169_v19 = vld [vmem:[#allocation5 + $0x130] sm:$0xff] }
 0x156   :  { %v4545_v32 = vcombine.low %v165_v18, %v169_v19 }
 0x157   :  { %3433 = vmatpush1.bf16.msra.mxu0 %v5005_v24  ;;  %3645 = vmatpush1.bf16.msra.mxu1 %v5007_v26  ;;  %v4546_v24 = vcombine.high %v165_v18, %v169_v19  ;;  %v4548_v26 = vcombine.high %v166_v20, %v170_v21  ;;  %v217_v18 = vld [vmem:[#allocation5 + $0x2b0] sm:$0xff]  ;;  %v214_v19 = vld [vmem:[#allocation5 + $0x298] sm:$0xff] }
 0x158   :  { %3434 = vmatprep.subr.bf16.mxu0 %v5014_v27  ;;  %3646 = vmatprep.subr.bf16.mxu1 %v5016_v28  ;;  %v173_v27 = vld [vmem:[#allocation5 + $0x150] sm:$0xff]  ;;  %v218_v20 = vld [vmem:[#allocation5 + $0x2b8] sm:$0xff] }
 0x159   :  { %v177_v28 = vld [vmem:[#allocation5 + $0x170] sm:$0xff] }
 0x15a   :  { %v4553_v43 = vcombine.low %v173_v27, %v177_v28 }
 0x15b   :  { %3435 = vmatpush1.bf16.msra.mxu0 %v5013_v34  ;;  %3647 = vmatpush1.bf16.msra.mxu1 %v5015_v39  ;;  %v4554_v34 = vcombine.high %v173_v27, %v177_v28  ;;  %v185_v39 = vld [vmem:[#allocation5 + $0x1b0] sm:$0xff]  ;;  %v222_v28 = vld [vmem:[#allocation5 + $0x2d8] sm:$0xff] }
 0x15c   :  { %3669 = vmatprep.subr.bf16.mxu0 %v4514_v41  ;;  %3881 = vmatprep.subr.bf16.mxu1 %v4516_v42  ;;  %v182_v41 = vld [vmem:[#allocation5 + $0x198] sm:$0xff]  ;;  %v4562_v45 = vcombine.high %v181_v37, %v185_v39  ;;  %v225_v27 = vld [vmem:[#allocation5 + $0x2f0] sm:$0xff] }
 0x15d   :  { %v186_v42 = vld [vmem:[#allocation5 + $0x1b8] sm:$0xff] }
 0x15e   :  { %3437 = vmatmul.mubr.bf16.vlgmr.msra.gmra.mrb[0].mxu0 %v5526_v48  ;;  %3649 = vmatmul.mubr.bf16.vlgmr.msra.gmra.mrb[0].mxu1 %v5526_v48 }
 0x15f   :  { %3670 = vmatpush1.bf16.msra.mxu0 %v4513_v52  ;;  %3882 = vmatpush1.bf16.msra.mxu1 %v4515_v53  ;;  %v194_v52 = vld [vmem:[#allocation5 + $0x1f8] sm:$0xff]  ;;  %v4561_v53 = vcombine.low %v181_v37, %v185_v39  ;;  %v233_v37 = vld [vmem:[#allocation5 + $0x330] sm:$0xff] }
 0x160   :  { %3671 = vmatprep.subr.bf16.mxu0 %v4522_v54  ;;  %3883 = vmatprep.subr.bf16.mxu1 %v4524_v55  ;;  %v4563_v54 = vcombine.low %v182_v41, %v186_v42  ;;  %v4570_v55 = vcombine.high %v189_v49, %v193_v50  ;;  %v4572_v57 = vcombine.high %v190_v51, %v194_v52  ;;  %v230_v39 = vld [vmem:[#allocation5 + $0x318] sm:$0xff]  ;;  %v241_v49 = vld [vmem:[#allocation5 + $0x370] sm:$0xff] }
 0x161   :  { %3446 = vmatprep.mubr.bf16.mxu0 %v5528_v56  ;;  %3658 = vmatprep.mubr.bf16.mxu1 %v5528_v56  ;;  %v4571_v1 = vcombine.low %v190_v51, %v194_v52  ;;  %v238_v50 = vld [vmem:[#allocation5 + $0x358] sm:$0xff] }
 0x162   :  { %v242_v51 = vld [vmem:[#allocation5 + $0x378] sm:$0xff] }
 0x163   :  { %3672 = vmatpush1.bf16.msra.mxu0 %v4521_v63  ;;  %3884 = vmatpush1.bf16.msra.mxu1 %v4523_v2  ;;  %v202_v63 = vld [vmem:[#allocation5 + $0x238] sm:$0xff]  ;;  %v4578_v2 = vcombine.high %v197_v59, %v201_v60  ;;  %v249_v59 = vld [vmem:[#allocation5 + $0x3b0] sm:$0xff] }
 0x164   :  { %3673 = vmatprep.subr.bf16.mxu0 %v4530_v4  ;;  %3885 = vmatprep.subr.bf16.mxu1 %v4532_v5  ;;  %v4580_v4 = vcombine.high %v198_v62, %v202_v63  ;;  %v205_v5 = vld [vmem:[#allocation5 + $0x250] sm:$0xff]  ;;  %v246_v60 = vld [vmem:[#allocation5 + $0x398] sm:$0xff] }
 0x165   :  { %v4585_v21 = vcombine.low %v205_v5, %v209_v7 }
 0x166   :  { %3447 = vmatmul.mubr.bf16.gmra.mrb[4].mxu0 %v5534_v9  ;;  %3659 = vmatmul.mubr.bf16.gmra.mrb[4].mxu1 %v5534_v9 }
 0x167   :  { %3674 = vmatpush1.bf16.msra.mxu0 %v4529_v12  ;;  %3886 = vmatpush1.bf16.msra.mxu1 %v4531_v13  ;;  %v4579_v12 = vcombine.low %v198_v62, %v202_v63  ;;  %v4586_v13 = vcombine.high %v205_v5, %v209_v7  ;;  %v250_v62 = vld [vmem:[#allocation5 + $0x3b8] sm:$0xff]  ;;  %v257_v5 = vld [vmem:[#allocation5 + $0x3f0] sm:$0xff] }
 0x168   :  { %3675 = vmatprep.subr.bf16.mxu0 %v4538_v16  ;;  %3887 = vmatprep.subr.bf16.mxu1 %v4540_v17  ;;  %v4588_v16 = vcombine.high %v206_v8, %v210_v10  ;;  %v213_v17 = vld [vmem:[#allocation5 + $0x290] sm:$0xff]  ;;  %v254_v7 = vld [vmem:[#allocation5 + $0x3d8] sm:$0xff] }
 0x169   :  { %3701 = vmatprep.mubr.bf16.mxu0 %v5474_v58  ;;  %3913 = vmatprep.mubr.bf16.mxu1 %v5474_v58  ;;  %v4564_v58 = vcombine.high %v182_v41, %v186_v42  ;;  %v4593_v31 = vcombine.low %v213_v17, %v217_v18  ;;  %v234_v41 = vld [vmem:[#allocation5 + $0x338] sm:$0xff] }
 0x16b   :  { %3676 = vmatpush1.bf16.msra.mxu0 %v4537_v22  ;;  %3888 = vmatpush1.bf16.msra.mxu1 %v4539_v23  ;;  %v4587_v22 = vcombine.low %v206_v8, %v210_v10  ;;  %v4594_v23 = vcombine.high %v213_v17, %v217_v18  ;;  %v258_v8 = vld [vmem:[#allocation5 + $0x3f8] sm:$0xff]  ;;  %v265_v17 = vld [vmem:[#allocation5 + $0x430] sm:$0xff] }
 0x16c   :  { %3677 = vmatprep.subr.bf16.mxu0 %v4546_v24  ;;  %3889 = vmatprep.subr.bf16.mxu1 %v4548_v26  ;;  %v4596_v24 = vcombine.high %v214_v19, %v218_v20  ;;  %v221_v26 = vld [vmem:[#allocation5 + $0x2d0] sm:$0xff]  ;;  %v262_v18 = vld [vmem:[#allocation5 + $0x418] sm:$0xff] }
 0x16d   :  { %v4601_v42 = vcombine.low %v221_v26, %v225_v27 }
 0x16f   :  { %3678 = vmatpush1.bf16.msra.mxu0 %v4545_v32  ;;  %3890 = vmatpush1.bf16.msra.mxu1 %v4547_v33  ;;  %v4595_v32 = vcombine.low %v214_v19, %v218_v20  ;;  %v4602_v33 = vcombine.high %v221_v26, %v225_v27  ;;  %v266_v19 = vld [vmem:[#allocation5 + $0x438] sm:$0xff]  ;;  %v273_v26 = vld [vmem:[#allocation5 + $0x470] sm:$0xff] }
 0x170   :  { %3679 = vmatprep.subr.bf16.mxu0 %v4554_v34  ;;  %3891 = vmatprep.subr.bf16.mxu1 %v4556_v36  ;;  %v4604_v34 = vcombine.high %v222_v28, %v226_v30  ;;  %v229_v36 = vld [vmem:[#allocation5 + $0x310] sm:$0xff]  ;;  %v270_v27 = vld [vmem:[#allocation5 + $0x458] sm:$0xff] }
 0x171   :  { %v4609_v52 = vcombine.low %v229_v36, %v233_v37 }
 0x173   :  { %3680 = vmatpush1.bf16.msra.mxu0 %v4553_v43  ;;  %3892 = vmatpush1.bf16.msra.mxu1 %v4555_v44  ;;  %v4603_v43 = vcombine.low %v222_v28, %v226_v30  ;;  %v4610_v44 = vcombine.high %v229_v36, %v233_v37  ;;  %v274_v28 = vld [vmem:[#allocation5 + $0x478] sm:$0xff]  ;;  %v281_v36 = vld [vmem:[#allocation5 + $0x4b0] sm:$0xff] }
 0x174   :  { %3681 = vmatprep.subr.bf16.mxu0 %v4562_v45  ;;  %3893 = vmatprep.subr.bf16.mxu1 %v4564_v58  ;;  %v4612_v45 = vcombine.high %v230_v39, %v234_v41  ;;  %v237_v58 = vld [vmem:[#allocation5 + $0x350] sm:$0xff]  ;;  %v278_v37 = vld [vmem:[#allocation5 + $0x498] sm:$0xff] }
 0x175   :  { %v4617_v63 = vcombine.low %v237_v58, %v241_v49 }
 0x177   :  { %3682 = vmatpush1.bf16.msra.mxu0 %v4561_v53  ;;  %3894 = vmatpush1.bf16.msra.mxu1 %v4563_v54  ;;  %v4611_v53 = vcombine.low %v230_v39, %v234_v41  ;;  %v4618_v54 = vcombine.high %v237_v58, %v241_v49  ;;  %v282_v39 = vld [vmem:[#allocation5 + $0x4b8] sm:$0xff]  ;;  %v289_v58 = vld [vmem:[#allocation5 + $0x4f0] sm:$0xff] }
 0x178   :  { %3683 = vmatprep.subr.bf16.mxu0 %v4570_v55  ;;  %3895 = vmatprep.subr.bf16.mxu1 %v4572_v57  ;;  %v4620_v55 = vcombine.high %v238_v50, %v242_v51  ;;  %v245_v57 = vld [vmem:[#allocation5 + $0x390] sm:$0xff]  ;;  %v286_v49 = vld [vmem:[#allocation5 + $0x4d8] sm:$0xff] }
 0x179   :  { %v4625_v10 = vcombine.low %v245_v57, %v249_v59 }
 0x17b   :  { %3684 = vmatpush1.bf16.msra.mxu0 %v4569_v0  ;;  %3896 = vmatpush1.bf16.msra.mxu1 %v4571_v1  ;;  %v4619_v0 = vcombine.low %v238_v50, %v242_v51  ;;  %v4626_v1 = vcombine.high %v245_v57, %v249_v59  ;;  %v290_v50 = vld [vmem:[#allocation5 + $0x4f8] sm:$0xff] }
 0x17c   :  { %3685 = vmatprep.subr.bf16.mxu0 %v4578_v2  ;;  %3897 = vmatprep.subr.bf16.mxu1 %v4580_v4  ;;  %v4628_v2 = vcombine.high %v246_v60, %v250_v62  ;;  %v253_v4 = vld [vmem:[#allocation5 + $0x3d0] sm:$0xff]  ;;  %v294_v57 = vld [vmem:[#allocation5 + $0x518] sm:$0xff] }
 0x17d   :  { %v4633_v20 = vcombine.low %v253_v4, %v257_v5  ;;  %v298_v59 = vld [vmem:[#allocation5 + $0x538] sm:$0xff] }
 0x17f   :  { %3686 = vmatpush1.bf16.msra.mxu0 %v4577_v11  ;;  %3898 = vmatpush1.bf16.msra.mxu1 %v4579_v12  ;;  %v4627_v11 = vcombine.low %v246_v60, %v250_v62  ;;  %v4634_v12 = vcombine.high %v253_v4, %v257_v5  ;;  %v306_v4 = vld [vmem:[#allocation5 + $0x578] sm:$0xff] }
 0x180   :  { %3687 = vmatprep.subr.bf16.mxu0 %v4586_v13  ;;  %3899 = vmatprep.subr.bf16.mxu1 %v4588_v16  ;;  %v4636_v13 = vcombine.high %v254_v7, %v258_v8  ;;  %v261_v16 = vld [vmem:[#allocation5 + $0x410] sm:$0xff] }
 0x181   :  { %v4641_v30 = vcombine.low %v261_v16, %v265_v17 }
 0x183   :  { %3688 = vmatpush1.bf16.msra.mxu0 %v4585_v21  ;;  %3900 = vmatpush1.bf16.msra.mxu1 %v4587_v22  ;;  %v4635_v21 = vcombine.low %v254_v7, %v258_v8  ;;  %v4642_v22 = vcombine.high %v261_v16, %v265_v17  ;;  %v4675_v7 = vcombine.low %v294_v57, %v298_v59 }
 0x184   :  { %3689 = vmatprep.subr.bf16.mxu0 %v4594_v23  ;;  %3901 = vmatprep.subr.bf16.mxu1 %v4596_v24  ;;  %v4644_v23 = vcombine.high %v262_v18, %v266_v19  ;;  %v269_v24 = vld [vmem:[#allocation5 + $0x450] sm:$0xff] }
 0x185   :  { %v4649_v41 = vcombine.low %v269_v24, %v273_v26 }
 0x187   :  { %3690 = vmatpush1.bf16.msra.mxu0 %v4593_v31  ;;  %3902 = vmatpush1.bf16.msra.mxu1 %v4595_v32  ;;  %v4643_v31 = vcombine.low %v262_v18, %v266_v19  ;;  %v4650_v32 = vcombine.high %v269_v24, %v273_v26  ;;  %v317_v19 = vld [vmem:[#allocation5 + $0x5d0] sm:$0xff] }
 0x188   :  { %3691 = vmatprep.subr.bf16.mxu0 %v4602_v33  ;;  %3903 = vmatprep.subr.bf16.mxu1 %v4604_v34  ;;  %v4652_v33 = vcombine.high %v270_v27, %v274_v28  ;;  %v277_v34 = vld [vmem:[#allocation5 + $0x490] sm:$0xff] }
 0x189   :  { %v4657_v51 = vcombine.low %v277_v34, %v281_v36 }
 0x18b   :  { %3692 = vmatpush1.bf16.msra.mxu0 %v4601_v42  ;;  %3904 = vmatpush1.bf16.msra.mxu1 %v4603_v43  ;;  %v4651_v42 = vcombine.low %v270_v27, %v274_v28  ;;  %v4658_v43 = vcombine.high %v277_v34, %v281_v36  ;;  %v325_v28 = vld [vmem:[#allocation5 + $0x610] sm:$0xff] }
 0x18c   :  { %3693 = vmatprep.subr.bf16.mxu0 %v4610_v44  ;;  %3905 = vmatprep.subr.bf16.mxu1 %v4612_v45  ;;  %v4660_v44 = vcombine.high %v278_v37, %v282_v39  ;;  %v285_v45 = vld [vmem:[#allocation5 + $0x4d0] sm:$0xff] }
 0x18d   :  { %v4665_v60 = vcombine.low %v285_v45, %v289_v58 }
 0x18f   :  { %3694 = vmatpush1.bf16.msra.mxu0 %v4609_v52  ;;  %3906 = vmatpush1.bf16.msra.mxu1 %v4611_v53  ;;  %v4666_v52 = vcombine.high %v285_v45, %v289_v58  ;;  %v4668_v53 = vcombine.high %v286_v49, %v290_v50 }
 0x190   :  { %3695 = vmatprep.subr.bf16.mxu0 %v4618_v54  ;;  %3907 = vmatprep.subr.bf16.mxu1 %v4620_v55  ;;  %v293_v54 = vld [vmem:[#allocation5 + $0x510] sm:$0xff] }
 0x191   :  { %v297_v55 = vld [vmem:[#allocation5 + $0x530] sm:$0xff] }
 0x192   :  { %v4674_v62 = vcombine.high %v293_v54, %v297_v55  ;;  %v4673_v5 = vcombine.low %v293_v54, %v297_v55 }
 0x193   :  { %3696 = vmatpush1.bf16.msra.mxu0 %v4617_v63  ;;  %3908 = vmatpush1.bf16.msra.mxu1 %v4619_v0  ;;  %v4676_v63 = vcombine.high %v294_v57, %v298_v59  ;;  %v301_v0 = vld [vmem:[#allocation5 + $0x550] sm:$0xff] }
 0x194   :  { %3697 = vmatprep.subr.bf16.mxu0 %v4626_v1  ;;  %3909 = vmatprep.subr.bf16.mxu1 %v4628_v2  ;;  %v305_v1 = vld [vmem:[#allocation5 + $0x570] sm:$0xff]  ;;  %v302_v2 = vld [vmem:[#allocation5 + $0x558] sm:$0xff] }
 0x195   :  { %v4684_v8 = vcombine.high %v302_v2, %v306_v4  ;;  %v4681_v16 = vcombine.low %v301_v0, %v305_v1  ;;  %v4683_v17 = vcombine.low %v302_v2, %v306_v4  ;;  %v349_v59 = vld [vmem:[#allocation5 + $0x6d0] sm:$0xff] }
 0x196   :  { %v357_v4 = vld [vmem:[#allocation5 + $0x710] sm:$0xff] }
 0x197   :  { %3698 = vmatpush1.bf16.msra.mxu0 %v4625_v10  ;;  %3910 = vmatpush1.bf16.msra.mxu1 %v4627_v11  ;;  %v309_v10 = vld [vmem:[#allocation5 + $0x590] sm:$0xff] }
 0x198   :  { %3699 = vmatprep.subr.bf16.mxu0 %v4634_v12  ;;  %3911 = vmatprep.subr.bf16.mxu1 %v4636_v13  ;;  %v313_v11 = vld [vmem:[#allocation5 + $0x5b0] sm:$0xff]  ;;  %v310_v12 = vld [vmem:[#allocation5 + $0x598] sm:$0xff] }
 0x199   :  { %v314_v13 = vld [vmem:[#allocation5 + $0x5b8] sm:$0xff]  ;;  %v4690_v18 = vcombine.high %v309_v10, %v313_v11 }
 0x19a   :  { %v4691_v24 = vcombine.low %v310_v12, %v314_v13 }
 0x19b   :  { %3700 = vmatpush1.bf16.msra.mxu0 %v4633_v20  ;;  %3912 = vmatpush1.bf16.msra.mxu1 %v4635_v21  ;;  %v321_v20 = vld [vmem:[#allocation5 + $0x5f0] sm:$0xff]  ;;  %v318_v21 = vld [vmem:[#allocation5 + $0x5d8] sm:$0xff] }
 0x19c   :  { %3722 = vmatprep.subr.bf16.mxu0 %v4642_v22  ;;  %3934 = vmatprep.subr.bf16.mxu1 %v4644_v23  ;;  %v322_v22 = vld [vmem:[#allocation5 + $0x5f8] sm:$0xff]  ;;  %v4689_v23 = vcombine.low %v309_v10, %v313_v11  ;;  %v4698_v26 = vcombine.high %v317_v19, %v321_v20 }
 0x19d   :  { %v4700_v27 = vcombine.high %v318_v21, %v322_v22  ;;  %v4699_v34 = vcombine.low %v318_v21, %v322_v22  ;;  %v373_v22 = vld [vmem:[#allocation5 + $0x790] sm:$0xff] }
 0x19e   :  { %3702 = vmatmul.mubr.bf16.vlgmr.msra.gmra.mrb[8].mxu0 %v5478_v15  ;;  %3914 = vmatmul.mubr.bf16.vlgmr.msra.gmra.mrb[8].mxu1 %v5478_v15  ;;  %v4659_v15 = vcombine.low %v278_v37, %v282_v39  ;;  %v333_v39 = vld [vmem:[#allocation5 + $0x650] sm:$0xff] }
 0x19f   :  { %3723 = vmatpush1.bf16.msra.mxu0 %v4641_v30  ;;  %3935 = vmatpush1.bf16.msra.mxu1 %v4643_v31  ;;  %v329_v30 = vld [vmem:[#allocation5 + $0x630] sm:$0xff]  ;;  %v326_v31 = vld [vmem:[#allocation5 + $0x618] sm:$0xff] }
 0x1a0   :  { %3724 = vmatprep.subr.bf16.mxu0 %v4650_v32  ;;  %3936 = vmatprep.subr.bf16.mxu1 %v4652_v33  ;;  %v330_v32 = vld [vmem:[#allocation5 + $0x638] sm:$0xff]  ;;  %v4697_v33 = vcombine.low %v317_v19, %v321_v20  ;;  %v4706_v36 = vcombine.high %v325_v28, %v329_v30 }
 0x1a1   :  { %3711 = vmatprep.mubr.bf16.mxu0 %v5480_v25  ;;  %3923 = vmatprep.mubr.bf16.mxu1 %v5480_v25  ;;  %v4667_v25 = vcombine.low %v286_v49, %v290_v50  ;;  %v4708_v37 = vcombine.high %v326_v31, %v330_v32  ;;  %v4707_v45 = vcombine.low %v326_v31, %v330_v32  ;;  %v341_v50 = vld [vmem:[#allocation5 + $0x690] sm:$0xff] }
 0x1a2   :  { %v381_v32 = vld [vmem:[#allocation5 + $0x7d0] sm:$0xff] }
 0x1a3   :  { %3725 = vmatpush1.bf16.msra.mxu0 %v4649_v41  ;;  %3937 = vmatpush1.bf16.msra.mxu1 %v4651_v42  ;;  %v337_v41 = vld [vmem:[#allocation5 + $0x670] sm:$0xff]  ;;  %v334_v42 = vld [vmem:[#allocation5 + $0x658] sm:$0xff] }
 0x1a4   :  { %3726 = vmatprep.subr.bf16.mxu0 %v4658_v43  ;;  %3938 = vmatprep.subr.bf16.mxu1 %v4660_v44  ;;  %v338_v43 = vld [vmem:[#allocation5 + $0x678] sm:$0xff]  ;;  %v4705_v44 = vcombine.low %v325_v28, %v329_v30  ;;  %v4714_v58 = vcombine.high %v333_v39, %v337_v41 }
 0x1a5   :  { %v4716_v49 = vcombine.high %v334_v42, %v338_v43  ;;  %v4715_v54 = vcombine.low %v334_v42, %v338_v43  ;;  %v389_v43 = vld [vmem:[#allocation5 + $0x810] sm:$0xff] }
 0x1a6   :  { %3712 = vmatmul.mubr.bf16.gmra.mrb[12].mxu0 %v5486_v38  ;;  %3924 = vmatmul.mubr.bf16.gmra.mrb[12].mxu1 %v5486_v38  ;;  %v4682_v38 = vcombine.high %v301_v0, %v305_v1 }
 0x1a7   :  { %3727 = vmatpush1.bf16.msra.mxu0 %v4657_v51  ;;  %3939 = vmatpush1.bf16.msra.mxu1 %v4659_v15  ;;  %v345_v51 = vld [vmem:[#allocation5 + $0x6b0] sm:$0xff]  ;;  %v342_v15 = vld [vmem:[#allocation5 + $0x698] sm:$0xff] }
 0x1a8   :  { %3728 = vmatprep.subr.bf16.mxu0 %v4666_v52  ;;  %3940 = vmatprep.subr.bf16.mxu1 %v4668_v53  ;;  %v346_v52 = vld [vmem:[#allocation5 + $0x6b8] sm:$0xff]  ;;  %v4713_v53 = vcombine.low %v333_v39, %v337_v41  ;;  %v4722_v55 = vcombine.high %v341_v50, %v345_v51 }
 0x1a9   :  { %3754 = vmatprep.mubr.bf16.mxu0 %v5488_v47  ;;  %3966 = vmatprep.mubr.bf16.mxu1 %v5488_v47  ;;  %v4692_v47 = vcombine.high %v310_v12, %v314_v13  ;;  %v4724_v57 = vcombine.high %v342_v15, %v346_v52  ;;  %v4723_v0 = vcombine.low %v342_v15, %v346_v52  ;;  %v365_v13 = vld [vmem:[#allocation5 + $0x750] sm:$0xff] }
 0x1aa   :  { %v397_v52 = vld [vmem:[#allocation5 + $0x850] sm:$0xff] }
 0x1ab   :  { %3729 = vmatpush1.bf16.msra.mxu0 %v4665_v60  ;;  %3941 = vmatpush1.bf16.msra.mxu1 %v4667_v25  ;;  %v353_v60 = vld [vmem:[#allocation5 + $0x6f0] sm:$0xff]  ;;  %v350_v25 = vld [vmem:[#allocation5 + $0x6d8] sm:$0xff] }
 0x1ac   :  { %3730 = vmatprep.subr.bf16.mxu0 %v4674_v62  ;;  %3942 = vmatprep.subr.bf16.mxu1 %v4676_v63  ;;  %v354_v62 = vld [vmem:[#allocation5 + $0x6f8] sm:$0xff]  ;;  %v4721_v63 = vcombine.low %v341_v50, %v345_v51  ;;  %v4730_v1 = vcombine.high %v349_v59, %v353_v60 }
 0x1ad   :  { %v4732_v2 = vcombine.high %v350_v25, %v354_v62  ;;  %v4731_v10 = vcombine.low %v350_v25, %v354_v62  ;;  %v405_v62 = vld [vmem:[#allocation5 + $0x890] sm:$0xff] }
 0x1af   :  { %3731 = vmatpush1.bf16.msra.mxu0 %v4673_v5  ;;  %3943 = vmatpush1.bf16.msra.mxu1 %v4675_v7  ;;  %v361_v5 = vld [vmem:[#allocation5 + $0x730] sm:$0xff]  ;;  %v358_v7 = vld [vmem:[#allocation5 + $0x718] sm:$0xff] }
 0x1b0   :  { %3732 = vmatprep.subr.bf16.mxu0 %v4682_v38  ;;  %3944 = vmatprep.subr.bf16.mxu1 %v4684_v8  ;;  %v362_v38 = vld [vmem:[#allocation5 + $0x738] sm:$0xff]  ;;  %v4729_v8 = vcombine.low %v349_v59, %v353_v60  ;;  %v4738_v11 = vcombine.high %v357_v4, %v361_v5 }
 0x1b1   :  { %v4740_v12 = vcombine.high %v358_v7, %v362_v38  ;;  %v4739_v19 = vcombine.low %v358_v7, %v362_v38  ;;  %v413_v38 = vld [vmem:[#allocation5 + $0x8d0] sm:$0xff] }
 0x1b3   :  { %3733 = vmatpush1.bf16.msra.mxu0 %v4681_v16  ;;  %3945 = vmatpush1.bf16.msra.mxu1 %v4683_v17  ;;  %v369_v16 = vld [vmem:[#allocation5 + $0x770] sm:$0xff]  ;;  %v366_v17 = vld [vmem:[#allocation5 + $0x758] sm:$0xff] }
 0x1b4   :  { %3734 = vmatprep.subr.bf16.mxu0 %v4690_v18  ;;  %3946 = vmatprep.subr.bf16.mxu1 %v4692_v47  ;;  %v370_v18 = vld [vmem:[#allocation5 + $0x778] sm:$0xff]  ;;  %v4737_v47 = vcombine.low %v357_v4, %v361_v5  ;;  %v4746_v20 = vcombine.high %v365_v13, %v369_v16 }
 0x1b5   :  { %v4748_v21 = vcombine.high %v366_v17, %v370_v18  ;;  %v4747_v28 = vcombine.low %v366_v17, %v370_v18  ;;  %v421_v17 = vld [vmem:[#allocation5 + $0x910] sm:$0xff] }
 0x1b6   :  { %v425_v18 = vld [vmem:[#allocation5 + $0x930] sm:$0xff] }
 0x1b7   :  { %3735 = vmatpush1.bf16.msra.mxu0 %v4689_v23  ;;  %3947 = vmatpush1.bf16.msra.mxu1 %v4691_v24  ;;  %v377_v23 = vld [vmem:[#allocation5 + $0x7b0] sm:$0xff]  ;;  %v374_v24 = vld [vmem:[#allocation5 + $0x798] sm:$0xff] }
 0x1b8   :  { %3736 = vmatprep.subr.bf16.mxu0 %v4698_v26  ;;  %3948 = vmatprep.subr.bf16.mxu1 %v4700_v27  ;;  %v378_v26 = vld [vmem:[#allocation5 + $0x7b8] sm:$0xff]  ;;  %v4745_v27 = vcombine.low %v365_v13, %v369_v16  ;;  %v4754_v30 = vcombine.high %v373_v22, %v377_v23 }
 0x1b9   :  { %v4756_v31 = vcombine.high %v374_v24, %v378_v26  ;;  %v4755_v39 = vcombine.low %v374_v24, %v378_v26  ;;  %v433_v24 = vld [vmem:[#allocation5 + $0x970] sm:$0xff]  ;;  %v430_v26 = vld [vmem:[#allocation5 + $0x958] sm:$0xff] }
 0x1bb   :  { %3737 = vmatpush1.bf16.msra.mxu0 %v4697_v33  ;;  %3949 = vmatpush1.bf16.msra.mxu1 %v4699_v34  ;;  %v385_v33 = vld [vmem:[#allocation5 + $0x7f0] sm:$0xff]  ;;  %v382_v34 = vld [vmem:[#allocation5 + $0x7d8] sm:$0xff] }
 0x1bc   :  { %3738 = vmatprep.subr.bf16.mxu0 %v4706_v36  ;;  %3950 = vmatprep.subr.bf16.mxu1 %v4708_v37  ;;  %v386_v36 = vld [vmem:[#allocation5 + $0x7f8] sm:$0xff]  ;;  %v4753_v37 = vcombine.low %v373_v22, %v377_v23  ;;  %v4762_v41 = vcombine.high %v381_v32, %v385_v33  ;;  %v429_v23 = vld [vmem:[#allocation5 + $0x950] sm:$0xff] }
 0x1bd   :  { %v4764_v42 = vcombine.high %v382_v34, %v386_v36  ;;  %v4763_v50 = vcombine.low %v382_v34, %v386_v36  ;;  %v438_v34 = vld [vmem:[#allocation5 + $0x998] sm:$0xff] }
 0x1be   :  { %v442_v36 = vld [vmem:[#allocation5 + $0x9b8] sm:$0xff] }
 0x1bf   :  { %3739 = vmatpush1.bf16.msra.mxu0 %v4705_v44  ;;  %3951 = vmatpush1.bf16.msra.mxu1 %v4707_v45  ;;  %v393_v44 = vld [vmem:[#allocation5 + $0x830] sm:$0xff]  ;;  %v390_v45 = vld [vmem:[#allocation5 + $0x818] sm:$0xff] }
 0x1c0   :  { %3740 = vmatprep.subr.bf16.mxu0 %v4714_v58  ;;  %3952 = vmatprep.subr.bf16.mxu1 %v4716_v49  ;;  %v394_v58 = vld [vmem:[#allocation5 + $0x838] sm:$0xff]  ;;  %v4761_v49 = vcombine.low %v381_v32, %v385_v33  ;;  %v4770_v51 = vcombine.high %v389_v43, %v393_v44  ;;  %v437_v32 = vld [vmem:[#allocation5 + $0x990] sm:$0xff] }
 0x1c1   :  { %v4772_v15 = vcombine.high %v390_v45, %v394_v58  ;;  %v4771_v59 = vcombine.low %v390_v45, %v394_v58  ;;  %v441_v33 = vld [vmem:[#allocation5 + $0x9b0] sm:$0xff]  ;;  %v450_v45 = vld [vmem:[#allocation5 + $0x9f8] sm:$0xff] }
 0x1c2   :  { %v4817_v58 = vcombine.low %v437_v32, %v441_v33 }
 0x1c3   :  { %3741 = vmatpush1.bf16.msra.mxu0 %v4713_v53  ;;  %3953 = vmatpush1.bf16.msra.mxu1 %v4715_v54  ;;  %v401_v53 = vld [vmem:[#allocation5 + $0x870] sm:$0xff]  ;;  %v398_v54 = vld [vmem:[#allocation5 + $0x858] sm:$0xff] }
 0x1c4   :  { %3742 = vmatprep.subr.bf16.mxu0 %v4722_v55  ;;  %3954 = vmatprep.subr.bf16.mxu1 %v4724_v57  ;;  %v402_v55 = vld [vmem:[#allocation5 + $0x878] sm:$0xff]  ;;  %v4769_v57 = vcombine.low %v389_v43, %v393_v44  ;;  %v4778_v60 = vcombine.high %v397_v52, %v401_v53  ;;  %v449_v43 = vld [vmem:[#allocation5 + $0x9f0] sm:$0xff] }
 0x1c5   :  { %v4780_v25 = vcombine.high %v398_v54, %v402_v55  ;;  %v4779_v4 = vcombine.low %v398_v54, %v402_v55  ;;  %v446_v44 = vld [vmem:[#allocation5 + $0x9d8] sm:$0xff] }
 0x1c6   :  { %v458_v54 = vld [vmem:[#allocation5 + $0xa38] sm:$0xff] }
 0x1c7   :  { %3743 = vmatpush1.bf16.msra.mxu0 %v4721_v63  ;;  %3955 = vmatpush1.bf16.msra.mxu1 %v4723_v0  ;;  %v409_v63 = vld [vmem:[#allocation5 + $0x8b0] sm:$0xff]  ;;  %v406_v0 = vld [vmem:[#allocation5 + $0x898] sm:$0xff] }
 0x1c8   :  { %3744 = vmatprep.subr.bf16.mxu0 %v4730_v1  ;;  %3956 = vmatprep.subr.bf16.mxu1 %v4732_v2  ;;  %v410_v1 = vld [vmem:[#allocation5 + $0x8b8] sm:$0xff]  ;;  %v4777_v2 = vcombine.low %v397_v52, %v401_v53  ;;  %v4786_v5 = vcombine.high %v405_v62, %v409_v63  ;;  %v457_v52 = vld [vmem:[#allocation5 + $0xa30] sm:$0xff] }
 0x1c9   :  { %v4788_v7 = vcombine.high %v406_v0, %v410_v1  ;;  %v454_v53 = vld [vmem:[#allocation5 + $0xa18] sm:$0xff] }
 0x1cb   :  { %3745 = vmatpush1.bf16.msra.mxu0 %v4729_v8  ;;  %3957 = vmatpush1.bf16.msra.mxu1 %v4731_v10  ;;  %v417_v8 = vld [vmem:[#allocation5 + $0x8f0] sm:$0xff]  ;;  %v414_v10 = vld [vmem:[#allocation5 + $0x8d8] sm:$0xff] }
 0x1cc   :  { %3746 = vmatprep.subr.bf16.mxu0 %v4738_v11  ;;  %3958 = vmatprep.subr.bf16.mxu1 %v4740_v12  ;;  %v418_v11 = vld [vmem:[#allocation5 + $0x8f8] sm:$0xff]  ;;  %v4785_v12 = vcombine.low %v405_v62, %v409_v63  ;;  %v4794_v13 = vcombine.high %v413_v38, %v417_v8  ;;  %v465_v62 = vld [vmem:[#allocation5 + $0xa70] sm:$0xff] }
 0x1cd   :  { %v4796_v16 = vcombine.high %v414_v10, %v418_v11  ;;  %v462_v63 = vld [vmem:[#allocation5 + $0xa58] sm:$0xff] }
 0x1cf   :  { %3747 = vmatpush1.bf16.msra.mxu0 %v4737_v47  ;;  %3959 = vmatpush1.bf16.msra.mxu1 %v4739_v19  ;;  %v422_v47 = vld [vmem:[#allocation5 + $0x918] sm:$0xff] }
 0x1d0   :  { %3748 = vmatprep.subr.bf16.mxu0 %v4746_v20  ;;  %3960 = vmatprep.subr.bf16.mxu1 %v4748_v21  ;;  %v426_v19 = vld [vmem:[#allocation5 + $0x938] sm:$0xff]  ;;  %v4793_v20 = vcombine.low %v413_v38, %v417_v8  ;;  %v4802_v21 = vcombine.high %v421_v17, %v425_v18  ;;  %v473_v38 = vld [vmem:[#allocation5 + $0xab0] sm:$0xff] }
 0x1d1   :  { %v4804_v22 = vcombine.high %v422_v47, %v426_v19  ;;  %v470_v8 = vld [vmem:[#allocation5 + $0xa98] sm:$0xff] }
 0x1d3   :  { %3749 = vmatpush1.bf16.msra.mxu0 %v4745_v27  ;;  %3961 = vmatpush1.bf16.msra.mxu1 %v4747_v28  ;;  %v434_v27 = vld [vmem:[#allocation5 + $0x978] sm:$0xff]  ;;  %v4801_v28 = vcombine.low %v421_v17, %v425_v18  ;;  %v481_v17 = vld [vmem:[#allocation5 + $0xaf0] sm:$0xff] }
 0x1d4   :  { %3750 = vmatprep.subr.bf16.mxu0 %v4754_v30  ;;  %3962 = vmatprep.subr.bf16.mxu1 %v4756_v31  ;;  %v4803_v30 = vcombine.low %v422_v47, %v426_v19  ;;  %v4812_v31 = vcombine.high %v430_v26, %v434_v27  ;;  %v478_v18 = vld [vmem:[#allocation5 + $0xad8] sm:$0xff] }
 0x1d5   :  { %v482_v47 = vld [vmem:[#allocation5 + $0xaf8] sm:$0xff] }
 0x1d7   :  { %3751 = vmatpush1.bf16.msra.mxu0 %v4753_v37  ;;  %3963 = vmatpush1.bf16.msra.mxu1 %v4755_v39  ;;  %v4809_v37 = vcombine.low %v429_v23, %v433_v24  ;;  %v4811_v39 = vcombine.low %v430_v26, %v434_v27  ;;  %v490_v26 = vld [vmem:[#allocation5 + $0xb38] sm:$0xff] }
 0x1d8   :  { %3752 = vmatprep.subr.bf16.mxu0 %v4762_v41  ;;  %3964 = vmatprep.subr.bf16.mxu1 %v4764_v42  ;;  %v4818_v41 = vcombine.high %v437_v32, %v441_v33  ;;  %v445_v42 = vld [vmem:[#allocation5 + $0x9d0] sm:$0xff]  ;;  %v494_v33 = vld [vmem:[#allocation5 + $0xb58] sm:$0xff] }
 0x1d9   :  { %v4825_v55 = vcombine.low %v445_v42, %v449_v43  ;;  %v497_v32 = vld [vmem:[#allocation5 + $0xb70] sm:$0xff] }
 0x1db   :  { %3753 = vmatpush1.bf16.msra.mxu0 %v4761_v49  ;;  %3965 = vmatpush1.bf16.msra.mxu1 %v4763_v50  ;;  %v4819_v49 = vcombine.low %v438_v34, %v442_v36  ;;  %v4826_v50 = vcombine.high %v445_v42, %v449_v43  ;;  %v505_v42 = vld [vmem:[#allocation5 + $0xbb0] sm:$0xff]  ;;  %v502_v43 = vld [vmem:[#allocation5 + $0xb98] sm:$0xff] }
 0x1dc   :  { %3775 = vmatprep.subr.bf16.mxu0 %v4770_v51  ;;  %3987 = vmatprep.subr.bf16.mxu1 %v4772_v15  ;;  %v4828_v51 = vcombine.high %v446_v44, %v450_v45  ;;  %v453_v15 = vld [vmem:[#allocation5 + $0xa10] sm:$0xff] }
 0x1de   :  { %3755 = vmatmul.mubr.bf16.vlgmr.msra.gmra.mrb[8].mxu0 %v5494_v35  ;;  %3967 = vmatmul.mubr.bf16.vlgmr.msra.gmra.mrb[8].mxu1 %v5494_v35  ;;  %v4787_v35 = vcombine.low %v406_v0, %v410_v1  ;;  %v466_v0 = vld [vmem:[#allocation5 + $0xa78] sm:$0xff]  ;;  %v4833_v1 = vcombine.low %v453_v15, %v457_v52 }
 0x1df   :  { %3776 = vmatpush1.bf16.msra.mxu0 %v4769_v57  ;;  %3988 = vmatpush1.bf16.msra.mxu1 %v4771_v59  ;;  %v4827_v57 = vcombine.low %v446_v44, %v450_v45  ;;  %v4834_v59 = vcombine.high %v453_v15, %v457_v52  ;;  %v506_v44 = vld [vmem:[#allocation5 + $0xbb8] sm:$0xff]  ;;  %v513_v15 = vld [vmem:[#allocation5 + $0xbf0] sm:$0xff] }
 0x1e0   :  { %3777 = vmatprep.subr.bf16.mxu0 %v4778_v60  ;;  %3989 = vmatprep.subr.bf16.mxu1 %v4780_v25  ;;  %v4836_v60 = vcombine.high %v454_v53, %v458_v54  ;;  %v461_v25 = vld [vmem:[#allocation5 + $0xa50] sm:$0xff]  ;;  %v510_v52 = vld [vmem:[#allocation5 + $0xbd8] sm:$0xff] }
 0x1e1   :  { %3764 = vmatprep.mubr.bf16.mxu0 %v5496_v46  ;;  %3976 = vmatprep.mubr.bf16.mxu1 %v5496_v46  ;;  %v4795_v46 = vcombine.low %v414_v10, %v418_v11  ;;  %v474_v10 = vld [vmem:[#allocation5 + $0xab8] sm:$0xff]  ;;  %v4841_v11 = vcombine.low %v461_v25, %v465_v62 }
 0x1e3   :  { %3778 = vmatpush1.bf16.msra.mxu0 %v4777_v2  ;;  %3990 = vmatpush1.bf16.msra.mxu1 %v4779_v4  ;;  %v4835_v2 = vcombine.low %v454_v53, %v458_v54  ;;  %v4842_v4 = vcombine.high %v461_v25, %v465_v62  ;;  %v514_v53 = vld [vmem:[#allocation5 + $0xbf8] sm:$0xff]  ;;  %v521_v25 = vld [vmem:[#allocation5 + $0xc30] sm:$0xff] }
 0x1e4   :  { %3779 = vmatprep.subr.bf16.mxu0 %v4786_v5  ;;  %3991 = vmatprep.subr.bf16.mxu1 %v4788_v7  ;;  %v4844_v5 = vcombine.high %v462_v63, %v466_v0  ;;  %v469_v7 = vld [vmem:[#allocation5 + $0xa90] sm:$0xff]  ;;  %v518_v62 = vld [vmem:[#allocation5 + $0xc18] sm:$0xff] }
 0x1e5   :  { %v4849_v19 = vcombine.low %v469_v7, %v473_v38 }
 0x1e6   :  { %3765 = vmatmul.mubr.bf16.gmra.mrb[12].mxu0 %v5502_v61  ;;  %3977 = vmatmul.mubr.bf16.gmra.mrb[12].mxu1 %v5502_v61  ;;  %v4810_v61 = vcombine.high %v429_v23, %v433_v24  ;;  %v489_v23 = vld [vmem:[#allocation5 + $0xb30] sm:$0xff]  ;;  %v486_v24 = vld [vmem:[#allocation5 + $0xb18] sm:$0xff] }
 0x1e7   :  { %3780 = vmatpush1.bf16.msra.mxu0 %v4785_v12  ;;  %3992 = vmatpush1.bf16.msra.mxu1 %v4787_v35  ;;  %v4843_v12 = vcombine.low %v462_v63, %v466_v0  ;;  %v4850_v35 = vcombine.high %v469_v7, %v473_v38  ;;  %v522_v63 = vld [vmem:[#allocation5 + $0xc38] sm:$0xff]  ;;  %v529_v7 = vld [vmem:[#allocation5 + $0xc70] sm:$0xff] }
 0x1e8   :  { %3781 = vmatprep.subr.bf16.mxu0 %v4794_v13  ;;  %3993 = vmatprep.subr.bf16.mxu1 %v4796_v16  ;;  %v4852_v13 = vcombine.high %v470_v8, %v474_v10  ;;  %v477_v16 = vld [vmem:[#allocation5 + $0xad0] sm:$0xff]  ;;  %v526_v38 = vld [vmem:[#allocation5 + $0xc58] sm:$0xff] }
 0x1e9   :  { %3807 = vmatprep.mubr.bf16.mxu0 %v5504_v6  ;;  %4019 = vmatprep.mubr.bf16.mxu1 %v5504_v6  ;;  %v4820_v6 = vcombine.high %v438_v34, %v442_v36  ;;  %v4857_v27 = vcombine.low %v477_v16, %v481_v17  ;;  %v498_v34 = vld [vmem:[#allocation5 + $0xb78] sm:$0xff] }
 0x1eb   :  { %3782 = vmatpush1.bf16.msra.mxu0 %v4793_v20  ;;  %3994 = vmatpush1.bf16.msra.mxu1 %v4795_v46  ;;  %v4851_v20 = vcombine.low %v470_v8, %v474_v10  ;;  %v4858_v46 = vcombine.high %v477_v16, %v481_v17  ;;  %v530_v8 = vld [vmem:[#allocation5 + $0xc78] sm:$0xff]  ;;  %v537_v16 = vld [vmem:[#allocation5 + $0xcb0] sm:$0xff] }
 0x1ec   :  { %3783 = vmatprep.subr.bf16.mxu0 %v4802_v21  ;;  %3995 = vmatprep.subr.bf16.mxu1 %v4804_v22  ;;  %v4860_v21 = vcombine.high %v478_v18, %v482_v47  ;;  %v485_v22 = vld [vmem:[#allocation5 + $0xb10] sm:$0xff]  ;;  %v534_v17 = vld [vmem:[#allocation5 + $0xc98] sm:$0xff] }
 0x1ed   :  { %v4865_v36 = vcombine.low %v485_v22, %v489_v23 }
 0x1ef   :  { %3784 = vmatpush1.bf16.msra.mxu0 %v4801_v28  ;;  %3996 = vmatpush1.bf16.msra.mxu1 %v4803_v30  ;;  %v4859_v28 = vcombine.low %v478_v18, %v482_v47  ;;  %v4866_v30 = vcombine.high %v485_v22, %v489_v23  ;;  %v538_v18 = vld [vmem:[#allocation5 + $0xcb8] sm:$0xff]  ;;  %v545_v22 = vld [vmem:[#allocation5 + $0xcf0] sm:$0xff] }
 0x1f0   :  { %3785 = vmatprep.subr.bf16.mxu0 %v4810_v61  ;;  %3997 = vmatprep.subr.bf16.mxu1 %v4812_v31  ;;  %v4868_v61 = vcombine.high %v486_v24, %v490_v26  ;;  %v493_v31 = vld [vmem:[#allocation5 + $0xb50] sm:$0xff]  ;;  %v542_v23 = vld [vmem:[#allocation5 + $0xcd8] sm:$0xff] }
 0x1f1   :  { %v4873_v45 = vcombine.low %v493_v31, %v497_v32 }
 0x1f3   :  { %3786 = vmatpush1.bf16.msra.mxu0 %v4809_v37  ;;  %3998 = vmatpush1.bf16.msra.mxu1 %v4811_v39  ;;  %v4867_v37 = vcombine.low %v486_v24, %v490_v26  ;;  %v4874_v39 = vcombine.high %v493_v31, %v497_v32  ;;  %v546_v24 = vld [vmem:[#allocation5 + $0xcf8] sm:$0xff] }
 0x1f4   :  { %3787 = vmatprep.subr.bf16.mxu0 %v4818_v41  ;;  %3999 = vmatprep.subr.bf16.mxu1 %v4820_v6  ;;  %v4876_v41 = vcombine.high %v494_v33, %v498_v34  ;;  %v501_v6 = vld [vmem:[#allocation5 + $0xb90] sm:$0xff]  ;;  %v550_v31 = vld [vmem:[#allocation5 + $0xd18] sm:$0xff] }
 0x1f5   :  { %v4881_v54 = vcombine.low %v501_v6, %v505_v42  ;;  %v554_v32 = vld [vmem:[#allocation5 + $0xd38] sm:$0xff] }
 0x1f7   :  { %3788 = vmatpush1.bf16.msra.mxu0 %v4817_v58  ;;  %4000 = vmatpush1.bf16.msra.mxu1 %v4819_v49  ;;  %v4875_v58 = vcombine.low %v494_v33, %v498_v34  ;;  %v4882_v49 = vcombine.high %v501_v6, %v505_v42  ;;  %v562_v6 = vld [vmem:[#allocation5 + $0xd78] sm:$0xff] }
 0x1f8   :  { %3789 = vmatprep.subr.bf16.mxu0 %v4826_v50  ;;  %4001 = vmatprep.subr.bf16.mxu1 %v4828_v51  ;;  %v4884_v50 = vcombine.high %v502_v43, %v506_v44  ;;  %v509_v51 = vld [vmem:[#allocation5 + $0xbd0] sm:$0xff] }
 0x1f9   :  { %v4889_v0 = vcombine.low %v509_v51, %v513_v15 }
 0x1fb   :  { %3790 = vmatpush1.bf16.msra.mxu0 %v4825_v55  ;;  %4002 = vmatpush1.bf16.msra.mxu1 %v4827_v57  ;;  %v4883_v55 = vcombine.low %v502_v43, %v506_v44  ;;  %v4890_v57 = vcombine.high %v509_v51, %v513_v15  ;;  %v4931_v43 = vcombine.low %v550_v31, %v554_v32 }
 0x1fc   :  { %3791 = vmatprep.subr.bf16.mxu0 %v4834_v59  ;;  %4003 = vmatprep.subr.bf16.mxu1 %v4836_v60  ;;  %v4892_v59 = vcombine.high %v510_v52, %v514_v53  ;;  %v517_v60 = vld [vmem:[#allocation5 + $0xc10] sm:$0xff] }
 0x1fd   :  { %v4897_v10 = vcombine.low %v517_v60, %v521_v25 }
 0x1ff   :  { %3792 = vmatpush1.bf16.msra.mxu0 %v4833_v1  ;;  %4004 = vmatpush1.bf16.msra.mxu1 %v4835_v2  ;;  %v4891_v1 = vcombine.low %v510_v52, %v514_v53  ;;  %v4898_v2 = vcombine.high %v517_v60, %v521_v25  ;;  %v574_v60 = vld [vmem:[#allocation5 + $0xdd8] sm:$0xff] }
 0x200   :  { %3793 = vmatprep.subr.bf16.mxu0 %v4842_v4  ;;  %4005 = vmatprep.subr.bf16.mxu1 %v4844_v5  ;;  %v4900_v4 = vcombine.high %v518_v62, %v522_v63  ;;  %v525_v5 = vld [vmem:[#allocation5 + $0xc50] sm:$0xff]  ;;  %v578_v25 = vld [vmem:[#allocation5 + $0xdf8] sm:$0xff] }
 0x201   :  { %v4905_v47 = vcombine.low %v525_v5, %v529_v7 }
 0x203   :  { %3794 = vmatpush1.bf16.msra.mxu0 %v4841_v11  ;;  %4006 = vmatpush1.bf16.msra.mxu1 %v4843_v12  ;;  %v4899_v11 = vcombine.low %v518_v62, %v522_v63  ;;  %v4906_v12 = vcombine.high %v525_v5, %v529_v7 }
 0x204   :  { %3795 = vmatprep.subr.bf16.mxu0 %v4850_v35  ;;  %4007 = vmatprep.subr.bf16.mxu1 %v4852_v13  ;;  %v4908_v35 = vcombine.high %v526_v38, %v530_v8  ;;  %v533_v13 = vld [vmem:[#allocation5 + $0xc90] sm:$0xff] }
 0x205   :  { %v4913_v26 = vcombine.low %v533_v13, %v537_v16 }
 0x207   :  { %3796 = vmatpush1.bf16.msra.mxu0 %v4849_v19  ;;  %4008 = vmatpush1.bf16.msra.mxu1 %v4851_v20  ;;  %v4907_v19 = vcombine.low %v526_v38, %v530_v8  ;;  %v4914_v20 = vcombine.high %v533_v13, %v537_v16  ;;  %v4956_v38 = vcombine.high %v574_v60, %v578_v25  ;;  %v581_v8 = vld [vmem:[#allocation5 + $0xe10] sm:$0xff] }
 0x208   :  { %3797 = vmatprep.subr.bf16.mxu0 %v4858_v46  ;;  %4009 = vmatprep.subr.bf16.mxu1 %v4860_v21  ;;  %v4916_v46 = vcombine.high %v534_v17, %v538_v18  ;;  %v541_v21 = vld [vmem:[#allocation5 + $0xcd0] sm:$0xff]  ;;  %v4955_v13 = vcombine.low %v574_v60, %v578_v25 }
 0x209   :  { %v4921_v33 = vcombine.low %v541_v21, %v545_v22  ;;  %v621_v25 = vld [vmem:[#allocation5 + $0xf50] sm:$0xff] }
 0x20b   :  { %3798 = vmatpush1.bf16.msra.mxu0 %v4857_v27  ;;  %4010 = vmatpush1.bf16.msra.mxu1 %v4859_v28  ;;  %v4922_v27 = vcombine.high %v541_v21, %v545_v22  ;;  %v4924_v28 = vcombine.high %v542_v23, %v546_v24  ;;  %v590_v21 = vld [vmem:[#allocation5 + $0xe58] sm:$0xff] }
 0x20c   :  { %3799 = vmatprep.subr.bf16.mxu0 %v4866_v30  ;;  %4011 = vmatprep.subr.bf16.mxu1 %v4868_v61  ;;  %v549_v30 = vld [vmem:[#allocation5 + $0xd10] sm:$0xff]  ;;  %v594_v22 = vld [vmem:[#allocation5 + $0xe78] sm:$0xff] }
 0x20d   :  { %v553_v61 = vld [vmem:[#allocation5 + $0xd30] sm:$0xff] }
 0x20e   :  { %v4930_v34 = vcombine.high %v549_v30, %v553_v61  ;;  %v4929_v42 = vcombine.low %v549_v30, %v553_v61 }
 0x20f   :  { %3800 = vmatpush1.bf16.msra.mxu0 %v4865_v36  ;;  %4012 = vmatpush1.bf16.msra.mxu1 %v4867_v37  ;;  %v4932_v36 = vcombine.high %v550_v31, %v554_v32  ;;  %v557_v37 = vld [vmem:[#allocation5 + $0xd50] sm:$0xff]  ;;  %v4972_v31 = vcombine.high %v590_v21, %v594_v22 }
 0x210   :  { %3801 = vmatprep.subr.bf16.mxu0 %v4874_v39  ;;  %4013 = vmatprep.subr.bf16.mxu1 %v4876_v41  ;;  %v561_v39 = vld [vmem:[#allocation5 + $0xd70] sm:$0xff]  ;;  %v558_v41 = vld [vmem:[#allocation5 + $0xd58] sm:$0xff] }
 0x211   :  { %v4940_v44 = vcombine.high %v558_v41, %v562_v6  ;;  %v4937_v51 = vcombine.low %v557_v37, %v561_v39  ;;  %v4939_v15 = vcombine.low %v558_v41, %v562_v6  ;;  %v597_v32 = vld [vmem:[#allocation5 + $0xe90] sm:$0xff] }
 0x212   :  { %v605_v6 = vld [vmem:[#allocation5 + $0xed0] sm:$0xff] }
 0x213   :  { %3802 = vmatpush1.bf16.msra.mxu0 %v4873_v45  ;;  %4014 = vmatpush1.bf16.msra.mxu1 %v4875_v58  ;;  %v565_v45 = vld [vmem:[#allocation5 + $0xd90] sm:$0xff] }
 0x214   :  { %3803 = vmatprep.subr.bf16.mxu0 %v4882_v49  ;;  %4015 = vmatprep.subr.bf16.mxu1 %v4884_v50  ;;  %v569_v58 = vld [vmem:[#allocation5 + $0xdb0] sm:$0xff]  ;;  %v566_v49 = vld [vmem:[#allocation5 + $0xd98] sm:$0xff] }
 0x215   :  { %v570_v50 = vld [vmem:[#allocation5 + $0xdb8] sm:$0xff]  ;;  %v4946_v52 = vcombine.high %v565_v45, %v569_v58 }
 0x217   :  { %3804 = vmatpush1.bf16.msra.mxu0 %v4881_v54  ;;  %4016 = vmatpush1.bf16.msra.mxu1 %v4883_v55  ;;  %v573_v54 = vld [vmem:[#allocation5 + $0xdd0] sm:$0xff] }
 0x218   :  { %3805 = vmatprep.subr.bf16.mxu0 %v4890_v57  ;;  %4017 = vmatprep.subr.bf16.mxu1 %v4892_v59  ;;  %v577_v55 = vld [vmem:[#allocation5 + $0xdf0] sm:$0xff] }
 0x219   :  { %v4954_v5 = vcombine.high %v573_v54, %v577_v55 }
 0x21b   :  { %3806 = vmatpush1.bf16.msra.mxu0 %v4889_v0  ;;  %4018 = vmatpush1.bf16.msra.mxu1 %v4891_v1  ;;  %v4945_v0 = vcombine.low %v565_v45, %v569_v58 }
 0x21c   :  { %3828 = vmatprep.subr.bf16.mxu0 %v4898_v2  ;;  %4040 = vmatprep.subr.bf16.mxu1 %v4900_v4  ;;  %v4947_v4 = vcombine.low %v566_v49, %v570_v50 }
 0x21e   :  { %3808 = vmatmul.mubr.bf16.vlgmr.msra.gmra.mrb[8].mxu0 %v5510_v3  ;;  %4020 = vmatmul.mubr.bf16.vlgmr.msra.gmra.mrb[8].mxu1 %v5510_v3  ;;  %v4915_v3 = vcombine.low %v534_v17, %v538_v18 }
 0x21f   :  { %3829 = vmatpush1.bf16.msra.mxu0 %v4897_v10  ;;  %4041 = vmatpush1.bf16.msra.mxu1 %v4899_v11  ;;  %v585_v10 = vld [vmem:[#allocation5 + $0xe30] sm:$0xff]  ;;  %v582_v11 = vld [vmem:[#allocation5 + $0xe18] sm:$0xff] }
 0x220   :  { %3830 = vmatprep.subr.bf16.mxu0 %v4906_v12  ;;  %4042 = vmatprep.subr.bf16.mxu1 %v4908_v35  ;;  %v586_v12 = vld [vmem:[#allocation5 + $0xe38] sm:$0xff]  ;;  %v4953_v35 = vcombine.low %v573_v54, %v577_v55  ;;  %v4962_v16 = vcombine.high %v581_v8, %v585_v10 }
 0x221   :  { %3817 = vmatprep.mubr.bf16.mxu0 %v5512_v14  ;;  %4029 = vmatprep.mubr.bf16.mxu1 %v5512_v14  ;;  %v4923_v14 = vcombine.low %v542_v23, %v546_v24  ;;  %v4964_v18 = vcombine.high %v582_v11, %v586_v12 }
 0x223   :  { %3831 = vmatpush1.bf16.msra.mxu0 %v4905_v47  ;;  %4043 = vmatpush1.bf16.msra.mxu1 %v4907_v19  ;;  %v589_v47 = vld [vmem:[#allocation5 + $0xe50] sm:$0xff] }
 0x224   :  { %3832 = vmatprep.subr.bf16.mxu0 %v4914_v20  ;;  %4044 = vmatprep.subr.bf16.mxu1 %v4916_v46  ;;  %v593_v19 = vld [vmem:[#allocation5 + $0xe70] sm:$0xff] }
 0x225   :  { %v4970_v30 = vcombine.high %v589_v47, %v593_v19 }
 0x226   :  { %3818 = vmatmul.mubr.bf16.gmra.mrb[12].mxu0 %v5518_v29  ;;  %4030 = vmatmul.mubr.bf16.gmra.mrb[12].mxu1 %v5518_v29  ;;  %v4938_v29 = vcombine.high %v557_v37, %v561_v39  ;;  %v4971_v37 = vcombine.low %v590_v21, %v594_v22  ;;  %v637_v22 = vld [vmem:[#allocation5 + $0xfd0] sm:$0xff] }
 0x227   :  { %3833 = vmatpush1.bf16.msra.mxu0 %v4913_v26  ;;  %4045 = vmatpush1.bf16.msra.mxu1 %v4915_v3  ;;  %v4961_v26 = vcombine.low %v581_v8, %v585_v10 }
 0x228   :  { %3834 = vmatprep.subr.bf16.mxu0 %v4922_v27  ;;  %4046 = vmatprep.subr.bf16.mxu1 %v4924_v28  ;;  %v4963_v28 = vcombine.low %v582_v11, %v586_v12  ;;  %v629_v12 = vld [vmem:[#allocation5 + $0xf90] sm:$0xff] }
 0x229   :  { %3860 = vmatprep.mubr.bf16.mxu0 %v5520_v40  ;;  %4072 = vmatprep.mubr.bf16.mxu1 %v5520_v40  ;;  %v4948_v40 = vcombine.high %v566_v49, %v570_v50  ;;  %v613_v50 = vld [vmem:[#allocation5 + $0xf10] sm:$0xff] }
 0x22b   :  { %3835 = vmatpush1.bf16.msra.mxu0 %v4921_v33  ;;  %4047 = vmatpush1.bf16.msra.mxu1 %v4923_v14  ;;  %v601_v33 = vld [vmem:[#allocation5 + $0xeb0] sm:$0xff]  ;;  %v598_v14 = vld [vmem:[#allocation5 + $0xe98] sm:$0xff] }
 0x22c   :  { %3836 = vmatprep.subr.bf16.mxu0 %v4930_v34  ;;  %4048 = vmatprep.subr.bf16.mxu1 %v4932_v36  ;;  %v602_v34 = vld [vmem:[#allocation5 + $0xeb8] sm:$0xff]  ;;  %v4969_v36 = vcombine.low %v589_v47, %v593_v19  ;;  %v4978_v39 = vcombine.high %v597_v32, %v601_v33 }
 0x22d   :  { %v4980_v41 = vcombine.high %v598_v14, %v602_v34  ;;  %v4979_v45 = vcombine.low %v598_v14, %v602_v34 }
 0x22f   :  { %3837 = vmatpush1.bf16.msra.mxu0 %v4929_v42  ;;  %4049 = vmatpush1.bf16.msra.mxu1 %v4931_v43  ;;  %v609_v42 = vld [vmem:[#allocation5 + $0xef0] sm:$0xff]  ;;  %v606_v43 = vld [vmem:[#allocation5 + $0xed8] sm:$0xff] }
 0x230   :  { %3838 = vmatprep.subr.bf16.mxu0 %v4938_v29  ;;  %4050 = vmatprep.subr.bf16.mxu1 %v4940_v44  ;;  %v610_v29 = vld [vmem:[#allocation5 + $0xef8] sm:$0xff]  ;;  %v4977_v44 = vcombine.low %v597_v32, %v601_v33  ;;  %v4986_v58 = vcombine.high %v605_v6, %v609_v42 }
 0x231   :  { %v5564_v53 = vpop.f32.mrb[0].mxu0  ;;  %v5566_v57 = vpop.f32.mrb[0].mxu1  ;;  %v4988_v49 = vcombine.high %v606_v43, %v610_v29  ;;  %v4987_v54 = vcombine.low %v606_v43, %v610_v29 }
 0x232   :  { %v5568_v59 = vpop.f32.mrb[1].mxu0  ;;  %v5570_v62 = vpop.f32.mrb[1].mxu1 }
 0x233   :  { %v5572_v63 = vpop.f32.mrb[2].mxu0  ;;  %3839 = vmatpush1.bf16.msra.mxu0 %v4937_v51  ;;  %v5574_v1 = vpop.f32.mrb[2].mxu1  ;;  %4051 = vmatpush1.bf16.msra.mxu1 %v4939_v15  ;;  %v617_v51 = vld [vmem:[#allocation5 + $0xf30] sm:$0xff]  ;;  %v614_v15 = vld [vmem:[#allocation5 + $0xf18] sm:$0xff] }
 0x234   :  { %v5576_v2 = vpop.f32.mrb[3].mxu0  ;;  %3840 = vmatprep.subr.bf16.mxu0 %v4946_v52  ;;  %v5578_v7 = vpop.f32.mrb[3].mxu1  ;;  %4052 = vmatprep.subr.bf16.mxu1 %v4948_v40  ;;  %v618_v52 = vld [vmem:[#allocation5 + $0xf38] sm:$0xff]  ;;  %v4985_v40 = vcombine.low %v605_v6, %v609_v42  ;;  %v4994_v55 = vcombine.high %v613_v50, %v617_v51  ;;  %v643_v6 = vld [vmem:[#allocation7] sm:$0xff] }
 0x235   :  { %v4996_v60 = vcombine.high %v614_v15, %v618_v52  ;;  %v4995_v8 = vcombine.low %v614_v15, %v618_v52 }
 0x237   :  { %3841 = vmatpush1.bf16.msra.mxu0 %v4945_v0  ;;  %4053 = vmatpush1.bf16.msra.mxu1 %v4947_v4  ;;  %v625_v0 = vld [vmem:[#allocation5 + $0xf70] sm:$0xff]  ;;  %v622_v4 = vld [vmem:[#allocation5 + $0xf58] sm:$0xff] }
 0x238   :  { %3842 = vmatprep.subr.bf16.mxu0 %v4954_v5  ;;  %4054 = vmatprep.subr.bf16.mxu1 %v4956_v38  ;;  %v626_v5 = vld [vmem:[#allocation5 + $0xf78] sm:$0xff]  ;;  %v4993_v38 = vcombine.low %v613_v50, %v617_v51  ;;  %v5002_v10 = vcombine.high %v621_v25, %v625_v0 }
 0x239   :  { %v5580_v17 = vpop.f32.mrb[4].mxu0  ;;  %v5582_v20 = vpop.f32.mrb[4].mxu1  ;;  %v5004_v11 = vcombine.high %v622_v4, %v626_v5  ;;  %v5003_v47 = vcombine.low %v622_v4, %v626_v5 }
 0x23a   :  { %v5584_v46 = vpop.f32.mrb[5].mxu0  ;;  %v5586_v23 = vpop.f32.mrb[5].mxu1 }
 0x23b   :  { %v5588_v24 = vpop.f32.mrb[6].mxu0  ;;  %3843 = vmatpush1.bf16.msra.mxu0 %v4953_v35  ;;  %v5590_v3 = vpop.f32.mrb[6].mxu1  ;;  %4055 = vmatpush1.bf16.msra.mxu1 %v4955_v13  ;;  %v633_v35 = vld [vmem:[#allocation5 + $0xfb0] sm:$0xff]  ;;  %v630_v13 = vld [vmem:[#allocation5 + $0xf98] sm:$0xff] }
 0x23c   :  { %v5592_v27 = vpop.f32.mrb[7].mxu0  ;;  %3844 = vmatprep.subr.bf16.mxu0 %v4962_v16  ;;  %v5594_v61 = vpop.f32.mrb[7].mxu1  ;;  %4056 = vmatprep.subr.bf16.mxu1 %v4964_v18  ;;  %v634_v16 = vld [vmem:[#allocation5 + $0xfb8] sm:$0xff]  ;;  %v5001_v18 = vcombine.low %v621_v25, %v625_v0  ;;  %v5010_v19 = vcombine.high %v629_v12, %v633_v35 }
 0x23d   :  { %v5012_v21 = vcombine.high %v630_v13, %v634_v16  ;;  %v5011_v32 = vcombine.low %v630_v13, %v634_v16 }
 0x23f   :  { %3845 = vmatpush1.bf16.msra.mxu0 %v4961_v26  ;;  %4057 = vmatpush1.bf16.msra.mxu1 %v4963_v28  ;;  %v641_v26 = vld [vmem:[#allocation5 + $0xff0] sm:$0xff]  ;;  %v638_v28 = vld [vmem:[#allocation5 + $0xfd8] sm:$0xff] }
 0x240   :  { %3846 = vmatprep.subr.bf16.mxu0 %v4970_v30  ;;  %4058 = vmatprep.subr.bf16.mxu1 %v4972_v31  ;;  %v642_v30 = vld [vmem:[#allocation5 + $0xff8] sm:$0xff]  ;;  %v5009_v31 = vcombine.low %v629_v12, %v633_v35  ;;  %v5018_v33 = vcombine.high %v637_v22, %v641_v26  ;;  %v5017_v34 = vcombine.low %v637_v22, %v641_v26 }
 0x241   :  { %v5020_v14 = vcombine.high %v638_v28, %v642_v30 }
 0x243   :  { %3847 = vmatpush1.bf16.msra.mxu0 %v4969_v36  ;;  %4059 = vmatpush1.bf16.msra.mxu1 %v4971_v37  ;;  %v5019_v36 = vcombine.low %v638_v28, %v642_v30  ;;  %v645_v37 = vlaneseq }
 0x244   :  { %3848 = vmatprep.subr.bf16.mxu0 %v4978_v39  ;;  %4060 = vmatprep.subr.bf16.mxu1 %v4980_v41 }
 0x245   :  { %v646_v39 = vshrl.u32 %v645_v37, 7 }
 0x247   :  { %3849 = vmatpush1.bf16.msra.mxu0 %v4977_v44  ;;  %4061 = vmatpush1.bf16.msra.mxu1 %v4979_v45  ;;  %v5602_v41 = vsub.s32 0, %v646_v39  ;;  %v5604_v42 = vsub.s32 2, %v646_v39  ;;  %v5606_v43 = vsub.s32 1, %v646_v39  ;;  %v5608_v29 = vsub.s32 3, %v646_v39 }
 0x248   :  { %3850 = vmatprep.subr.bf16.mxu0 %v4986_v58  ;;  %4062 = vmatprep.subr.bf16.mxu1 %v4988_v49 }
 0x249   :  { %v656_v44 = vrot.slane %v643_v6, %v5604_v42  ;;  %v660_v45 = vrot.slane %v643_v6, %v5608_v29 }
 0x24b   :  { %3851 = vmatpush1.bf16.msra.mxu0 %v4985_v40  ;;  %4063 = vmatpush1.bf16.msra.mxu1 %v4987_v54  ;;  %v5029_v58 = vadd.f32 %v5566_v57, %v656_v44  ;;  %v5030_v50 = vadd.f32 %v5570_v62, %v660_v45  ;;  %v5031_v15 = vadd.f32 %v5574_v1, %v656_v44  ;;  %v5629_v1 = vsub.s32 5, %v646_v39 }
 0x24c   :  { %3852 = vmatprep.subr.bf16.mxu0 %v4994_v55  ;;  %4064 = vmatprep.subr.bf16.mxu1 %v4996_v60  ;;  %v5032_v40 = vadd.f32 %v5578_v7, %v660_v45  ;;  %v5033_v57 = vadd.f32 %v5582_v20, %v656_v44  ;;  %v5633_v54 = vsub.s32 7, %v646_v39 }
 0x24e   :  { %v5652_v4 = vrot.slane %v643_v6, %v5633_v54 }
 0x24f   :  { %3853 = vmatpush1.bf16.msra.mxu0 %v4993_v38  ;;  %4065 = vmatpush1.bf16.msra.mxu1 %v4995_v8 }
 0x250   :  { %3854 = vmatprep.subr.bf16.mxu0 %v5002_v10  ;;  %4066 = vmatprep.subr.bf16.mxu1 %v5004_v11 }
 0x253   :  { %3855 = vmatpush1.bf16.msra.mxu0 %v5001_v18  ;;  %4067 = vmatpush1.bf16.msra.mxu1 %v5003_v47 }
 0x254   :  { %3856 = vmatprep.subr.bf16.mxu0 %v5010_v19  ;;  %4068 = vmatprep.subr.bf16.mxu1 %v5012_v21 }
 0x257   :  { %3857 = vmatpush1.bf16.msra.mxu0 %v5009_v31  ;;  %4069 = vmatpush1.bf16.msra.mxu1 %v5011_v32 }
 0x258   :  { %3858 = vmatprep.subr.bf16.mxu0 %v5018_v33  ;;  %4070 = vmatprep.subr.bf16.mxu1 %v5020_v14 }
 0x25b   :  { %3859 = vmatpush1.bf16.msra.mxu0 %v5017_v34  ;;  %4071 = vmatpush1.bf16.msra.mxu1 %v5019_v36 }
 0x25e   :  { %3861 = vmatmul.mubr.bf16.vlgmr.msra.gmra.mrb[8].mxu0 %v5526_v48  ;;  %4073 = vmatmul.mubr.bf16.vlgmr.msra.gmra.mrb[8].mxu1 %v5526_v48  ;;  %v648_v48 = vrot.slane %v643_v6, %v5602_v41 }
 0x25f   :  { %3870 = vmatprep.mubr.bf16.mxu0 %v5528_v56  ;;  %4082 = vmatprep.mubr.bf16.mxu1 %v5528_v56  ;;  %v652_v56 = vrot.slane %v643_v6, %v5606_v43 }
 0x260   :  { %v5023_v51 = vadd.f32 %v5572_v63, %v648_v48  ;;  %v5627_v63 = vsub.s32 6, %v646_v39  ;;  %v5027_v7 = vadd.f32 %v5588_v24, %v648_v48 }
 0x261   :  { %v5022_v49 = vadd.f32 %v5568_v59, %v652_v56  ;;  %v5024_v52 = vadd.f32 %v5576_v2, %v652_v56  ;;  %v5624_v59 = vsub.s32 4, %v646_v39  ;;  %v5026_v62 = vadd.f32 %v5584_v46, %v652_v56 }
 0x262   :  { %v5034_v2 = vadd.f32 %v5586_v23, %v660_v45  ;;  %v5028_v46 = vadd.f32 %v5592_v27, %v652_v56  ;;  %v5641_v60 = vrot.slane %v643_v6, %v5627_v63  ;;  %v5644_v23 = vrot.slane %v643_v6, %v5629_v1 }
 0x263   :  { %v664_v20 = vrot.slane %v643_v6, %v5624_v59 }
 0x266   :  { %3871 = vmatmul.mubr.bf16.gmra.mrb[12].mxu0 %v5534_v9  ;;  %4083 = vmatmul.mubr.bf16.gmra.mrb[12].mxu1 %v5534_v9  ;;  %v5021_v9 = vadd.f32 %v5564_v53, %v648_v48  ;;  %v5025_v53 = vadd.f32 %v5580_v17, %v648_v48  ;;  %v5035_v17 = vadd.f32 %v5590_v3, %v656_v44 }
 0x267   :  { %v5036_v3 = vadd.f32 %v5594_v61, %v660_v45 }
 0x268   :  { %5159 = vtanh.f32 %v5021_v9 }
 0x269   :  { %5161 = vtanh.f32 %v5029_v58 }
 0x26a   :  { %5163 = vtanh.f32 %v5022_v49 }
 0x26b   :  { %5165 = vtanh.f32 %v5030_v50 }
 0x26c   :  { %5167 = vtanh.f32 %v5023_v51 }
 0x26d   :  { %5169 = vtanh.f32 %v5031_v15 }
 0x26e   :  { %5171 = vtanh.f32 %v5024_v52 }
 0x26f   :  { %5173 = vtanh.f32 %v5032_v40 }
 0x270   :  { %5175 = vtanh.f32 %v5025_v53 }
 0x271   :  { %5177 = vtanh.f32 %v5033_v57 }
 0x272   :  { %v5637_v55 = vpop.eup %5159  ;;  %5179 = vtanh.f32 %v5026_v62 }
 0x273   :  { %v5646_v25 = vpop.eup %5161  ;;  %5181 = vtanh.f32 %v5034_v2 }
 0x274   :  { %v5648_v24 = vpop.eup %5163  ;;  %5183 = vtanh.f32 %v5027_v7 }
 0x275   :  { %v5654_v5 = vpop.eup %5165  ;;  %5185 = vtanh.f32 %v5035_v17  ;;  %v4127_v26 = vadd.f32 %v5648_v24, %v5637_v55 }
 0x276   :  { %v5656_v10 = vpop.eup %5167  ;;  %5187 = vtanh.f32 %v5028_v46 }
 0x277   :  { %v5660_v61 = vpop.eup %5169  ;;  %v4128_v39 = vadd.f32 %v5646_v25, %v4127_v26 }
 0x278   :  { %v5662_v19 = vpop.eup %5171 }
 0x279   :  { %v5667_v28 = vpop.eup %5173  ;;  %v4136_v14 = vadd.f32 %v5662_v19, %v5656_v10  ;;  %v4129_v7 = vadd.f32 %v5654_v5, %v4128_v39 }
 0x27a   :  { %v5670_v31 = vpop.eup %5175 }
 0x27b   :  { %v5673_v33 = vpop.eup %5177  ;;  %v4137_v53 = vadd.f32 %v5660_v61, %v4136_v14 }
 0x27c   :  { %v5677_v34 = vpop.eup %5179 }
 0x27d   :  { %v5681_v6 = vpop.eup %5181  ;;  %v4145_v17 = vadd.f32 %v5677_v34, %v5670_v31 }
 0x27e   :  { %v5683_v45 = vpop.eup %5183 }
 0x27f   :  { %v5687_v51 = vpop.eup %5185 }
 0x280   :  { %v5690_v57 = vpop.eup %5187 }
 0x331   :  { %v3862_v0 = vpop.f32.mrb[8].mxu0  ;;  %v4074_v38 = vpop.f32.mrb[8].mxu1 }
 0x332   :  { %v5037_v27 = vadd.f32 %v3862_v0, %v664_v20  ;;  %v3864_v8 = vpop.f32.mrb[9].mxu0  ;;  %v5045_v11 = vadd.f32 %v4074_v38, %v5641_v60  ;;  %v4076_v35 = vpop.f32.mrb[9].mxu1 }
 0x333   :  { %v5038_v12 = vadd.f32 %v3864_v8, %v5644_v23  ;;  %v3866_v13 = vpop.f32.mrb[10].mxu0  ;;  %v4078_v18 = vpop.f32.mrb[10].mxu1  ;;  %v5046_v21 = vadd.f32 %v4076_v35, %v5652_v4  ;;  %v4138_v8 = vadd.f32 %v5667_v28, %v4137_v53 }
 0x334   :  { %5189 = vtanh.f32 %v5037_v27  ;;  %v5039_v16 = vadd.f32 %v3866_v13, %v664_v20  ;;  %v3868_v47 = vpop.f32.mrb[11].mxu0  ;;  %v4080_v22 = vpop.f32.mrb[11].mxu1  ;;  %v5047_v32 = vadd.f32 %v4078_v18, %v5641_v60  ;;  %v4146_v13 = vadd.f32 %v5673_v33, %v4145_v17 }
 0x335   :  { %5191 = vtanh.f32 %v5036_v3  ;;  %v5040_v30 = vadd.f32 %v3868_v47, %v5644_v23  ;;  %v5048_v36 = vadd.f32 %v4080_v22, %v5652_v4 }
 0x336   :  { %5193 = vtanh.f32 %v5038_v12  ;;  %v4154_v12 = vadd.f32 %v5690_v57, %v5683_v45 }
 0x337   :  { %5195 = vtanh.f32 %v5045_v11 }
 0x338   :  { %5197 = vtanh.f32 %v5039_v16  ;;  %v4155_v14 = vadd.f32 %v5687_v51, %v4154_v12 }
 0x339   :  { %5199 = vtanh.f32 %v5046_v21  ;;  %v3872_v37 = vpop.f32.mrb[12].mxu0  ;;  %v4084_v44 = vpop.f32.mrb[12].mxu1 }
 0x33a   :  { %5201 = vtanh.f32 %v5040_v30  ;;  %v5041_v48 = vadd.f32 %v3872_v37, %v664_v20  ;;  %v3874_v56 = vpop.f32.mrb[13].mxu0  ;;  %v5049_v9 = vadd.f32 %v4084_v44, %v5641_v60  ;;  %v4086_v49 = vpop.f32.mrb[13].mxu1 }
 0x33b   :  { %5203 = vtanh.f32 %v5047_v32  ;;  %v5042_v58 = vadd.f32 %v3874_v56, %v5644_v23  ;;  %v3876_v50 = vpop.f32.mrb[14].mxu0  ;;  %v4088_v52 = vpop.f32.mrb[14].mxu1  ;;  %v5050_v62 = vadd.f32 %v4086_v49, %v5652_v4  ;;  %v4147_v32 = vadd.f32 %v5681_v6, %v4146_v13 }
 0x33c   :  { %5205 = vtanh.f32 %v5041_v48  ;;  %v5043_v15 = vadd.f32 %v3876_v50, %v664_v20  ;;  %v3878_v40 = vpop.f32.mrb[15].mxu0  ;;  %v4090_v2 = vpop.f32.mrb[15].mxu1  ;;  %v5051_v38 = vadd.f32 %v4088_v52, %v5641_v60 }
 0x33d   :  { %5207 = vtanh.f32 %v5048_v36  ;;  %v5044_v20 = vadd.f32 %v3878_v40, %v5644_v23  ;;  %v5052_v16 = vadd.f32 %v4090_v2, %v5652_v4 }
 0x33e   :  { %v5696_v46 = vpop.eup %5189  ;;  %5209 = vtanh.f32 %v5042_v58 }
 0x33f   :  { %v5699_v3 = vpop.eup %5191  ;;  %5211 = vtanh.f32 %v5049_v9  ;;  %v4130_v0 = vadd.f32 %v5696_v46, %v4129_v7 }
 0x340   :  { %v5194_v27 = vpop.eup %5193  ;;  %5213 = vtanh.f32 %v5043_v15  ;;  %v4156_v58 = vadd.f32 %v5699_v3, %v4155_v14 }
 0x341   :  { %v5196_v11 = vpop.eup %5195  ;;  %5215 = vtanh.f32 %v5050_v62  ;;  %v4131_v35 = vadd.f32 %v5194_v27, %v4130_v0 }
 0x342   :  { %v5707_v23 = vpop.eup %5197  ;;  %5217 = vtanh.f32 %v5044_v20 }
 0x343   :  { %v5200_v18 = vpop.eup %5199  ;;  %v4132_v47 = vadd.f32 %v5196_v11, %v4131_v35  ;;  %v4139_v21 = vadd.f32 %v5707_v23, %v4138_v8  ;;  %5219 = vtanh.f32 %v5051_v38 }
 0x344   :  { %v5711_v60 = vpop.eup %5201  ;;  %5221 = vtanh.f32 %v5052_v16 }
 0x345   :  { %v5713_v22 = vpop.eup %5203  ;;  %v4133_v26 = vadd.f32 %v5200_v18, %v4132_v47  ;;  %v4140_v30 = vadd.f32 %v5711_v60, %v4139_v21 }
 0x346   :  { %v5718_v36 = vpop.eup %5205 }
 0x347   :  { %v5720_v4 = vpop.eup %5207  ;;  %4134 = vadd.xlane.f32.xlu0 %v4133_v26  ;;  %v4141_v37 = vadd.f32 %v5713_v22, %v4140_v30  ;;  %v4148_v39 = vadd.f32 %v5718_v36, %v4147_v32 }
 0x348   :  { %v5724_v48 = vpop.eup %5209 }
 0x349   :  { %v5726_v44 = vpop.eup %5211  ;;  %v4142_v56 = vadd.f32 %v5720_v4, %v4141_v37  ;;  %v4149_v9 = vadd.f32 %v5724_v48, %v4148_v39 }
 0x34a   :  { %v5731_v49 = vpop.eup %5213 }
 0x34b   :  { %v5733_v50 = vpop.eup %5215  ;;  %4143 = vadd.xlane.f32.xlu0 %v4142_v56  ;;  %v4150_v15 = vadd.f32 %v5726_v44, %v4149_v9  ;;  %v4157_v52 = vadd.f32 %v5731_v49, %v4156_v58 }
 0x34c   :  { %v5737_v40 = vpop.eup %5217 }
 0x34d   :  { %v4151_v53 = vadd.f32 %v5733_v50, %v4150_v15  ;;  %v4158_v62 = vadd.f32 %v5737_v40, %v4157_v52  ;;  %v5741_v2 = vpop.eup %5219 }
 0x34e   :  { %v5744_v17 = vpop.eup %5221 }
 0x34f   :  { %4152 = vadd.xlane.f32.xlu1 %v4151_v53  ;;  %v4159_v7 = vadd.f32 %v5741_v2, %v4158_v62 }
 0x351   :  { %v4160_v20 = vadd.f32 %v5744_v17, %v4159_v7 }
 0x353   :  { %4161 = vadd.xlane.f32.xlu1 %v4160_v20 }
 0x3d4   :  { %v4135_v0 = vpop.xlane.xlu0 %4134 }
 0x3d5   :  { %v4164_v38 = vmul.f32 0.0009765625, %v4135_v0 }
 0x3d7   :  { %v5748_v8 = vsub.f32 %v5637_v55, %v4164_v38  ;;  %v5751_v12 = vsub.f32 %v5648_v24, %v4164_v38  ;;  %v5754_v35 = vsub.f32 %v5646_v25, %v4164_v38  ;;  %v5757_v47 = vsub.f32 %v5654_v5, %v4164_v38 }
 0x3d8   :  { %v4144_v13 = vpop.xlane.xlu0 %4143  ;;  %v5764_v55 = vsub.f32 %v5696_v46, %v4164_v38  ;;  %v5766_v30 = vsub.f32 %v5194_v27, %v4164_v38  ;;  %v5779_v56 = vsub.f32 %v5196_v11, %v4164_v38  ;;  %v5783_v9 = vsub.f32 %v5200_v18, %v4164_v38 }
 0x3d9   :  { %v4165_v16 = vmul.f32 0.0009765625, %v4144_v13  ;;  %v4200_v21 = vmul.f32 %v5748_v8, %v5748_v8  ;;  %v4201_v26 = vmul.f32 %v5751_v12, %v5751_v12  ;;  %v4202_v25 = vmul.f32 %v5754_v35, %v5754_v35 }
 0x3da   :  { %v4203_v46 = vmul.f32 %v5757_v47, %v5757_v47  ;;  %v4205_v11 = vmul.f32 %v5766_v30, %v5766_v30  ;;  %v4206_v20 = vmul.f32 %v5779_v56, %v5779_v56 }
 0x3db   :  { %v4232_v24 = vadd.f32 %v4201_v26, %v4200_v21  ;;  %v5771_v32 = vsub.f32 %v5656_v10, %v4165_v16  ;;  %v5774_v5 = vsub.f32 %v5662_v19, %v4165_v16  ;;  %v5777_v37 = vsub.f32 %v5660_v61, %v4165_v16 }
 0x3dc   :  { %v4153_v14 = vpop.xlane.xlu1 %4152  ;;  %v5786_v58 = vsub.f32 %v5667_v28, %v4165_v16  ;;  %v4204_v61 = vmul.f32 %v5764_v55, %v5764_v55  ;;  %v5797_v52 = vsub.f32 %v5707_v23, %v4165_v16  ;;  %v5810_v38 = vsub.f32 %v5711_v60, %v4165_v16 }
 0x3dd   :  { %v4166_v39 = vmul.f32 0.0009765625, %v4153_v14  ;;  %v4233_v27 = vadd.f32 %v4232_v24, %v4202_v25  ;;  %v4208_v10 = vmul.f32 %v5771_v32, %v5771_v32  ;;  %v4209_v19 = vmul.f32 %v5774_v5, %v5774_v5 }
 0x3de   :  { %v4210_v28 = vmul.f32 %v5777_v37, %v5777_v37  ;;  %v4207_v21 = vmul.f32 %v5783_v9, %v5783_v9  ;;  %v5820_v25 = vsub.f32 %v5713_v22, %v4165_v16  ;;  %v4212_v14 = vmul.f32 %v5797_v52, %v5797_v52 }
 0x3df   :  { %v4234_v15 = vadd.f32 %v4233_v27, %v4203_v46  ;;  %v4241_v53 = vadd.f32 %v4209_v19, %v4208_v10  ;;  %v5802_v62 = vsub.f32 %v5670_v31, %v4166_v39  ;;  %v5805_v7 = vsub.f32 %v5677_v34, %v4166_v39 }
 0x3e0   :  { %v4162_v18 = vpop.xlane.xlu1 %4161  ;;  %v5813_v23 = vsub.f32 %v5673_v33, %v4166_v39  ;;  %v4211_v31 = vmul.f32 %v5786_v58, %v5786_v58  ;;  %v5827_v33 = vsub.f32 %v5720_v4, %v4165_v16  ;;  %v5832_v27 = vsub.f32 %v5681_v6, %v4166_v39 }
 0x3e1   :  { %v4235_v0 = vadd.f32 %v4234_v15, %v4204_v61  ;;  %v4167_v13 = vmul.f32 0.0009765625, %v4162_v18  ;;  %v4242_v26 = vadd.f32 %v4241_v53, %v4210_v28  ;;  %v4216_v24 = vmul.f32 %v5802_v62, %v5802_v62 }
 0x3e2   :  { %v4217_v60 = vmul.f32 %v5805_v7, %v5805_v7  ;;  %v4213_v22 = vmul.f32 %v5810_v38, %v5810_v38  ;;  %v5837_v19 = vsub.f32 %v5718_v36, %v4166_v39  ;;  %v4218_v61 = vmul.f32 %v5813_v23, %v5813_v23 }
 0x3e3   :  { %v4236_v34 = vadd.f32 %v4235_v0, %v4205_v11  ;;  %v4243_v46 = vadd.f32 %v4242_v26, %v4211_v31  ;;  %v5842_v16 = vsub.f32 %v5683_v45, %v4167_v13  ;;  %v5845_v15 = vsub.f32 %v5690_v57, %v4167_v13 }
 0x3e4   :  { %v4250_v4 = vadd.f32 %v4217_v60, %v4216_v24  ;;  %v4214_v18 = vmul.f32 %v5820_v25, %v5820_v25  ;;  %v5850_v28 = vsub.f32 %v5687_v51, %v4167_v13  ;;  %v5853_v53 = vsub.f32 %v5724_v48, %v4166_v39 }
 0x3e5   :  { %v4237_v10 = vadd.f32 %v4236_v34, %v4206_v20  ;;  %v4244_v11 = vadd.f32 %v4243_v46, %v4212_v14  ;;  %v4219_v20 = vmul.f32 %v5832_v27, %v5832_v27  ;;  %v4215_v45 = vmul.f32 %v5827_v33, %v5827_v33 }
 0x3e6   :  { %v4251_v0 = vadd.f32 %v4250_v4, %v4218_v61  ;;  %v5860_v57 = vsub.f32 %v5699_v3, %v4167_v13  ;;  %v4225_v51 = vmul.f32 %v5845_v15, %v5845_v15  ;;  %v5867_v48 = vsub.f32 %v5726_v44, %v4166_v39 }
 0x3e7   :  { %v4238_v6 = vadd.f32 %v4237_v10, %v4207_v21  ;;  %v4245_v36 = vadd.f32 %v4244_v11, %v4213_v22  ;;  %v4224_v21 = vmul.f32 %v5842_v16, %v5842_v16  ;;  %v4220_v26 = vmul.f32 %v5837_v19, %v5837_v19 }
 0x3e8   :  { %v4252_v34 = vadd.f32 %v4251_v0, %v4219_v20  ;;  %v5872_v24 = vsub.f32 %v5731_v49, %v4167_v13  ;;  %v4226_v3 = vmul.f32 %v5850_v28, %v5850_v28  ;;  %v5877_v46 = vsub.f32 %v5733_v50, %v4166_v39 }
 0x3e9   :  { %4239 = vadd.xlane.f32.xlu0 %v4238_v6  ;;  %v4246_v31 = vadd.f32 %v4245_v36, %v4214_v18  ;;  %v4259_v60 = vadd.f32 %v4225_v51, %v4224_v21  ;;  %v4221_v10 = vmul.f32 %v5853_v53, %v5853_v53  ;;  %v5882_v22 = vsub.f32 %v5737_v40, %v4167_v13 }
 0x3ea   :  { %v4253_v44 = vadd.f32 %v4252_v34, %v4220_v26  ;;  %v4227_v61 = vmul.f32 %v5860_v57, %v5860_v57  ;;  %v4222_v11 = vmul.f32 %v5867_v48, %v5867_v48  ;;  %v5889_v6 = vsub.f32 %v5741_v2, %v4167_v13 }
 0x3eb   :  { %v4247_v14 = vadd.f32 %v4246_v31, %v4215_v45  ;;  %v4260_v49 = vadd.f32 %v4259_v60, %v4226_v3  ;;  %v4228_v50 = vmul.f32 %v5872_v24, %v5872_v24  ;;  %v4223_v40 = vmul.f32 %v5877_v46, %v5877_v46 }
 0x3ec   :  { %v4254_v4 = vadd.f32 %v4253_v44, %v4221_v10  ;;  %v5896_v36 = vsub.f32 %v5744_v17, %v4167_v13  ;;  %v4229_v20 = vmul.f32 %v5882_v22, %v5882_v22  ;;  %v4230_v2 = vmul.f32 %v5889_v6, %v5889_v6  ;;  %v4126_v10 = vld [vmem:[#allocation10] sm:$0xff] }
 0x3ed   :  { %4248 = vadd.xlane.f32.xlu1 %v4247_v14  ;;  %v4261_v39 = vadd.f32 %v4260_v49, %v4227_v61  ;;  %v4125_v14 = vld [vmem:[#allocation8] sm:$0xff]  ;;  %v5908_v49 = vrot.slane %v4126_v10, %v5602_v41 }
 0x3ee   :  { %v4255_v18 = vadd.f32 %v4254_v4, %v4222_v11  ;;  %v4231_v51 = vmul.f32 %v5896_v36, %v5896_v36  ;;  %v5905_v61 = vrot.slane %v4125_v14, %v5602_v41  ;;  %v5911_v4 = vrot.slane %v4125_v14, %v5604_v42 }
 0x3ef   :  { %v4262_v0 = vadd.f32 %v4261_v39, %v4228_v50  ;;  %v5914_v50 = vrot.slane %v4126_v10, %v5604_v42  ;;  %v5917_v39 = vrot.slane %v4125_v14, %v5606_v43  ;;  %v5926_v41 = vrot.slane %v4126_v10, %v5608_v29 }
 0x3f0   :  { %v4256_v45 = vadd.f32 %v4255_v18, %v4223_v40  ;;  %v5920_v18 = vrot.slane %v4126_v10, %v5606_v43  ;;  %v5935_v42 = vrot.slane %v4125_v14, %v5627_v63  ;;  %v5941_v43 = vrot.slane %v4125_v14, %v5629_v1 }
 0x3f1   :  { %v4263_v21 = vadd.f32 %v4262_v0, %v4229_v20  ;;  %v5923_v20 = vrot.slane %v4125_v14, %v5608_v29  ;;  %v5929_v0 = vrot.slane %v4125_v14, %v5624_v59  ;;  %v5947_v29 = vrot.slane %v4125_v14, %v5633_v54 }
 0x3f2   :  { %4257 = vadd.xlane.f32.xlu0 %v4256_v45  ;;  %v5932_v45 = vrot.slane %v4126_v10, %v5624_v59 }
 0x3f3   :  { %v4264_v31 = vadd.f32 %v4263_v21, %v4230_v2  ;;  %v5938_v2 = vrot.slane %v4126_v10, %v5627_v63 }
 0x3f5   :  { %v4265_v26 = vadd.f32 %v4264_v31, %v4231_v51  ;;  %v5944_v51 = vrot.slane %v4126_v10, %v5629_v1  ;;  %v5950_v31 = vrot.slane %v4126_v10, %v5633_v54 }
 0x3f7   :  { %4266 = vadd.xlane.f32.xlu1 %v4265_v26 }
 0x476   :  { %v4240_v34 = vpop.xlane.xlu0 %4239 }
 0x477   :  { %v4268_v3 = vmul.f32 0.0009765625, %v4240_v34 }
 0x479   :  { %v4272_v17 = vadd.f32 1e-05, %v4268_v3 }
 0x47a   :  { %v4249_v13 = vpop.xlane.xlu1 %4248 }
 0x47b   :  { %5223 = vrsqrt.f32 %v4272_v17  ;;  %v4269_v60 = vmul.f32 0.0009765625, %v4249_v13 }
 0x47d   :  { %v4273_v44 = vadd.f32 1e-05, %v4269_v60 }
 0x47f   :  { %5225 = vrsqrt.f32 %v4273_v44  ;;  %v4258_v11 = vpop.xlane.xlu0 %4257 }
 0x480   :  { %v4270_v40 = vmul.f32 0.0009765625, %v4258_v11 }
 0x482   :  { %v4274_v59 = vadd.f32 1e-05, %v4270_v40 }
 0x484   :  { %5227 = vrsqrt.f32 %v4274_v59 }
 0x485   :  { %v5224_v21 = vpop.eup %5223 }
 0x486   :  { %v4280_v26 = vmul.f32 %v5224_v21, %v5748_v8  ;;  %v4281_v34 = vmul.f32 %v5224_v21, %v5751_v12  ;;  %v4282_v63 = vmul.f32 %v5224_v21, %v5754_v35  ;;  %v4283_v3 = vmul.f32 %v5224_v21, %v5757_v47 }
 0x487   :  { %v4284_v17 = vmul.f32 %v5224_v21, %v5764_v55  ;;  %v4285_v1 = vmul.f32 %v5224_v21, %v5766_v30  ;;  %v4286_v13 = vmul.f32 %v5224_v21, %v5779_v56  ;;  %v4287_v60 = vmul.f32 %v5224_v21, %v5783_v9 }
 0x488   :  { %v4353_v54 = vmul.f32 %v5905_v61, %v4280_v26  ;;  %v4354_v14 = vmul.f32 %v5917_v39, %v4281_v34  ;;  %v4355_v8 = vmul.f32 %v5911_v4, %v4282_v63  ;;  %v4356_v12 = vmul.f32 %v5923_v20, %v4283_v3 }
 0x489   :  { %v4357_v35 = vmul.f32 %v5929_v0, %v4284_v17  ;;  %v4358_v47 = vmul.f32 %v5941_v43, %v4285_v1  ;;  %v4359_v55 = vmul.f32 %v5935_v42, %v4286_v13  ;;  %v4360_v30 = vmul.f32 %v5947_v29, %v4287_v60  ;;  %v5226_v10 = vpop.eup %5225 }
 0x48a   :  { %v4426_v56 = vadd.f32 %v5908_v49, %v4353_v54  ;;  %v4427_v9 = vadd.f32 %v5920_v18, %v4354_v14  ;;  %v4428_v44 = vadd.f32 %v5914_v50, %v4355_v8  ;;  %v4429_v11 = vadd.f32 %v5926_v41, %v4356_v12 }
 0x48b   :  { %v4430_v40 = vadd.f32 %v5932_v45, %v4357_v35  ;;  %v4431_v21 = vadd.f32 %v5944_v51, %v4358_v47  ;;  %v4432_v26 = vadd.f32 %v5938_v2, %v4359_v55  ;;  %v4433_v34 = vadd.f32 %v5950_v31, %v4360_v30  ;;  %v4267_v35 = vpop.xlane.xlu1 %4266 }
 0x48c   :  { %4458 = vst [vmem:[#allocation11] sm:$0xff] %v4426_v56  ;;  %4459 = vst [vmem:[#allocation11 + $0x8] sm:$0xff] %v4427_v9  ;;  %v4288_v63 = vmul.f32 %v5226_v10, %v5771_v32  ;;  %v4289_v3 = vmul.f32 %v5226_v10, %v5774_v5  ;;  %v4290_v17 = vmul.f32 %v5226_v10, %v5777_v37 }
 0x48d   :  { %4460 = vst [vmem:[#allocation11 + $0x10] sm:$0xff] %v4428_v44  ;;  %4461 = vst [vmem:[#allocation11 + $0x18] sm:$0xff] %v4429_v11  ;;  %v4291_v1 = vmul.f32 %v5226_v10, %v5786_v58  ;;  %v4292_v13 = vmul.f32 %v5226_v10, %v5797_v52  ;;  %v4293_v60 = vmul.f32 %v5226_v10, %v5810_v38  ;;  %v4271_v44 = vmul.f32 0.0009765625, %v4267_v35 }
 0x48e   :  { %4462 = vst [vmem:[#allocation11 + $0x20] sm:$0xff] %v4430_v40  ;;  %4463 = vst [vmem:[#allocation11 + $0x28] sm:$0xff] %v4431_v21  ;;  %v4294_v54 = vmul.f32 %v5226_v10, %v5820_v25  ;;  %v4295_v14 = vmul.f32 %v5226_v10, %v5827_v33  ;;  %v4361_v32 = vmul.f32 %v5905_v61, %v4288_v63  ;;  %v5228_v40 = vpop.eup %5227 }
 0x48f   :  { %4464 = vst [vmem:[#allocation11 + $0x30] sm:$0xff] %v4432_v26  ;;  %4465 = vst [vmem:[#allocation11 + $0x38] sm:$0xff] %v4433_v34  ;;  %v4362_v5 = vmul.f32 %v5917_v39, %v4289_v3  ;;  %v4363_v37 = vmul.f32 %v5911_v4, %v4290_v17  ;;  %v4364_v58 = vmul.f32 %v5923_v20, %v4291_v1  ;;  %v4275_v11 = vadd.f32 1e-05, %v4271_v44 }
 0x490   :  { %v4365_v8 = vmul.f32 %v5929_v0, %v4292_v13  ;;  %v4366_v12 = vmul.f32 %v5941_v43, %v4293_v60  ;;  %v4367_v52 = vmul.f32 %v5935_v42, %v4294_v54  ;;  %v4368_v38 = vmul.f32 %v5947_v29, %v4295_v14 }
 0x491   :  { %v4434_v25 = vadd.f32 %v5908_v49, %v4361_v32  ;;  %v4435_v33 = vadd.f32 %v5920_v18, %v4362_v5  ;;  %v4436_v47 = vadd.f32 %v5914_v50, %v4363_v37  ;;  %v4437_v55 = vadd.f32 %v5926_v41, %v4364_v58 }
 0x492   :  { %v4438_v30 = vadd.f32 %v5932_v45, %v4365_v8  ;;  %v4439_v10 = vadd.f32 %v5944_v51, %v4366_v12  ;;  %v4440_v56 = vadd.f32 %v5938_v2, %v4367_v52  ;;  %v4441_v9 = vadd.f32 %v5950_v31, %v4368_v38 }
 0x493   :  { %4466 = vst [vmem:[#allocation11 + $0x40] sm:$0xff] %v4434_v25  ;;  %4467 = vst [vmem:[#allocation11 + $0x48] sm:$0xff] %v4435_v33  ;;  %5229 = vrsqrt.f32 %v4275_v11  ;;  %v4296_v21 = vmul.f32 %v5228_v40, %v5802_v62  ;;  %v4297_v26 = vmul.f32 %v5228_v40, %v5805_v7  ;;  %v4298_v34 = vmul.f32 %v5228_v40, %v5813_v23 }
 0x494   :  { %4468 = vst [vmem:[#allocation11 + $0x50] sm:$0xff] %v4436_v47  ;;  %4469 = vst [vmem:[#allocation11 + $0x58] sm:$0xff] %v4437_v55  ;;  %v4299_v63 = vmul.f32 %v5228_v40, %v5832_v27  ;;  %v4300_v3 = vmul.f32 %v5228_v40, %v5837_v19  ;;  %v4301_v59 = vmul.f32 %v5228_v40, %v5853_v53 }
 0x495   :  { %4470 = vst [vmem:[#allocation11 + $0x60] sm:$0xff] %v4438_v30  ;;  %4471 = vst [vmem:[#allocation11 + $0x68] sm:$0xff] %v4439_v10  ;;  %v4302_v17 = vmul.f32 %v5228_v40, %v5867_v48  ;;  %v4303_v1 = vmul.f32 %v5228_v40, %v5877_v46  ;;  %v4369_v13 = vmul.f32 %v5905_v61, %v4296_v21 }
 0x496   :  { %4472 = vst [vmem:[#allocation11 + $0x70] sm:$0xff] %v4440_v56  ;;  %4473 = vst [vmem:[#allocation11 + $0x78] sm:$0xff] %v4441_v9  ;;  %v4370_v60 = vmul.f32 %v5917_v39, %v4297_v26  ;;  %v4371_v62 = vmul.f32 %v5911_v4, %v4298_v34  ;;  %v4372_v7 = vmul.f32 %v5923_v20, %v4299_v63 }
 0x497   :  { %v4373_v23 = vmul.f32 %v5929_v0, %v4300_v3  ;;  %v4374_v27 = vmul.f32 %v5941_v43, %v4301_v59  ;;  %v4375_v19 = vmul.f32 %v5935_v42, %v4302_v17  ;;  %v4376_v53 = vmul.f32 %v5947_v29, %v4303_v1 }
 0x498   :  { %v4442_v48 = vadd.f32 %v5908_v49, %v4369_v13  ;;  %v4443_v46 = vadd.f32 %v5920_v18, %v4370_v60  ;;  %v4444_v14 = vadd.f32 %v5914_v50, %v4371_v62  ;;  %v4445_v32 = vadd.f32 %v5926_v41, %v4372_v7 }
 0x499   :  { %v4446_v5 = vadd.f32 %v5932_v45, %v4373_v23  ;;  %v4447_v37 = vadd.f32 %v5944_v51, %v4374_v27  ;;  %v4448_v58 = vadd.f32 %v5938_v2, %v4375_v19  ;;  %v4449_v8 = vadd.f32 %v5950_v31, %v4376_v53 }
 0x49a   :  { %4474 = vst [vmem:[#allocation11 + $0x80] sm:$0xff] %v4442_v48  ;;  %4475 = vst [vmem:[#allocation11 + $0x88] sm:$0xff] %v4443_v46 }
 0x49b   :  { %4476 = vst [vmem:[#allocation11 + $0x90] sm:$0xff] %v4444_v14  ;;  %4477 = vst [vmem:[#allocation11 + $0x98] sm:$0xff] %v4445_v32 }
 0x49c   :  { %4478 = vst [vmem:[#allocation11 + $0xa0] sm:$0xff] %v4446_v5  ;;  %4479 = vst [vmem:[#allocation11 + $0xa8] sm:$0xff] %v4447_v37 }
 0x49d   :  { %v5230_v54 = vpop.eup %5229  ;;  %4480 = vst [vmem:[#allocation11 + $0xb0] sm:$0xff] %v4448_v58  ;;  %4481 = vst [vmem:[#allocation11 + $0xb8] sm:$0xff] %v4449_v8 }
 0x49e   :  { %v4304_v12 = vmul.f32 %v5230_v54, %v5842_v16  ;;  %v4305_v52 = vmul.f32 %v5230_v54, %v5845_v15  ;;  %v4306_v38 = vmul.f32 %v5230_v54, %v5850_v28  ;;  %v4307_v35 = vmul.f32 %v5230_v54, %v5860_v57 }
 0x49f   :  { %v4308_v25 = vmul.f32 %v5230_v54, %v5872_v24  ;;  %v4309_v33 = vmul.f32 %v5230_v54, %v5882_v22  ;;  %v4310_v47 = vmul.f32 %v5230_v54, %v5889_v6  ;;  %v4311_v55 = vmul.f32 %v5230_v54, %v5896_v36 }
 0x4a0   :  { %v4377_v16 = vmul.f32 %v5905_v61, %v4304_v12  ;;  %v4378_v15 = vmul.f32 %v5917_v39, %v4305_v52  ;;  %v4379_v28 = vmul.f32 %v5911_v4, %v4306_v38  ;;  %v4380_v57 = vmul.f32 %v5923_v20, %v4307_v35 }
 0x4a1   :  { %v4381_v30 = vmul.f32 %v5929_v0, %v4308_v25  ;;  %v4382_v24 = vmul.f32 %v5941_v43, %v4309_v33  ;;  %v4383_v22 = vmul.f32 %v5935_v42, %v4310_v47  ;;  %v4384_v6 = vmul.f32 %v5947_v29, %v4311_v55 }
 0x4a2   :  { %v4450_v36 = vadd.f32 %v5908_v49, %v4377_v16  ;;  %v4451_v61 = vadd.f32 %v5920_v18, %v4378_v15  ;;  %v4452_v39 = vadd.f32 %v5914_v50, %v4379_v28  ;;  %v4453_v4 = vadd.f32 %v5926_v41, %v4380_v57 }
 0x4a3   :  { %v4454_v20 = vadd.f32 %v5932_v45, %v4381_v30  ;;  %v4455_v10 = vadd.f32 %v5944_v51, %v4382_v24  ;;  %v4456_v0 = vadd.f32 %v5938_v2, %v4383_v22  ;;  %v4457_v43 = vadd.f32 %v5950_v31, %v4384_v6 }
 0x4a4   :  { %4482 = vst [vmem:[#allocation11 + $0xc0] sm:$0xff] %v4450_v36  ;;  %4483 = vst [vmem:[#allocation11 + $0xc8] sm:$0xff] %v4451_v61 }
 0x4a5   :  { %4484 = vst [vmem:[#allocation11 + $0xd0] sm:$0xff] %v4452_v39  ;;  %4485 = vst [vmem:[#allocation11 + $0xd8] sm:$0xff] %v4453_v4 }
 0x4a6   :  { %4486 = vst [vmem:[#allocation11 + $0xe0] sm:$0xff] %v4454_v20  ;;  %4487 = vst [vmem:[#allocation11 + $0xe8] sm:$0xff] %v4455_v10 }
 0x4a7   :  { %4488 = vst [vmem:[#allocation11 + $0xf0] sm:$0xff] %v4456_v0  ;;  %4489 = vst [vmem:[#allocation11 + $0xf8] sm:$0xff] %v4457_v43 }
 0x4a8   :  { %5352 = shalt.err (!%p5349_p2)
}
 0x4a9   :  { %s5353_s7 = scalar_lea.hbm %s6068_s5, 4096 }
 0x4aa   :  { %p5354_p3 = scmp.ne.s32.totalorder %s6068_s5, %s5353_s7  ;;  %p5357_p4 = scmp.lt.u32.totalorder %s5353_s7, %s6068_s5 }
 0x4ac   :  { %p5359_p5 = pnand %p5357_p4, %p5354_p3 }
 0x4ae   :  { %5362 = shalt.err (!%p5359_p5)
}
 0x4af   :  { %4501 = dma.vmem_to_hbm [thread:$0]  %s4496_s27, 4096, %s6068_s5, [#allocation4], %s5376_s3, %s5376_s3, %s5377_s28  }
 0x4b0   :  { %5369 = dma.done.wait [#allocation4], 4096  }
 0x4b1   :  { %5370 = vsyncadd [#allocation4], 4294963200 }
 0x4b2   :  { %4505 = vsyncpa [#allocation3], 1 }
 0x4b3   :  { %4506 = vsyncpa [#allocation6], 1 }
 0x4b4   :  { %4507 = vsyncpa [#allocation9], 1 }
 0x4b5   :  { %4508 = vsyncpa [#allocation4], 1 }

</bundles_post_ra>
